<compile_context>
chip_gen: v7x
topology: tpu7x:2x2x1
jax: 0.10.0
libtpu: 0.0.40
codegen_flags: <defaults>
</compile_context>

<pallas_src>
import functools

import jax
import jax.numpy as jnp
import numpy as np
from jax import lax
from jax.experimental import pallas as pl
from jax.experimental.pallas import tpu as pltpu


def _round_up(x, m):
    return (x + m - 1) // m * m


# ----------------------------- fused kernel -----------------------------
def _fused_lstm_fc_kernel(
    x_ref,      # (T*Bp, D)     bf16  time-major, batch-padded input
    wih1_ref,   # (D,  4*Hp)    bf16
    whh1_ref,   # (Hp, 4*Hp)    bf16
    b1_ref,     # (1,  4*Hp)    f32   (b_ih + b_hh, gate-lane-aligned)
    wih2_ref,   # (Hp, 4*Hp)    bf16
    whh2_ref,   # (Hp, 4*Hp)    bf16
    b2_ref,     # (1,  4*Hp)    f32
    wfc_ref,    # (T, Hp, Cp)   bf16  fc weight per timestep
    bfc_ref,    # (1, Cp)       f32
    out_ref,    # (Bp, Cp)      f32
    gx1_scr,    # (T*Bp, 4*Hp)  f32   hoisted layer-1 input-projection gates
    *, T, Bp, Hp, unroll,
):
    f32 = jnp.float32
    bf16 = jnp.bfloat16

    def sigmoid(x):
        # 0.5*tanh(0.5*x)+0.5: 1 EUP push instead of 2 (exp + reciprocal).
        return 0.5 * jnp.tanh(0.5 * x) + 0.5

    def cell(gates, c):
        # PyTorch gate order (i, f, g, o); slices are lane-aligned (Hp % 128 == 0).
        i_g = sigmoid(gates[:, 0 * Hp:1 * Hp])
        f_g = sigmoid(gates[:, 1 * Hp:2 * Hp])
        g_g = jnp.tanh(gates[:, 2 * Hp:3 * Hp])
        o_g = sigmoid(gates[:, 3 * Hp:4 * Hp])
        c_new = f_g * c + i_g * g_g
        h_new = o_g * jnp.tanh(c_new)
        return h_new, c_new

    # ---- layer-1 input projection: ONE big MXU matmul, bias folded in ----
    gx1_scr[...] = (
        jnp.dot(x_ref[...], wih1_ref[...], preferred_element_type=f32)
        + b1_ref[...]
    )

    zeros_hc = jnp.zeros((Bp, Hp), f32)
    Cp = out_ref.shape[1]
    acc0 = jnp.zeros((Bp, Cp), f32)

    # ---- prologue: layer-1 step 0 (h1_prev = c1_prev = 0 -> gates = gx1[0]) ----
    h1, c1 = cell(gx1_scr[pl.ds(0, Bp), :], zeros_hc)

    def layer2_step(h1_bf, h2, c2, acc, wfc_t):
        # Input projection (h1 already known -> off the h2 serial chain),
        # recurrent matmul, activations, and fused FC accumulate.
        gates2 = (
            jnp.dot(h1_bf, wih2_ref[...], preferred_element_type=f32)
            + b2_ref[...]
            + jnp.dot(h2.astype(bf16), whh2_ref[...], preferred_element_type=f32)
        )
        h2_new, c2_new = cell(gates2, c2)
        acc_new = acc + jnp.dot(h2_new.astype(bf16), wfc_t,
                                preferred_element_type=f32)
        return h2_new, c2_new, acc_new

    # ---- skewed main loop: iteration t does layer-2 step t AND layer-1 step t+1.
    # The two chains only share the already-computed h1_t, so they are
    # independent within an iteration and their matmul/EUP latencies overlap.
    def body(t, carry):
        h1, c1, h2, c2, acc = carry
        h1_bf = h1.astype(bf16)                       # reused by both chains

        # layer-2 step t (+ FC accumulate for step t)
        h2_new, c2_new, acc_new = layer2_step(h1_bf, h2, c2, acc, wfc_ref[t])

        # layer-1 step t+1
        row = pl.multiple_of((t + 1) * Bp, Bp)
        gates1 = gx1_scr[pl.ds(row, Bp), :] + jnp.dot(
            h1_bf, whh1_ref[...], preferred_element_type=f32)
        h1_new, c1_new = cell(gates1, c1)

        return h1_new, c1_new, h2_new, c2_new, acc_new

    h1, c1, h2, c2, acc = lax.fori_loop(
        0, T - 1, body, (h1, c1, zeros_hc, zeros_hc, acc0), unroll=unroll)

    # ---- epilogue: layer-2 step T-1 on the last layer-1 state ----
    _, _, acc = layer2_step(h1.astype(bf16), h2, c2, acc, wfc_ref[T - 1])

    out_ref[...] = (acc + bfc_ref[...]).astype(out_ref.dtype)


# ------------------------------- wrapper -------------------------------
def lstm_forward(x, packed):
    """x: (B, T, D) float32 -> (B, num_classes) float32."""
    B, T, D = x.shape
    Hp, Cp, C = packed["Hp"], packed["Cp"], packed["num_classes"]
    Bp = _round_up(B, 8)  # pad batch to f32 sublane multiple

    # time-major, batch-padded, flattened to (T*Bp, D); bf16 for the MXU.
    x_tm = jnp.transpose(x, (1, 0, 2))
    x_tm = jnp.pad(x_tm, ((0, 0), (0, Bp - B), (0, 0)))
    x_tm = x_tm.reshape(T * Bp, D).astype(jnp.bfloat16)

    # Bounded unroll keeps the interleaved carries from spilling the vreg file
    # at long T; short sequences get full unroll for LLO visibility.
    unroll = True if T <= 9 else 8

    kernel = functools.partial(_fused_lstm_fc_kernel,
                               T=T, Bp=Bp, Hp=Hp, unroll=unroll)
    out_padded = pl.pallas_call(
        kernel,
        out_shape=jax.ShapeDtypeStruct((Bp, Cp), jnp.float32),
        in_specs=[
            pl.BlockSpec((T * Bp, D), lambda: (0, 0)),
            pl.BlockSpec((D, 4 * Hp), lambda: (0, 0)),
            pl.BlockSpec((Hp, 4 * Hp), lambda: (0, 0)),
            pl.BlockSpec((1, 4 * Hp), lambda: (0, 0)),
            pl.BlockSpec((Hp, 4 * Hp), lambda: (0, 0)),
            pl.BlockSpec((Hp, 4 * Hp), lambda: (0, 0)),
            pl.BlockSpec((1, 4 * Hp), lambda: (0, 0)),
            pl.BlockSpec((T, Hp, Cp), lambda: (0, 0, 0)),
            pl.BlockSpec((1, Cp), lambda: (0, 0)),
        ],
        out_specs=pl.BlockSpec((Bp, Cp), lambda: (0, 0)),
        scratch_shapes=[
            pltpu.VMEM((T * Bp, 4 * Hp), jnp.float32),   # hoisted layer-1 gates
        ],
    )(
        x_tm,
        packed["wih1"], packed["whh1"], packed["b1"],
        packed["wih2"], packed["whh2"], packed["b2"],
        packed["wfc"], packed["bfc"],
    )
    return out_padded[:B, :C]


# --------------------------- parameter handling ---------------------------
def init_params(key, input_size, hidden_size, num_layers, num_classes, seq_len):
    """Deterministic init with nn.LSTM / nn.Linear parameter shapes (PyTorch layout)."""
    params = {"lstm": []}
    k = 1.0 / jnp.sqrt(hidden_size)
    in_dim = input_size
    for _ in range(num_layers):
        key, k1, k2, k3, k4 = jax.random.split(key, 5)
        params["lstm"].append({
            "w_ih": jax.random.uniform(k1, (4 * hidden_size, in_dim), jnp.float32, -k, k),
            "w_hh": jax.random.uniform(k2, (4 * hidden_size, hidden_size), jnp.float32, -k, k),
            "b_ih": jax.random.uniform(k3, (4 * hidden_size,), jnp.float32, -k, k),
            "b_hh": jax.random.uniform(k4, (4 * hidden_size,), jnp.float32, -k, k),
        })
        in_dim = hidden_size
    key, k1, k2 = jax.random.split(key, 3)
    fc_in = hidden_size * seq_len
    kf = 1.0 / jnp.sqrt(fc_in)
    params["fc"] = {
        "weight": jax.random.uniform(k1, (num_classes, fc_in), jnp.float32, -kf, kf),
        "bias": jax.random.uniform(k2, (num_classes,), jnp.float32, -kf, kf),
    }
    return params


def pack_params(params, input_size, hidden_size, num_classes, seq_len):
    """Transpose/pad weights to the lane-aligned, bf16, MXU-ready kernel layout."""
    assert len(params["lstm"]) == 2, "kernel is specialized for num_layers=2"
    H = hidden_size
    Hp = _round_up(H, 128)       # gate block width -> lane-aligned slices
    Cp = _round_up(num_classes, 128)

    def pack_gates(w_t, rows_p):
        # w_t: (in_dim, 4H) -> (rows_p, 4*Hp), gate k at lanes [k*Hp, k*Hp+H)
        in_dim = w_t.shape[0]
        out = jnp.zeros((rows_p, 4 * Hp), jnp.float32)
        for g in range(4):
            out = out.at[:in_dim, g * Hp:g * Hp + H].set(w_t[:, g * H:(g + 1) * H])
        return out.astype(jnp.bfloat16)

    def pack_bias(b):
        out = jnp.zeros((1, 4 * Hp), jnp.float32)
        for g in range(4):
            out = out.at[0, g * Hp:g * Hp + H].set(b[g * H:(g + 1) * H])
        return out

    l1, l2 = params["lstm"]
    packed = {
        "Hp": Hp, "Cp": Cp, "num_classes": num_classes,
        "wih1": pack_gates(l1["w_ih"].T, input_size),
        "whh1": pack_gates(l1["w_hh"].T, Hp),
        "b1": pack_bias(l1["b_ih"] + l1["b_hh"]),
        "wih2": pack_gates(l2["w_ih"].T, Hp),
        "whh2": pack_gates(l2["w_hh"].T, Hp),
        "b2": pack_bias(l2["b_ih"] + l2["b_hh"]),
    }
    # fc.weight is (C, T*H); feature order = flatten of (T, H) per batch row.
    w = params["fc"]["weight"]
    wfc = jnp.zeros((seq_len, Hp, Cp), jnp.float32)
    for t in range(seq_len):
        wfc = wfc.at[t, :H, :num_classes].set(w[:, t * H:(t + 1) * H].T)
    packed["wfc"] = wfc.astype(jnp.bfloat16)
    packed["bfc"] = (jnp.zeros((1, Cp), jnp.float32)
                     .at[0, :num_classes].set(params["fc"]["bias"]))
    return packed


# --------------------------- pure-JAX reference ---------------------------
def reference_forward(x, params):
    B, T, _ = x.shape
    h_seq = x
    for layer in params["lstm"]:
        w_ih, w_hh = layer["w_ih"], layer["w_hh"]
        b = layer["b_ih"] + layer["b_hh"]
        H = w_hh.shape[1]
        h = jnp.zeros((B, H), jnp.float32)
        c = jnp.zeros((B, H), jnp.float32)
        outs = []
        for t in range(T):
            gates = h_seq[:, t, :] @ w_ih.T + h @ w_hh.T + b
            i = jax.nn.sigmoid(gates[:, 0 * H:1 * H])
            f = jax.nn.sigmoid(gates[:, 1 * H:2 * H])
            g = jnp.tanh(gates[:, 2 * H:3 * H])
            o = jax.nn.sigmoid(gates[:, 3 * H:4 * H])
            c = f * c + i * g
            h = o * jnp.tanh(c)
            outs.append(h)
        h_seq = jnp.stack(outs, axis=1)
    flat = h_seq.reshape(B, -1)
    return flat @ params["fc"]["weight"].T + params["fc"]["bias"]


# --------------------------------- demo ---------------------------------
if __name__ == "__main__":
    batch, seq_len = 2, 8
    input_size, hidden_size = 16, 32
    num_layers, num_classes = 2, 10

    key = jax.random.PRNGKey(0)
    key, pkey, xkey = jax.random.split(key, 3)
    params = init_params(pkey, input_size, hidden_size, num_layers,
                         num_classes, seq_len)
    packed = pack_params(params, input_size, hidden_size, num_classes, seq_len)
    x = jax.random.normal(xkey, (batch, seq_len, input_size), jnp.float32)

    fwd = jax.jit(lambda xx: lstm_forward(xx, packed))
    out = jax.block_until_ready(fwd(x))
    assert out.shape == (batch, num_classes), out.shape

    # Correctness check vs f32 pure-JAX reference (bf16 MXU operands -> loose tol).
    ref = reference_forward(x, params)
    np.testing.assert_allclose(np.asarray(out), np.asarray(ref),
                               rtol=2e-2, atol=2e-2)
    print("KERNEL_OK")
</pallas_src>

<mosaic_0001>
module attributes {stable_mosaic.version = 11 : i64} {
  func.func @_fused_lstm_fc_kernel(%arg0: memref<64x16xbf16, #tpu.memory_space<vmem>>, %arg1: memref<16x512xbf16, #tpu.memory_space<vmem>>, %arg2: memref<128x512xbf16, #tpu.memory_space<vmem>>, %arg3: memref<1x512xf32, #tpu.memory_space<vmem>>, %arg4: memref<128x512xbf16, #tpu.memory_space<vmem>>, %arg5: memref<128x512xbf16, #tpu.memory_space<vmem>>, %arg6: memref<1x512xf32, #tpu.memory_space<vmem>>, %arg7: memref<8x128x128xbf16, #tpu.memory_space<vmem>>, %arg8: memref<1x128xf32, #tpu.memory_space<vmem>>, %arg9: memref<8x128xf32, #tpu.memory_space<vmem>>, %arg10: memref<64x512xf32, #tpu.memory_space<vmem>>) attributes {dimension_semantics = [], scalar_prefetch = 0 : i64, scratch_operands = 1 : i64, tpu.core_type = #tpu.core_type<tc>} {
    %c0 = arith.constant 0 : index
    %c0_0 = arith.constant 0 : index
    %0 = vector.load %arg0[%c0, %c0_0] : memref<64x16xbf16, #tpu.memory_space<vmem>>, vector<64x16xbf16>
    %c0_1 = arith.constant 0 : index
    %c0_2 = arith.constant 0 : index
    %1 = vector.load %arg1[%c0_1, %c0_2] : memref<16x512xbf16, #tpu.memory_space<vmem>>, vector<16x512xbf16>
    %cst = arith.constant dense<0.000000e+00> : vector<64x512xf32>
    %2 = tpu.matmul %0, %1, %cst {dimension_numbers = #tpu.dot_dimension_numbers<[1], [0], [0], [1], [0, 0, 1, 1], [], []>} : vector<64x16xbf16>, vector<16x512xbf16>, vector<64x512xf32> -> vector<64x512xf32>
    %c0_3 = arith.constant 0 : index
    %c0_4 = arith.constant 0 : index
    %3 = vector.load %arg3[%c0_3, %c0_4] : memref<1x512xf32, #tpu.memory_space<vmem>>, vector<1x512xf32>
    %4 = vector.broadcast %3 : vector<1x512xf32> to vector<64x512xf32>
    %5 = arith.addf %2, %4 : vector<64x512xf32>
    %c0_5 = arith.constant 0 : index
    %c0_6 = arith.constant 0 : index
    %6 = vector.load %arg10[%c0_5, %c0_6] : memref<64x512xf32, #tpu.memory_space<vmem>>, vector<64x512xf32>
    tpu.vector_store %arg10[%c0_5, %c0_6], %5 {strides = array<i32>} : memref<64x512xf32, #tpu.memory_space<vmem>>, vector<64x512xf32>,
    %cst_7 = arith.constant 0.000000e+00 : f32
    %7 = vector.broadcast %cst_7 : f32 to vector<8x128xf32>
    %cst_8 = arith.constant 0.000000e+00 : f32
    %8 = vector.broadcast %cst_8 : f32 to vector<8x128xf32>
    %c0_9 = arith.constant 0 : index
    %c0_10 = arith.constant 0 : index
    %9 = vector.load %arg10[%c0_9, %c0_10] : memref<64x512xf32, #tpu.memory_space<vmem>>, vector<8x512xf32>
    %10 = vector.extract_strided_slice %9 {offsets = [0, 0], sizes = [8, 128], strides = [1, 1]} : vector<8x512xf32> to vector<8x128xf32>
    %cst_11 = arith.constant 5.000000e-01 : f32
    %11 = vector.broadcast %cst_11 : f32 to vector<8x128xf32>
    %12 = arith.mulf %11, %10 : vector<8x128xf32>
    %13 = math.tanh %12 : vector<8x128xf32>
    %cst_12 = arith.constant 5.000000e-01 : f32
    %14 = vector.broadcast %cst_12 : f32 to vector<8x128xf32>
    %15 = arith.mulf %14, %13 : vector<8x128xf32>
    %cst_13 = arith.constant 5.000000e-01 : f32
    %16 = vector.broadcast %cst_13 : f32 to vector<8x128xf32>
    %17 = arith.addf %15, %16 : vector<8x128xf32>
    %18 = vector.extract_strided_slice %9 {offsets = [0, 128], sizes = [8, 128], strides = [1, 1]} : vector<8x512xf32> to vector<8x128xf32>
    %cst_14 = arith.constant 5.000000e-01 : f32
    %19 = vector.broadcast %cst_14 : f32 to vector<8x128xf32>
    %20 = arith.mulf %19, %18 : vector<8x128xf32>
    %21 = math.tanh %20 : vector<8x128xf32>
    %cst_15 = arith.constant 5.000000e-01 : f32
    %22 = vector.broadcast %cst_15 : f32 to vector<8x128xf32>
    %23 = arith.mulf %22, %21 : vector<8x128xf32>
    %cst_16 = arith.constant 5.000000e-01 : f32
    %24 = vector.broadcast %cst_16 : f32 to vector<8x128xf32>
    %25 = arith.addf %23, %24 : vector<8x128xf32>
    %26 = vector.extract_strided_slice %9 {offsets = [0, 256], sizes = [8, 128], strides = [1, 1]} : vector<8x512xf32> to vector<8x128xf32>
    %27 = math.tanh %26 : vector<8x128xf32>
    %28 = vector.extract_strided_slice %9 {offsets = [0, 384], sizes = [8, 128], strides = [1, 1]} : vector<8x512xf32> to vector<8x128xf32>
    %cst_17 = arith.constant 5.000000e-01 : f32
    %29 = vector.broadcast %cst_17 : f32 to vector<8x128xf32>
    %30 = arith.mulf %29, %28 : vector<8x128xf32>
    %31 = math.tanh %30 : vector<8x128xf32>
    %cst_18 = arith.constant 5.000000e-01 : f32
    %32 = vector.broadcast %cst_18 : f32 to vector<8x128xf32>
    %33 = arith.mulf %32, %31 : vector<8x128xf32>
    %cst_19 = arith.constant 5.000000e-01 : f32
    %34 = vector.broadcast %cst_19 : f32 to vector<8x128xf32>
    %35 = arith.addf %33, %34 : vector<8x128xf32>
    %36 = arith.mulf %25, %7 : vector<8x128xf32>
    %37 = arith.mulf %17, %27 : vector<8x128xf32>
    %38 = arith.addf %36, %37 : vector<8x128xf32>
    %39 = math.tanh %38 : vector<8x128xf32>
    %40 = arith.mulf %35, %39 : vector<8x128xf32>
    %c0_i32 = arith.constant 0 : i32
    %41 = arith.truncf %40 : vector<8x128xf32> to vector<8x128xbf16>
    %42 = arith.index_cast %c0_i32 : i32 to index
    %c0_20 = arith.constant 0 : index
    %c0_21 = arith.constant 0 : index
    %43 = vector.load %arg7[%42, %c0_20, %c0_21] : memref<8x128x128xbf16, #tpu.memory_space<vmem>>, vector<1x128x128xbf16>
    %44 = vector.shape_cast %43 : vector<1x128x128xbf16> to vector<128x128xbf16>
    %c0_22 = arith.constant 0 : index
    %c0_23 = arith.constant 0 : index
    %45 = vector.load %arg4[%c0_22, %c0_23] : memref<128x512xbf16, #tpu.memory_space<vmem>>, vector<128x512xbf16>
    %cst_24 = arith.constant dense<0.000000e+00> : vector<8x512xf32>
    %46 = tpu.matmul %41, %45, %cst_24 {dimension_numbers = #tpu.dot_dimension_numbers<[1], [0], [0], [1], [0, 0, 1, 1], [], []>} : vector<8x128xbf16>, vector<128x512xbf16>, vector<8x512xf32> -> vector<8x512xf32>
    %c0_25 = arith.constant 0 : index
    %c0_26 = arith.constant 0 : index
    %47 = vector.load %arg6[%c0_25, %c0_26] : memref<1x512xf32, #tpu.memory_space<vmem>>, vector<1x512xf32>
    %48 = vector.broadcast %47 : vector<1x512xf32> to vector<8x512xf32>
    %49 = arith.addf %46, %48 : vector<8x512xf32>
    %50 = arith.truncf %7 : vector<8x128xf32> to vector<8x128xbf16>
    %c0_27 = arith.constant 0 : index
    %c0_28 = arith.constant 0 : index
    %51 = vector.load %arg5[%c0_27, %c0_28] : memref<128x512xbf16, #tpu.memory_space<vmem>>, vector<128x512xbf16>
    %cst_29 = arith.constant dense<0.000000e+00> : vector<8x512xf32>
    %52 = tpu.matmul %50, %51, %cst_29 {dimension_numbers = #tpu.dot_dimension_numbers<[1], [0], [0], [1], [0, 0, 1, 1], [], []>} : vector<8x128xbf16>, vector<128x512xbf16>, vector<8x512xf32> -> vector<8x512xf32>
    %53 = arith.addf %49, %52 : vector<8x512xf32>
    %54 = vector.extract_strided_slice %53 {offsets = [0, 0], sizes = [8, 128], strides = [1, 1]} : vector<8x512xf32> to vector<8x128xf32>
    %cst_30 = arith.constant 5.000000e-01 : f32
    %55 = vector.broadcast %cst_30 : f32 to vector<8x128xf32>
    %56 = arith.mulf %55, %54 : vector<8x128xf32>
    %57 = math.tanh %56 : vector<8x128xf32>
    %cst_31 = arith.constant 5.000000e-01 : f32
    %58 = vector.broadcast %cst_31 : f32 to vector<8x128xf32>
    %59 = arith.mulf %58, %57 : vector<8x128xf32>
    %cst_32 = arith.constant 5.000000e-01 : f32
    %60 = vector.broadcast %cst_32 : f32 to vector<8x128xf32>
    %61 = arith.addf %59, %60 : vector<8x128xf32>
    %62 = vector.extract_strided_slice %53 {offsets = [0, 128], sizes = [8, 128], strides = [1, 1]} : vector<8x512xf32> to vector<8x128xf32>
    %cst_33 = arith.constant 5.000000e-01 : f32
    %63 = vector.broadcast %cst_33 : f32 to vector<8x128xf32>
    %64 = arith.mulf %63, %62 : vector<8x128xf32>
    %65 = math.tanh %64 : vector<8x128xf32>
    %cst_34 = arith.constant 5.000000e-01 : f32
    %66 = vector.broadcast %cst_34 : f32 to vector<8x128xf32>
    %67 = arith.mulf %66, %65 : vector<8x128xf32>
    %cst_35 = arith.constant 5.000000e-01 : f32
    %68 = vector.broadcast %cst_35 : f32 to vector<8x128xf32>
    %69 = arith.addf %67, %68 : vector<8x128xf32>
    %70 = vector.extract_strided_slice %53 {offsets = [0, 256], sizes = [8, 128], strides = [1, 1]} : vector<8x512xf32> to vector<8x128xf32>
    %71 = math.tanh %70 : vector<8x128xf32>
    %72 = vector.extract_strided_slice %53 {offsets = [0, 384], sizes = [8, 128], strides = [1, 1]} : vector<8x512xf32> to vector<8x128xf32>
    %cst_36 = arith.constant 5.000000e-01 : f32
    %73 = vector.broadcast %cst_36 : f32 to vector<8x128xf32>
    %74 = arith.mulf %73, %72 : vector<8x128xf32>
    %75 = math.tanh %74 : vector<8x128xf32>
    %cst_37 = arith.constant 5.000000e-01 : f32
    %76 = vector.broadcast %cst_37 : f32 to vector<8x128xf32>
    %77 = arith.mulf %76, %75 : vector<8x128xf32>
    %cst_38 = arith.constant 5.000000e-01 : f32
    %78 = vector.broadcast %cst_38 : f32 to vector<8x128xf32>
    %79 = arith.addf %77, %78 : vector<8x128xf32>
    %80 = arith.mulf %69, %7 : vector<8x128xf32>
    %81 = arith.mulf %61, %71 : vector<8x128xf32>
    %82 = arith.addf %80, %81 : vector<8x128xf32>
    %83 = math.tanh %82 : vector<8x128xf32>
    %84 = arith.mulf %79, %83 : vector<8x128xf32>
    %85 = arith.truncf %84 : vector<8x128xf32> to vector<8x128xbf16>
    %cst_39 = arith.constant dense<0.000000e+00> : vector<8x128xf32>
    %86 = tpu.matmul %85, %44, %cst_39 {dimension_numbers = #tpu.dot_dimension_numbers<[1], [0], [0], [1], [0, 0, 1, 1], [], []>} : vector<8x128xbf16>, vector<128x128xbf16>, vector<8x128xf32> -> vector<8x128xf32>
    %87 = arith.addf %8, %86 : vector<8x128xf32>
    %c1_i32 = arith.constant 1 : i32
    %88 = arith.addi %c0_i32, %c1_i32 : i32
    %c8_i32 = arith.constant 8 : i32
    %89 = arith.muli %88, %c8_i32 : i32
    %90 = tpu.assume_multiple %89, 8 : i32
    %91 = arith.index_cast %90 : i32 to index
    %c0_40 = arith.constant 0 : index
    %92 = vector.load %arg10[%91, %c0_40] : memref<64x512xf32, #tpu.memory_space<vmem>>, vector<8x512xf32>
    %c0_41 = arith.constant 0 : index
    %c0_42 = arith.constant 0 : index
    %93 = vector.load %arg2[%c0_41, %c0_42] : memref<128x512xbf16, #tpu.memory_space<vmem>>, vector<128x512xbf16>
    %cst_43 = arith.constant dense<0.000000e+00> : vector<8x512xf32>
    %94 = tpu.matmul %41, %93, %cst_43 {dimension_numbers = #tpu.dot_dimension_numbers<[1], [0], [0], [1], [0, 0, 1, 1], [], []>} : vector<8x128xbf16>, vector<128x512xbf16>, vector<8x512xf32> -> vector<8x512xf32>
    %95 = arith.addf %92, %94 : vector<8x512xf32>
    %96 = vector.extract_strided_slice %95 {offsets = [0, 0], sizes = [8, 128], strides = [1, 1]} : vector<8x512xf32> to vector<8x128xf32>
    %cst_44 = arith.constant 5.000000e-01 : f32
    %97 = vector.broadcast %cst_44 : f32 to vector<8x128xf32>
    %98 = arith.mulf %97, %96 : vector<8x128xf32>
    %99 = math.tanh %98 : vector<8x128xf32>
    %cst_45 = arith.constant 5.000000e-01 : f32
    %100 = vector.broadcast %cst_45 : f32 to vector<8x128xf32>
    %101 = arith.mulf %100, %99 : vector<8x128xf32>
    %cst_46 = arith.constant 5.000000e-01 : f32
    %102 = vector.broadcast %cst_46 : f32 to vector<8x128xf32>
    %103 = arith.addf %101, %102 : vector<8x128xf32>
    %104 = vector.extract_strided_slice %95 {offsets = [0, 128], sizes = [8, 128], strides = [1, 1]} : vector<8x512xf32> to vector<8x128xf32>
    %cst_47 = arith.constant 5.000000e-01 : f32
    %105 = vector.broadcast %cst_47 : f32 to vector<8x128xf32>
    %106 = arith.mulf %105, %104 : vector<8x128xf32>
    %107 = math.tanh %106 : vector<8x128xf32>
    %cst_48 = arith.constant 5.000000e-01 : f32
    %108 = vector.broadcast %cst_48 : f32 to vector<8x128xf32>
    %109 = arith.mulf %108, %107 : vector<8x128xf32>
    %cst_49 = arith.constant 5.000000e-01 : f32
    %110 = vector.broadcast %cst_49 : f32 to vector<8x128xf32>
    %111 = arith.addf %109, %110 : vector<8x128xf32>
    %112 = vector.extract_strided_slice %95 {offsets = [0, 256], sizes = [8, 128], strides = [1, 1]} : vector<8x512xf32> to vector<8x128xf32>
    %113 = math.tanh %112 : vector<8x128xf32>
    %114 = vector.extract_strided_slice %95 {offsets = [0, 384], sizes = [8, 128], strides = [1, 1]} : vector<8x512xf32> to vector<8x128xf32>
    %cst_50 = arith.constant 5.000000e-01 : f32
    %115 = vector.broadcast %cst_50 : f32 to vector<8x128xf32>
    %116 = arith.mulf %115, %114 : vector<8x128xf32>
    %117 = math.tanh %116 : vector<8x128xf32>
    %cst_51 = arith.constant 5.000000e-01 : f32
    %118 = vector.broadcast %cst_51 : f32 to vector<8x128xf32>
    %119 = arith.mulf %118, %117 : vector<8x128xf32>
    %cst_52 = arith.constant 5.000000e-01 : f32
    %120 = vector.broadcast %cst_52 : f32 to vector<8x128xf32>
    %121 = arith.addf %119, %120 : vector<8x128xf32>
    %122 = arith.mulf %111, %38 : vector<8x128xf32>
    %123 = arith.mulf %103, %113 : vector<8x128xf32>
    %124 = arith.addf %122, %123 : vector<8x128xf32>
    %125 = math.tanh %124 : vector<8x128xf32>
    %126 = arith.mulf %121, %125 : vector<8x128xf32>
    %c1_i32_53 = arith.constant 1 : i32
    %127 = arith.truncf %126 : vector<8x128xf32> to vector<8x128xbf16>
    %128 = arith.index_cast %c1_i32_53 : i32 to index
    %c0_54 = arith.constant 0 : index
    %c0_55 = arith.constant 0 : index
    %129 = vector.load %arg7[%128, %c0_54, %c0_55] : memref<8x128x128xbf16, #tpu.memory_space<vmem>>, vector<1x128x128xbf16>
    %130 = vector.shape_cast %129 : vector<1x128x128xbf16> to vector<128x128xbf16>
    %c0_56 = arith.constant 0 : index
    %c0_57 = arith.constant 0 : index
    %131 = vector.load %arg4[%c0_56, %c0_57] : memref<128x512xbf16, #tpu.memory_space<vmem>>, vector<128x512xbf16>
    %cst_58 = arith.constant dense<0.000000e+00> : vector<8x512xf32>
    %132 = tpu.matmul %127, %131, %cst_58 {dimension_numbers = #tpu.dot_dimension_numbers<[1], [0], [0], [1], [0, 0, 1, 1], [], []>} : vector<8x128xbf16>, vector<128x512xbf16>, vector<8x512xf32> -> vector<8x512xf32>
    %c0_59 = arith.constant 0 : index
    %c0_60 = arith.constant 0 : index
    %133 = vector.load %arg6[%c0_59, %c0_60] : memref<1x512xf32, #tpu.memory_space<vmem>>, vector<1x512xf32>
    %134 = vector.broadcast %133 : vector<1x512xf32> to vector<8x512xf32>
    %135 = arith.addf %132, %134 : vector<8x512xf32>
    %136 = arith.truncf %84 : vector<8x128xf32> to vector<8x128xbf16>
    %c0_61 = arith.constant 0 : index
    %c0_62 = arith.constant 0 : index
    %137 = vector.load %arg5[%c0_61, %c0_62] : memref<128x512xbf16, #tpu.memory_space<vmem>>, vector<128x512xbf16>
    %cst_63 = arith.constant dense<0.000000e+00> : vector<8x512xf32>
    %138 = tpu.matmul %136, %137, %cst_63 {dimension_numbers = #tpu.dot_dimension_numbers<[1], [0], [0], [1], [0, 0, 1, 1], [], []>} : vector<8x128xbf16>, vector<128x512xbf16>, vector<8x512xf32> -> vector<8x512xf32>
    %139 = arith.addf %135, %138 : vector<8x512xf32>
    %140 = vector.extract_strided_slice %139 {offsets = [0, 0], sizes = [8, 128], strides = [1, 1]} : vector<8x512xf32> to vector<8x128xf32>
    %cst_64 = arith.constant 5.000000e-01 : f32
    %141 = vector.broadcast %cst_64 : f32 to vector<8x128xf32>
    %142 = arith.mulf %141, %140 : vector<8x128xf32>
    %143 = math.tanh %142 : vector<8x128xf32>
    %cst_65 = arith.constant 5.000000e-01 : f32
    %144 = vector.broadcast %cst_65 : f32 to vector<8x128xf32>
    %145 = arith.mulf %144, %143 : vector<8x128xf32>
    %cst_66 = arith.constant 5.000000e-01 : f32
    %146 = vector.broadcast %cst_66 : f32 to vector<8x128xf32>
    %147 = arith.addf %145, %146 : vector<8x128xf32>
    %148 = vector.extract_strided_slice %139 {offsets = [0, 128], sizes = [8, 128], strides = [1, 1]} : vector<8x512xf32> to vector<8x128xf32>
    %cst_67 = arith.constant 5.000000e-01 : f32
    %149 = vector.broadcast %cst_67 : f32 to vector<8x128xf32>
    %150 = arith.mulf %149, %148 : vector<8x128xf32>
    %151 = math.tanh %150 : vector<8x128xf32>
    %cst_68 = arith.constant 5.000000e-01 : f32
    %152 = vector.broadcast %cst_68 : f32 to vector<8x128xf32>
    %153 = arith.mulf %152, %151 : vector<8x128xf32>
    %cst_69 = arith.constant 5.000000e-01 : f32
    %154 = vector.broadcast %cst_69 : f32 to vector<8x128xf32>
    %155 = arith.addf %153, %154 : vector<8x128xf32>
    %156 = vector.extract_strided_slice %139 {offsets = [0, 256], sizes = [8, 128], strides = [1, 1]} : vector<8x512xf32> to vector<8x128xf32>
    %157 = math.tanh %156 : vector<8x128xf32>
    %158 = vector.extract_strided_slice %139 {offsets = [0, 384], sizes = [8, 128], strides = [1, 1]} : vector<8x512xf32> to vector<8x128xf32>
    %cst_70 = arith.constant 5.000000e-01 : f32
    %159 = vector.broadcast %cst_70 : f32 to vector<8x128xf32>
    %160 = arith.mulf %159, %158 : vector<8x128xf32>
    %161 = math.tanh %160 : vector<8x128xf32>
    %cst_71 = arith.constant 5.000000e-01 : f32
    %162 = vector.broadcast %cst_71 : f32 to vector<8x128xf32>
    %163 = arith.mulf %162, %161 : vector<8x128xf32>
    %cst_72 = arith.constant 5.000000e-01 : f32
    %164 = vector.broadcast %cst_72 : f32 to vector<8x128xf32>
    %165 = arith.addf %163, %164 : vector<8x128xf32>
    %166 = arith.mulf %155, %82 : vector<8x128xf32>
    %167 = arith.mulf %147, %157 : vector<8x128xf32>
    %168 = arith.addf %166, %167 : vector<8x128xf32>
    %169 = math.tanh %168 : vector<8x128xf32>
    %170 = arith.mulf %165, %169 : vector<8x128xf32>
    %171 = arith.truncf %170 : vector<8x128xf32> to vector<8x128xbf16>
    %cst_73 = arith.constant dense<0.000000e+00> : vector<8x128xf32>
    %172 = tpu.matmul %171, %130, %cst_73 {dimension_numbers = #tpu.dot_dimension_numbers<[1], [0], [0], [1], [0, 0, 1, 1], [], []>} : vector<8x128xbf16>, vector<128x128xbf16>, vector<8x128xf32> -> vector<8x128xf32>
    %173 = arith.addf %87, %172 : vector<8x128xf32>
    %c1_i32_74 = arith.constant 1 : i32
    %174 = arith.addi %c1_i32_53, %c1_i32_74 : i32
    %c8_i32_75 = arith.constant 8 : i32
    %175 = arith.muli %174, %c8_i32_75 : i32
    %176 = tpu.assume_multiple %175, 8 : i32
    %177 = arith.index_cast %176 : i32 to index
    %c0_76 = arith.constant 0 : index
    %178 = vector.load %arg10[%177, %c0_76] : memref<64x512xf32, #tpu.memory_space<vmem>>, vector<8x512xf32>
    %c0_77 = arith.constant 0 : index
    %c0_78 = arith.constant 0 : index
    %179 = vector.load %arg2[%c0_77, %c0_78] : memref<128x512xbf16, #tpu.memory_space<vmem>>, vector<128x512xbf16>
    %cst_79 = arith.constant dense<0.000000e+00> : vector<8x512xf32>
    %180 = tpu.matmul %127, %179, %cst_79 {dimension_numbers = #tpu.dot_dimension_numbers<[1], [0], [0], [1], [0, 0, 1, 1], [], []>} : vector<8x128xbf16>, vector<128x512xbf16>, vector<8x512xf32> -> vector<8x512xf32>
    %181 = arith.addf %178, %180 : vector<8x512xf32>
    %182 = vector.extract_strided_slice %181 {offsets = [0, 0], sizes = [8, 128], strides = [1, 1]} : vector<8x512xf32> to vector<8x128xf32>
    %cst_80 = arith.constant 5.000000e-01 : f32
    %183 = vector.broadcast %cst_80 : f32 to vector<8x128xf32>
    %184 = arith.mulf %183, %182 : vector<8x128xf32>
    %185 = math.tanh %184 : vector<8x128xf32>
    %cst_81 = arith.constant 5.000000e-01 : f32
    %186 = vector.broadcast %cst_81 : f32 to vector<8x128xf32>
    %187 = arith.mulf %186, %185 : vector<8x128xf32>
    %cst_82 = arith.constant 5.000000e-01 : f32
    %188 = vector.broadcast %cst_82 : f32 to vector<8x128xf32>
    %189 = arith.addf %187, %188 : vector<8x128xf32>
    %190 = vector.extract_strided_slice %181 {offsets = [0, 128], sizes = [8, 128], strides = [1, 1]} : vector<8x512xf32> to vector<8x128xf32>
    %cst_83 = arith.constant 5.000000e-01 : f32
    %191 = vector.broadcast %cst_83 : f32 to vector<8x128xf32>
    %192 = arith.mulf %191, %190 : vector<8x128xf32>
    %193 = math.tanh %192 : vector<8x128xf32>
    %cst_84 = arith.constant 5.000000e-01 : f32
    %194 = vector.broadcast %cst_84 : f32 to vector<8x128xf32>
    %195 = arith.mulf %194, %193 : vector<8x128xf32>
    %cst_85 = arith.constant 5.000000e-01 : f32
    %196 = vector.broadcast %cst_85 : f32 to vector<8x128xf32>
    %197 = arith.addf %195, %196 : vector<8x128xf32>
    %198 = vector.extract_strided_slice %181 {offsets = [0, 256], sizes = [8, 128], strides = [1, 1]} : vector<8x512xf32> to vector<8x128xf32>
    %199 = math.tanh %198 : vector<8x128xf32>
    %200 = vector.extract_strided_slice %181 {offsets = [0, 384], sizes = [8, 128], strides = [1, 1]} : vector<8x512xf32> to vector<8x128xf32>
    %cst_86 = arith.constant 5.000000e-01 : f32
    %201 = vector.broadcast %cst_86 : f32 to vector<8x128xf32>
    %202 = arith.mulf %201, %200 : vector<8x128xf32>
    %203 = math.tanh %202 : vector<8x128xf32>
    %cst_87 = arith.constant 5.000000e-01 : f32
    %204 = vector.broadcast %cst_87 : f32 to vector<8x128xf32>
    %205 = arith.mulf %204, %203 : vector<8x128xf32>
    %cst_88 = arith.constant 5.000000e-01 : f32
    %206 = vector.broadcast %cst_88 : f32 to vector<8x128xf32>
    %207 = arith.addf %205, %206 : vector<8x128xf32>
    %208 = arith.mulf %197, %124 : vector<8x128xf32>
    %209 = arith.mulf %189, %199 : vector<8x128xf32>
    %210 = arith.addf %208, %209 : vector<8x128xf32>
    %211 = math.tanh %210 : vector<8x128xf32>
    %212 = arith.mulf %207, %211 : vector<8x128xf32>
    %c2_i32 = arith.constant 2 : i32
    %213 = arith.truncf %212 : vector<8x128xf32> to vector<8x128xbf16>
    %214 = arith.index_cast %c2_i32 : i32 to index
    %c0_89 = arith.constant 0 : index
    %c0_90 = arith.constant 0 : index
    %215 = vector.load %arg7[%214, %c0_89, %c0_90] : memref<8x128x128xbf16, #tpu.memory_space<vmem>>, vector<1x128x128xbf16>
    %216 = vector.shape_cast %215 : vector<1x128x128xbf16> to vector<128x128xbf16>
    %c0_91 = arith.constant 0 : index
    %c0_92 = arith.constant 0 : index
    %217 = vector.load %arg4[%c0_91, %c0_92] : memref<128x512xbf16, #tpu.memory_space<vmem>>, vector<128x512xbf16>
    %cst_93 = arith.constant dense<0.000000e+00> : vector<8x512xf32>
    %218 = tpu.matmul %213, %217, %cst_93 {dimension_numbers = #tpu.dot_dimension_numbers<[1], [0], [0], [1], [0, 0, 1, 1], [], []>} : vector<8x128xbf16>, vector<128x512xbf16>, vector<8x512xf32> -> vector<8x512xf32>
    %c0_94 = arith.constant 0 : index
    %c0_95 = arith.constant 0 : index
    %219 = vector.load %arg6[%c0_94, %c0_95] : memref<1x512xf32, #tpu.memory_space<vmem>>, vector<1x512xf32>
    %220 = vector.broadcast %219 : vector<1x512xf32> to vector<8x512xf32>
    %221 = arith.addf %218, %220 : vector<8x512xf32>
    %222 = arith.truncf %170 : vector<8x128xf32> to vector<8x128xbf16>
    %c0_96 = arith.constant 0 : index
    %c0_97 = arith.constant 0 : index
    %223 = vector.load %arg5[%c0_96, %c0_97] : memref<128x512xbf16, #tpu.memory_space<vmem>>, vector<128x512xbf16>
    %cst_98 = arith.constant dense<0.000000e+00> : vector<8x512xf32>
    %224 = tpu.matmul %222, %223, %cst_98 {dimension_numbers = #tpu.dot_dimension_numbers<[1], [0], [0], [1], [0, 0, 1, 1], [], []>} : vector<8x128xbf16>, vector<128x512xbf16>, vector<8x512xf32> -> vector<8x512xf32>
    %225 = arith.addf %221, %224 : vector<8x512xf32>
    %226 = vector.extract_strided_slice %225 {offsets = [0, 0], sizes = [8, 128], strides = [1, 1]} : vector<8x512xf32> to vector<8x128xf32>
    %cst_99 = arith.constant 5.000000e-01 : f32
    %227 = vector.broadcast %cst_99 : f32 to vector<8x128xf32>
    %228 = arith.mulf %227, %226 : vector<8x128xf32>
    %229 = math.tanh %228 : vector<8x128xf32>
    %cst_100 = arith.constant 5.000000e-01 : f32
    %230 = vector.broadcast %cst_100 : f32 to vector<8x128xf32>
    %231 = arith.mulf %230, %229 : vector<8x128xf32>
    %cst_101 = arith.constant 5.000000e-01 : f32
    %232 = vector.broadcast %cst_101 : f32 to vector<8x128xf32>
    %233 = arith.addf %231, %232 : vector<8x128xf32>
    %234 = vector.extract_strided_slice %225 {offsets = [0, 128], sizes = [8, 128], strides = [1, 1]} : vector<8x512xf32> to vector<8x128xf32>
    %cst_102 = arith.constant 5.000000e-01 : f32
    %235 = vector.broadcast %cst_102 : f32 to vector<8x128xf32>
    %236 = arith.mulf %235, %234 : vector<8x128xf32>
    %237 = math.tanh %236 : vector<8x128xf32>
    %cst_103 = arith.constant 5.000000e-01 : f32
    %238 = vector.broadcast %cst_103 : f32 to vector<8x128xf32>
    %239 = arith.mulf %238, %237 : vector<8x128xf32>
    %cst_104 = arith.constant 5.000000e-01 : f32
    %240 = vector.broadcast %cst_104 : f32 to vector<8x128xf32>
    %241 = arith.addf %239, %240 : vector<8x128xf32>
    %242 = vector.extract_strided_slice %225 {offsets = [0, 256], sizes = [8, 128], strides = [1, 1]} : vector<8x512xf32> to vector<8x128xf32>
    %243 = math.tanh %242 : vector<8x128xf32>
    %244 = vector.extract_strided_slice %225 {offsets = [0, 384], sizes = [8, 128], strides = [1, 1]} : vector<8x512xf32> to vector<8x128xf32>
    %cst_105 = arith.constant 5.000000e-01 : f32
    %245 = vector.broadcast %cst_105 : f32 to vector<8x128xf32>
    %246 = arith.mulf %245, %244 : vector<8x128xf32>
    %247 = math.tanh %246 : vector<8x128xf32>
    %cst_106 = arith.constant 5.000000e-01 : f32
    %248 = vector.broadcast %cst_106 : f32 to vector<8x128xf32>
    %249 = arith.mulf %248, %247 : vector<8x128xf32>
    %cst_107 = arith.constant 5.000000e-01 : f32
    %250 = vector.broadcast %cst_107 : f32 to vector<8x128xf32>
    %251 = arith.addf %249, %250 : vector<8x128xf32>
    %252 = arith.mulf %241, %168 : vector<8x128xf32>
    %253 = arith.mulf %233, %243 : vector<8x128xf32>
    %254 = arith.addf %252, %253 : vector<8x128xf32>
    %255 = math.tanh %254 : vector<8x128xf32>
    %256 = arith.mulf %251, %255 : vector<8x128xf32>
    %257 = arith.truncf %256 : vector<8x128xf32> to vector<8x128xbf16>
    %cst_108 = arith.constant dense<0.000000e+00> : vector<8x128xf32>
    %258 = tpu.matmul %257, %216, %cst_108 {dimension_numbers = #tpu.dot_dimension_numbers<[1], [0], [0], [1], [0, 0, 1, 1], [], []>} : vector<8x128xbf16>, vector<128x128xbf16>, vector<8x128xf32> -> vector<8x128xf32>
    %259 = arith.addf %173, %258 : vector<8x128xf32>
    %c1_i32_109 = arith.constant 1 : i32
    %260 = arith.addi %c2_i32, %c1_i32_109 : i32
    %c8_i32_110 = arith.constant 8 : i32
    %261 = arith.muli %260, %c8_i32_110 : i32
    %262 = tpu.assume_multiple %261, 8 : i32
    %263 = arith.index_cast %262 : i32 to index
    %c0_111 = arith.constant 0 : index
    %264 = vector.load %arg10[%263, %c0_111] : memref<64x512xf32, #tpu.memory_space<vmem>>, vector<8x512xf32>
    %c0_112 = arith.constant 0 : index
    %c0_113 = arith.constant 0 : index
    %265 = vector.load %arg2[%c0_112, %c0_113] : memref<128x512xbf16, #tpu.memory_space<vmem>>, vector<128x512xbf16>
    %cst_114 = arith.constant dense<0.000000e+00> : vector<8x512xf32>
    %266 = tpu.matmul %213, %265, %cst_114 {dimension_numbers = #tpu.dot_dimension_numbers<[1], [0], [0], [1], [0, 0, 1, 1], [], []>} : vector<8x128xbf16>, vector<128x512xbf16>, vector<8x512xf32> -> vector<8x512xf32>
    %267 = arith.addf %264, %266 : vector<8x512xf32>
    %268 = vector.extract_strided_slice %267 {offsets = [0, 0], sizes = [8, 128], strides = [1, 1]} : vector<8x512xf32> to vector<8x128xf32>
    %cst_115 = arith.constant 5.000000e-01 : f32
    %269 = vector.broadcast %cst_115 : f32 to vector<8x128xf32>
    %270 = arith.mulf %269, %268 : vector<8x128xf32>
    %271 = math.tanh %270 : vector<8x128xf32>
    %cst_116 = arith.constant 5.000000e-01 : f32
    %272 = vector.broadcast %cst_116 : f32 to vector<8x128xf32>
    %273 = arith.mulf %272, %271 : vector<8x128xf32>
    %cst_117 = arith.constant 5.000000e-01 : f32
    %274 = vector.broadcast %cst_117 : f32 to vector<8x128xf32>
    %275 = arith.addf %273, %274 : vector<8x128xf32>
    %276 = vector.extract_strided_slice %267 {offsets = [0, 128], sizes = [8, 128], strides = [1, 1]} : vector<8x512xf32> to vector<8x128xf32>
    %cst_118 = arith.constant 5.000000e-01 : f32
    %277 = vector.broadcast %cst_118 : f32 to vector<8x128xf32>
    %278 = arith.mulf %277, %276 : vector<8x128xf32>
    %279 = math.tanh %278 : vector<8x128xf32>
    %cst_119 = arith.constant 5.000000e-01 : f32
    %280 = vector.broadcast %cst_119 : f32 to vector<8x128xf32>
    %281 = arith.mulf %280, %279 : vector<8x128xf32>
    %cst_120 = arith.constant 5.000000e-01 : f32
    %282 = vector.broadcast %cst_120 : f32 to vector<8x128xf32>
    %283 = arith.addf %281, %282 : vector<8x128xf32>
    %284 = vector.extract_strided_slice %267 {offsets = [0, 256], sizes = [8, 128], strides = [1, 1]} : vector<8x512xf32> to vector<8x128xf32>
    %285 = math.tanh %284 : vector<8x128xf32>
    %286 = vector.extract_strided_slice %267 {offsets = [0, 384], sizes = [8, 128], strides = [1, 1]} : vector<8x512xf32> to vector<8x128xf32>
    %cst_121 = arith.constant 5.000000e-01 : f32
    %287 = vector.broadcast %cst_121 : f32 to vector<8x128xf32>
    %288 = arith.mulf %287, %286 : vector<8x128xf32>
    %289 = math.tanh %288 : vector<8x128xf32>
    %cst_122 = arith.constant 5.000000e-01 : f32
    %290 = vector.broadcast %cst_122 : f32 to vector<8x128xf32>
    %291 = arith.mulf %290, %289 : vector<8x128xf32>
    %cst_123 = arith.constant 5.000000e-01 : f32
    %292 = vector.broadcast %cst_123 : f32 to vector<8x128xf32>
    %293 = arith.addf %291, %292 : vector<8x128xf32>
    %294 = arith.mulf %283, %210 : vector<8x128xf32>
    %295 = arith.mulf %275, %285 : vector<8x128xf32>
    %296 = arith.addf %294, %295 : vector<8x128xf32>
    %297 = math.tanh %296 : vector<8x128xf32>
    %298 = arith.mulf %293, %297 : vector<8x128xf32>
    %c3_i32 = arith.constant 3 : i32
    %299 = arith.truncf %298 : vector<8x128xf32> to vector<8x128xbf16>
    %300 = arith.index_cast %c3_i32 : i32 to index
    %c0_124 = arith.constant 0 : index
    %c0_125 = arith.constant 0 : index
    %301 = vector.load %arg7[%300, %c0_124, %c0_125] : memref<8x128x128xbf16, #tpu.memory_space<vmem>>, vector<1x128x128xbf16>
    %302 = vector.shape_cast %301 : vector<1x128x128xbf16> to vector<128x128xbf16>
    %c0_126 = arith.constant 0 : index
    %c0_127 = arith.constant 0 : index
    %303 = vector.load %arg4[%c0_126, %c0_127] : memref<128x512xbf16, #tpu.memory_space<vmem>>, vector<128x512xbf16>
    %cst_128 = arith.constant dense<0.000000e+00> : vector<8x512xf32>
    %304 = tpu.matmul %299, %303, %cst_128 {dimension_numbers = #tpu.dot_dimension_numbers<[1], [0], [0], [1], [0, 0, 1, 1], [], []>} : vector<8x128xbf16>, vector<128x512xbf16>, vector<8x512xf32> -> vector<8x512xf32>
    %c0_129 = arith.constant 0 : index
    %c0_130 = arith.constant 0 : index
    %305 = vector.load %arg6[%c0_129, %c0_130] : memref<1x512xf32, #tpu.memory_space<vmem>>, vector<1x512xf32>
    %306 = vector.broadcast %305 : vector<1x512xf32> to vector<8x512xf32>
    %307 = arith.addf %304, %306 : vector<8x512xf32>
    %308 = arith.truncf %256 : vector<8x128xf32> to vector<8x128xbf16>
    %c0_131 = arith.constant 0 : index
    %c0_132 = arith.constant 0 : index
    %309 = vector.load %arg5[%c0_131, %c0_132] : memref<128x512xbf16, #tpu.memory_space<vmem>>, vector<128x512xbf16>
    %cst_133 = arith.constant dense<0.000000e+00> : vector<8x512xf32>
    %310 = tpu.matmul %308, %309, %cst_133 {dimension_numbers = #tpu.dot_dimension_numbers<[1], [0], [0], [1], [0, 0, 1, 1], [], []>} : vector<8x128xbf16>, vector<128x512xbf16>, vector<8x512xf32> -> vector<8x512xf32>
    %311 = arith.addf %307, %310 : vector<8x512xf32>
    %312 = vector.extract_strided_slice %311 {offsets = [0, 0], sizes = [8, 128], strides = [1, 1]} : vector<8x512xf32> to vector<8x128xf32>
    %cst_134 = arith.constant 5.000000e-01 : f32
    %313 = vector.broadcast %cst_134 : f32 to vector<8x128xf32>
    %314 = arith.mulf %313, %312 : vector<8x128xf32>
    %315 = math.tanh %314 : vector<8x128xf32>
    %cst_135 = arith.constant 5.000000e-01 : f32
    %316 = vector.broadcast %cst_135 : f32 to vector<8x128xf32>
    %317 = arith.mulf %316, %315 : vector<8x128xf32>
    %cst_136 = arith.constant 5.000000e-01 : f32
    %318 = vector.broadcast %cst_136 : f32 to vector<8x128xf32>
    %319 = arith.addf %317, %318 : vector<8x128xf32>
    %320 = vector.extract_strided_slice %311 {offsets = [0, 128], sizes = [8, 128], strides = [1, 1]} : vector<8x512xf32> to vector<8x128xf32>
    %cst_137 = arith.constant 5.000000e-01 : f32
    %321 = vector.broadcast %cst_137 : f32 to vector<8x128xf32>
    %322 = arith.mulf %321, %320 : vector<8x128xf32>
    %323 = math.tanh %322 : vector<8x128xf32>
    %cst_138 = arith.constant 5.000000e-01 : f32
    %324 = vector.broadcast %cst_138 : f32 to vector<8x128xf32>
    %325 = arith.mulf %324, %323 : vector<8x128xf32>
    %cst_139 = arith.constant 5.000000e-01 : f32
    %326 = vector.broadcast %cst_139 : f32 to vector<8x128xf32>
    %327 = arith.addf %325, %326 : vector<8x128xf32>
    %328 = vector.extract_strided_slice %311 {offsets = [0, 256], sizes = [8, 128], strides = [1, 1]} : vector<8x512xf32> to vector<8x128xf32>
    %329 = math.tanh %328 : vector<8x128xf32>
    %330 = vector.extract_strided_slice %311 {offsets = [0, 384], sizes = [8, 128], strides = [1, 1]} : vector<8x512xf32> to vector<8x128xf32>
    %cst_140 = arith.constant 5.000000e-01 : f32
    %331 = vector.broadcast %cst_140 : f32 to vector<8x128xf32>
    %332 = arith.mulf %331, %330 : vector<8x128xf32>
    %333 = math.tanh %332 : vector<8x128xf32>
    %cst_141 = arith.constant 5.000000e-01 : f32
    %334 = vector.broadcast %cst_141 : f32 to vector<8x128xf32>
    %335 = arith.mulf %334, %333 : vector<8x128xf32>
    %cst_142 = arith.constant 5.000000e-01 : f32
    %336 = vector.broadcast %cst_142 : f32 to vector<8x128xf32>
    %337 = arith.addf %335, %336 : vector<8x128xf32>
    %338 = arith.mulf %327, %254 : vector<8x128xf32>
    %339 = arith.mulf %319, %329 : vector<8x128xf32>
    %340 = arith.addf %338, %339 : vector<8x128xf32>
    %341 = math.tanh %340 : vector<8x128xf32>
    %342 = arith.mulf %337, %341 : vector<8x128xf32>
    %343 = arith.truncf %342 : vector<8x128xf32> to vector<8x128xbf16>
    %cst_143 = arith.constant dense<0.000000e+00> : vector<8x128xf32>
    %344 = tpu.matmul %343, %302, %cst_143 {dimension_numbers = #tpu.dot_dimension_numbers<[1], [0], [0], [1], [0, 0, 1, 1], [], []>} : vector<8x128xbf16>, vector<128x128xbf16>, vector<8x128xf32> -> vector<8x128xf32>
    %345 = arith.addf %259, %344 : vector<8x128xf32>
    %c1_i32_144 = arith.constant 1 : i32
    %346 = arith.addi %c3_i32, %c1_i32_144 : i32
    %c8_i32_145 = arith.constant 8 : i32
    %347 = arith.muli %346, %c8_i32_145 : i32
    %348 = tpu.assume_multiple %347, 8 : i32
    %349 = arith.index_cast %348 : i32 to index
    %c0_146 = arith.constant 0 : index
    %350 = vector.load %arg10[%349, %c0_146] : memref<64x512xf32, #tpu.memory_space<vmem>>, vector<8x512xf32>
    %c0_147 = arith.constant 0 : index
    %c0_148 = arith.constant 0 : index
    %351 = vector.load %arg2[%c0_147, %c0_148] : memref<128x512xbf16, #tpu.memory_space<vmem>>, vector<128x512xbf16>
    %cst_149 = arith.constant dense<0.000000e+00> : vector<8x512xf32>
    %352 = tpu.matmul %299, %351, %cst_149 {dimension_numbers = #tpu.dot_dimension_numbers<[1], [0], [0], [1], [0, 0, 1, 1], [], []>} : vector<8x128xbf16>, vector<128x512xbf16>, vector<8x512xf32> -> vector<8x512xf32>
    %353 = arith.addf %350, %352 : vector<8x512xf32>
    %354 = vector.extract_strided_slice %353 {offsets = [0, 0], sizes = [8, 128], strides = [1, 1]} : vector<8x512xf32> to vector<8x128xf32>
    %cst_150 = arith.constant 5.000000e-01 : f32
    %355 = vector.broadcast %cst_150 : f32 to vector<8x128xf32>
    %356 = arith.mulf %355, %354 : vector<8x128xf32>
    %357 = math.tanh %356 : vector<8x128xf32>
    %cst_151 = arith.constant 5.000000e-01 : f32
    %358 = vector.broadcast %cst_151 : f32 to vector<8x128xf32>
    %359 = arith.mulf %358, %357 : vector<8x128xf32>
    %cst_152 = arith.constant 5.000000e-01 : f32
    %360 = vector.broadcast %cst_152 : f32 to vector<8x128xf32>
    %361 = arith.addf %359, %360 : vector<8x128xf32>
    %362 = vector.extract_strided_slice %353 {offsets = [0, 128], sizes = [8, 128], strides = [1, 1]} : vector<8x512xf32> to vector<8x128xf32>
    %cst_153 = arith.constant 5.000000e-01 : f32
    %363 = vector.broadcast %cst_153 : f32 to vector<8x128xf32>
    %364 = arith.mulf %363, %362 : vector<8x128xf32>
    %365 = math.tanh %364 : vector<8x128xf32>
    %cst_154 = arith.constant 5.000000e-01 : f32
    %366 = vector.broadcast %cst_154 : f32 to vector<8x128xf32>
    %367 = arith.mulf %366, %365 : vector<8x128xf32>
    %cst_155 = arith.constant 5.000000e-01 : f32
    %368 = vector.broadcast %cst_155 : f32 to vector<8x128xf32>
    %369 = arith.addf %367, %368 : vector<8x128xf32>
    %370 = vector.extract_strided_slice %353 {offsets = [0, 256], sizes = [8, 128], strides = [1, 1]} : vector<8x512xf32> to vector<8x128xf32>
    %371 = math.tanh %370 : vector<8x128xf32>
    %372 = vector.extract_strided_slice %353 {offsets = [0, 384], sizes = [8, 128], strides = [1, 1]} : vector<8x512xf32> to vector<8x128xf32>
    %cst_156 = arith.constant 5.000000e-01 : f32
    %373 = vector.broadcast %cst_156 : f32 to vector<8x128xf32>
    %374 = arith.mulf %373, %372 : vector<8x128xf32>
    %375 = math.tanh %374 : vector<8x128xf32>
    %cst_157 = arith.constant 5.000000e-01 : f32
    %376 = vector.broadcast %cst_157 : f32 to vector<8x128xf32>
    %377 = arith.mulf %376, %375 : vector<8x128xf32>
    %cst_158 = arith.constant 5.000000e-01 : f32
    %378 = vector.broadcast %cst_158 : f32 to vector<8x128xf32>
    %379 = arith.addf %377, %378 : vector<8x128xf32>
    %380 = arith.mulf %369, %296 : vector<8x128xf32>
    %381 = arith.mulf %361, %371 : vector<8x128xf32>
    %382 = arith.addf %380, %381 : vector<8x128xf32>
    %383 = math.tanh %382 : vector<8x128xf32>
    %384 = arith.mulf %379, %383 : vector<8x128xf32>
    %c4_i32 = arith.constant 4 : i32
    %385 = arith.truncf %384 : vector<8x128xf32> to vector<8x128xbf16>
    %386 = arith.index_cast %c4_i32 : i32 to index
    %c0_159 = arith.constant 0 : index
    %c0_160 = arith.constant 0 : index
    %387 = vector.load %arg7[%386, %c0_159, %c0_160] : memref<8x128x128xbf16, #tpu.memory_space<vmem>>, vector<1x128x128xbf16>
    %388 = vector.shape_cast %387 : vector<1x128x128xbf16> to vector<128x128xbf16>
    %c0_161 = arith.constant 0 : index
    %c0_162 = arith.constant 0 : index
    %389 = vector.load %arg4[%c0_161, %c0_162] : memref<128x512xbf16, #tpu.memory_space<vmem>>, vector<128x512xbf16>
    %cst_163 = arith.constant dense<0.000000e+00> : vector<8x512xf32>
    %390 = tpu.matmul %385, %389, %cst_163 {dimension_numbers = #tpu.dot_dimension_numbers<[1], [0], [0], [1], [0, 0, 1, 1], [], []>} : vector<8x128xbf16>, vector<128x512xbf16>, vector<8x512xf32> -> vector<8x512xf32>
    %c0_164 = arith.constant 0 : index
    %c0_165 = arith.constant 0 : index
    %391 = vector.load %arg6[%c0_164, %c0_165] : memref<1x512xf32, #tpu.memory_space<vmem>>, vector<1x512xf32>
    %392 = vector.broadcast %391 : vector<1x512xf32> to vector<8x512xf32>
    %393 = arith.addf %390, %392 : vector<8x512xf32>
    %394 = arith.truncf %342 : vector<8x128xf32> to vector<8x128xbf16>
    %c0_166 = arith.constant 0 : index
    %c0_167 = arith.constant 0 : index
    %395 = vector.load %arg5[%c0_166, %c0_167] : memref<128x512xbf16, #tpu.memory_space<vmem>>, vector<128x512xbf16>
    %cst_168 = arith.constant dense<0.000000e+00> : vector<8x512xf32>
    %396 = tpu.matmul %394, %395, %cst_168 {dimension_numbers = #tpu.dot_dimension_numbers<[1], [0], [0], [1], [0, 0, 1, 1], [], []>} : vector<8x128xbf16>, vector<128x512xbf16>, vector<8x512xf32> -> vector<8x512xf32>
    %397 = arith.addf %393, %396 : vector<8x512xf32>
    %398 = vector.extract_strided_slice %397 {offsets = [0, 0], sizes = [8, 128], strides = [1, 1]} : vector<8x512xf32> to vector<8x128xf32>
    %cst_169 = arith.constant 5.000000e-01 : f32
    %399 = vector.broadcast %cst_169 : f32 to vector<8x128xf32>
    %400 = arith.mulf %399, %398 : vector<8x128xf32>
    %401 = math.tanh %400 : vector<8x128xf32>
    %cst_170 = arith.constant 5.000000e-01 : f32
    %402 = vector.broadcast %cst_170 : f32 to vector<8x128xf32>
    %403 = arith.mulf %402, %401 : vector<8x128xf32>
    %cst_171 = arith.constant 5.000000e-01 : f32
    %404 = vector.broadcast %cst_171 : f32 to vector<8x128xf32>
    %405 = arith.addf %403, %404 : vector<8x128xf32>
    %406 = vector.extract_strided_slice %397 {offsets = [0, 128], sizes = [8, 128], strides = [1, 1]} : vector<8x512xf32> to vector<8x128xf32>
    %cst_172 = arith.constant 5.000000e-01 : f32
    %407 = vector.broadcast %cst_172 : f32 to vector<8x128xf32>
    %408 = arith.mulf %407, %406 : vector<8x128xf32>
    %409 = math.tanh %408 : vector<8x128xf32>
    %cst_173 = arith.constant 5.000000e-01 : f32
    %410 = vector.broadcast %cst_173 : f32 to vector<8x128xf32>
    %411 = arith.mulf %410, %409 : vector<8x128xf32>
    %cst_174 = arith.constant 5.000000e-01 : f32
    %412 = vector.broadcast %cst_174 : f32 to vector<8x128xf32>
    %413 = arith.addf %411, %412 : vector<8x128xf32>
    %414 = vector.extract_strided_slice %397 {offsets = [0, 256], sizes = [8, 128], strides = [1, 1]} : vector<8x512xf32> to vector<8x128xf32>
    %415 = math.tanh %414 : vector<8x128xf32>
    %416 = vector.extract_strided_slice %397 {offsets = [0, 384], sizes = [8, 128], strides = [1, 1]} : vector<8x512xf32> to vector<8x128xf32>
    %cst_175 = arith.constant 5.000000e-01 : f32
    %417 = vector.broadcast %cst_175 : f32 to vector<8x128xf32>
    %418 = arith.mulf %417, %416 : vector<8x128xf32>
    %419 = math.tanh %418 : vector<8x128xf32>
    %cst_176 = arith.constant 5.000000e-01 : f32
    %420 = vector.broadcast %cst_176 : f32 to vector<8x128xf32>
    %421 = arith.mulf %420, %419 : vector<8x128xf32>
    %cst_177 = arith.constant 5.000000e-01 : f32
    %422 = vector.broadcast %cst_177 : f32 to vector<8x128xf32>
    %423 = arith.addf %421, %422 : vector<8x128xf32>
    %424 = arith.mulf %413, %340 : vector<8x128xf32>
    %425 = arith.mulf %405, %415 : vector<8x128xf32>
    %426 = arith.addf %424, %425 : vector<8x128xf32>
    %427 = math.tanh %426 : vector<8x128xf32>
    %428 = arith.mulf %423, %427 : vector<8x128xf32>
    %429 = arith.truncf %428 : vector<8x128xf32> to vector<8x128xbf16>
    %cst_178 = arith.constant dense<0.000000e+00> : vector<8x128xf32>
    %430 = tpu.matmul %429, %388, %cst_178 {dimension_numbers = #tpu.dot_dimension_numbers<[1], [0], [0], [1], [0, 0, 1, 1], [], []>} : vector<8x128xbf16>, vector<128x128xbf16>, vector<8x128xf32> -> vector<8x128xf32>
    %431 = arith.addf %345, %430 : vector<8x128xf32>
    %c1_i32_179 = arith.constant 1 : i32
    %432 = arith.addi %c4_i32, %c1_i32_179 : i32
    %c8_i32_180 = arith.constant 8 : i32
    %433 = arith.muli %432, %c8_i32_180 : i32
    %434 = tpu.assume_multiple %433, 8 : i32
    %435 = arith.index_cast %434 : i32 to index
    %c0_181 = arith.constant 0 : index
    %436 = vector.load %arg10[%435, %c0_181] : memref<64x512xf32, #tpu.memory_space<vmem>>, vector<8x512xf32>
    %c0_182 = arith.constant 0 : index
    %c0_183 = arith.constant 0 : index
    %437 = vector.load %arg2[%c0_182, %c0_183] : memref<128x512xbf16, #tpu.memory_space<vmem>>, vector<128x512xbf16>
    %cst_184 = arith.constant dense<0.000000e+00> : vector<8x512xf32>
    %438 = tpu.matmul %385, %437, %cst_184 {dimension_numbers = #tpu.dot_dimension_numbers<[1], [0], [0], [1], [0, 0, 1, 1], [], []>} : vector<8x128xbf16>, vector<128x512xbf16>, vector<8x512xf32> -> vector<8x512xf32>
    %439 = arith.addf %436, %438 : vector<8x512xf32>
    %440 = vector.extract_strided_slice %439 {offsets = [0, 0], sizes = [8, 128], strides = [1, 1]} : vector<8x512xf32> to vector<8x128xf32>
    %cst_185 = arith.constant 5.000000e-01 : f32
    %441 = vector.broadcast %cst_185 : f32 to vector<8x128xf32>
    %442 = arith.mulf %441, %440 : vector<8x128xf32>
    %443 = math.tanh %442 : vector<8x128xf32>
    %cst_186 = arith.constant 5.000000e-01 : f32
    %444 = vector.broadcast %cst_186 : f32 to vector<8x128xf32>
    %445 = arith.mulf %444, %443 : vector<8x128xf32>
    %cst_187 = arith.constant 5.000000e-01 : f32
    %446 = vector.broadcast %cst_187 : f32 to vector<8x128xf32>
    %447 = arith.addf %445, %446 : vector<8x128xf32>
    %448 = vector.extract_strided_slice %439 {offsets = [0, 128], sizes = [8, 128], strides = [1, 1]} : vector<8x512xf32> to vector<8x128xf32>
    %cst_188 = arith.constant 5.000000e-01 : f32
    %449 = vector.broadcast %cst_188 : f32 to vector<8x128xf32>
    %450 = arith.mulf %449, %448 : vector<8x128xf32>
    %451 = math.tanh %450 : vector<8x128xf32>
    %cst_189 = arith.constant 5.000000e-01 : f32
    %452 = vector.broadcast %cst_189 : f32 to vector<8x128xf32>
    %453 = arith.mulf %452, %451 : vector<8x128xf32>
    %cst_190 = arith.constant 5.000000e-01 : f32
    %454 = vector.broadcast %cst_190 : f32 to vector<8x128xf32>
    %455 = arith.addf %453, %454 : vector<8x128xf32>
    %456 = vector.extract_strided_slice %439 {offsets = [0, 256], sizes = [8, 128], strides = [1, 1]} : vector<8x512xf32> to vector<8x128xf32>
    %457 = math.tanh %456 : vector<8x128xf32>
    %458 = vector.extract_strided_slice %439 {offsets = [0, 384], sizes = [8, 128], strides = [1, 1]} : vector<8x512xf32> to vector<8x128xf32>
    %cst_191 = arith.constant 5.000000e-01 : f32
    %459 = vector.broadcast %cst_191 : f32 to vector<8x128xf32>
    %460 = arith.mulf %459, %458 : vector<8x128xf32>
    %461 = math.tanh %460 : vector<8x128xf32>
    %cst_192 = arith.constant 5.000000e-01 : f32
    %462 = vector.broadcast %cst_192 : f32 to vector<8x128xf32>
    %463 = arith.mulf %462, %461 : vector<8x128xf32>
    %cst_193 = arith.constant 5.000000e-01 : f32
    %464 = vector.broadcast %cst_193 : f32 to vector<8x128xf32>
    %465 = arith.addf %463, %464 : vector<8x128xf32>
    %466 = arith.mulf %455, %382 : vector<8x128xf32>
    %467 = arith.mulf %447, %457 : vector<8x128xf32>
    %468 = arith.addf %466, %467 : vector<8x128xf32>
    %469 = math.tanh %468 : vector<8x128xf32>
    %470 = arith.mulf %465, %469 : vector<8x128xf32>
    %c5_i32 = arith.constant 5 : i32
    %471 = arith.truncf %470 : vector<8x128xf32> to vector<8x128xbf16>
    %472 = arith.index_cast %c5_i32 : i32 to index
    %c0_194 = arith.constant 0 : index
    %c0_195 = arith.constant 0 : index
    %473 = vector.load %arg7[%472, %c0_194, %c0_195] : memref<8x128x128xbf16, #tpu.memory_space<vmem>>, vector<1x128x128xbf16>
    %474 = vector.shape_cast %473 : vector<1x128x128xbf16> to vector<128x128xbf16>
    %c0_196 = arith.constant 0 : index
    %c0_197 = arith.constant 0 : index
    %475 = vector.load %arg4[%c0_196, %c0_197] : memref<128x512xbf16, #tpu.memory_space<vmem>>, vector<128x512xbf16>
    %cst_198 = arith.constant dense<0.000000e+00> : vector<8x512xf32>
    %476 = tpu.matmul %471, %475, %cst_198 {dimension_numbers = #tpu.dot_dimension_numbers<[1], [0], [0], [1], [0, 0, 1, 1], [], []>} : vector<8x128xbf16>, vector<128x512xbf16>, vector<8x512xf32> -> vector<8x512xf32>
    %c0_199 = arith.constant 0 : index
    %c0_200 = arith.constant 0 : index
    %477 = vector.load %arg6[%c0_199, %c0_200] : memref<1x512xf32, #tpu.memory_space<vmem>>, vector<1x512xf32>
    %478 = vector.broadcast %477 : vector<1x512xf32> to vector<8x512xf32>
    %479 = arith.addf %476, %478 : vector<8x512xf32>
    %480 = arith.truncf %428 : vector<8x128xf32> to vector<8x128xbf16>
    %c0_201 = arith.constant 0 : index
    %c0_202 = arith.constant 0 : index
    %481 = vector.load %arg5[%c0_201, %c0_202] : memref<128x512xbf16, #tpu.memory_space<vmem>>, vector<128x512xbf16>
    %cst_203 = arith.constant dense<0.000000e+00> : vector<8x512xf32>
    %482 = tpu.matmul %480, %481, %cst_203 {dimension_numbers = #tpu.dot_dimension_numbers<[1], [0], [0], [1], [0, 0, 1, 1], [], []>} : vector<8x128xbf16>, vector<128x512xbf16>, vector<8x512xf32> -> vector<8x512xf32>
    %483 = arith.addf %479, %482 : vector<8x512xf32>
    %484 = vector.extract_strided_slice %483 {offsets = [0, 0], sizes = [8, 128], strides = [1, 1]} : vector<8x512xf32> to vector<8x128xf32>
    %cst_204 = arith.constant 5.000000e-01 : f32
    %485 = vector.broadcast %cst_204 : f32 to vector<8x128xf32>
    %486 = arith.mulf %485, %484 : vector<8x128xf32>
    %487 = math.tanh %486 : vector<8x128xf32>
    %cst_205 = arith.constant 5.000000e-01 : f32
    %488 = vector.broadcast %cst_205 : f32 to vector<8x128xf32>
    %489 = arith.mulf %488, %487 : vector<8x128xf32>
    %cst_206 = arith.constant 5.000000e-01 : f32
    %490 = vector.broadcast %cst_206 : f32 to vector<8x128xf32>
    %491 = arith.addf %489, %490 : vector<8x128xf32>
    %492 = vector.extract_strided_slice %483 {offsets = [0, 128], sizes = [8, 128], strides = [1, 1]} : vector<8x512xf32> to vector<8x128xf32>
    %cst_207 = arith.constant 5.000000e-01 : f32
    %493 = vector.broadcast %cst_207 : f32 to vector<8x128xf32>
    %494 = arith.mulf %493, %492 : vector<8x128xf32>
    %495 = math.tanh %494 : vector<8x128xf32>
    %cst_208 = arith.constant 5.000000e-01 : f32
    %496 = vector.broadcast %cst_208 : f32 to vector<8x128xf32>
    %497 = arith.mulf %496, %495 : vector<8x128xf32>
    %cst_209 = arith.constant 5.000000e-01 : f32
    %498 = vector.broadcast %cst_209 : f32 to vector<8x128xf32>
    %499 = arith.addf %497, %498 : vector<8x128xf32>
    %500 = vector.extract_strided_slice %483 {offsets = [0, 256], sizes = [8, 128], strides = [1, 1]} : vector<8x512xf32> to vector<8x128xf32>
    %501 = math.tanh %500 : vector<8x128xf32>
    %502 = vector.extract_strided_slice %483 {offsets = [0, 384], sizes = [8, 128], strides = [1, 1]} : vector<8x512xf32> to vector<8x128xf32>
    %cst_210 = arith.constant 5.000000e-01 : f32
    %503 = vector.broadcast %cst_210 : f32 to vector<8x128xf32>
    %504 = arith.mulf %503, %502 : vector<8x128xf32>
    %505 = math.tanh %504 : vector<8x128xf32>
    %cst_211 = arith.constant 5.000000e-01 : f32
    %506 = vector.broadcast %cst_211 : f32 to vector<8x128xf32>
    %507 = arith.mulf %506, %505 : vector<8x128xf32>
    %cst_212 = arith.constant 5.000000e-01 : f32
    %508 = vector.broadcast %cst_212 : f32 to vector<8x128xf32>
    %509 = arith.addf %507, %508 : vector<8x128xf32>
    %510 = arith.mulf %499, %426 : vector<8x128xf32>
    %511 = arith.mulf %491, %501 : vector<8x128xf32>
    %512 = arith.addf %510, %511 : vector<8x128xf32>
    %513 = math.tanh %512 : vector<8x128xf32>
    %514 = arith.mulf %509, %513 : vector<8x128xf32>
    %515 = arith.truncf %514 : vector<8x128xf32> to vector<8x128xbf16>
    %cst_213 = arith.constant dense<0.000000e+00> : vector<8x128xf32>
    %516 = tpu.matmul %515, %474, %cst_213 {dimension_numbers = #tpu.dot_dimension_numbers<[1], [0], [0], [1], [0, 0, 1, 1], [], []>} : vector<8x128xbf16>, vector<128x128xbf16>, vector<8x128xf32> -> vector<8x128xf32>
    %517 = arith.addf %431, %516 : vector<8x128xf32>
    %c1_i32_214 = arith.constant 1 : i32
    %518 = arith.addi %c5_i32, %c1_i32_214 : i32
    %c8_i32_215 = arith.constant 8 : i32
    %519 = arith.muli %518, %c8_i32_215 : i32
    %520 = tpu.assume_multiple %519, 8 : i32
    %521 = arith.index_cast %520 : i32 to index
    %c0_216 = arith.constant 0 : index
    %522 = vector.load %arg10[%521, %c0_216] : memref<64x512xf32, #tpu.memory_space<vmem>>, vector<8x512xf32>
    %c0_217 = arith.constant 0 : index
    %c0_218 = arith.constant 0 : index
    %523 = vector.load %arg2[%c0_217, %c0_218] : memref<128x512xbf16, #tpu.memory_space<vmem>>, vector<128x512xbf16>
    %cst_219 = arith.constant dense<0.000000e+00> : vector<8x512xf32>
    %524 = tpu.matmul %471, %523, %cst_219 {dimension_numbers = #tpu.dot_dimension_numbers<[1], [0], [0], [1], [0, 0, 1, 1], [], []>} : vector<8x128xbf16>, vector<128x512xbf16>, vector<8x512xf32> -> vector<8x512xf32>
    %525 = arith.addf %522, %524 : vector<8x512xf32>
    %526 = vector.extract_strided_slice %525 {offsets = [0, 0], sizes = [8, 128], strides = [1, 1]} : vector<8x512xf32> to vector<8x128xf32>
    %cst_220 = arith.constant 5.000000e-01 : f32
    %527 = vector.broadcast %cst_220 : f32 to vector<8x128xf32>
    %528 = arith.mulf %527, %526 : vector<8x128xf32>
    %529 = math.tanh %528 : vector<8x128xf32>
    %cst_221 = arith.constant 5.000000e-01 : f32
    %530 = vector.broadcast %cst_221 : f32 to vector<8x128xf32>
    %531 = arith.mulf %530, %529 : vector<8x128xf32>
    %cst_222 = arith.constant 5.000000e-01 : f32
    %532 = vector.broadcast %cst_222 : f32 to vector<8x128xf32>
    %533 = arith.addf %531, %532 : vector<8x128xf32>
    %534 = vector.extract_strided_slice %525 {offsets = [0, 128], sizes = [8, 128], strides = [1, 1]} : vector<8x512xf32> to vector<8x128xf32>
    %cst_223 = arith.constant 5.000000e-01 : f32
    %535 = vector.broadcast %cst_223 : f32 to vector<8x128xf32>
    %536 = arith.mulf %535, %534 : vector<8x128xf32>
    %537 = math.tanh %536 : vector<8x128xf32>
    %cst_224 = arith.constant 5.000000e-01 : f32
    %538 = vector.broadcast %cst_224 : f32 to vector<8x128xf32>
    %539 = arith.mulf %538, %537 : vector<8x128xf32>
    %cst_225 = arith.constant 5.000000e-01 : f32
    %540 = vector.broadcast %cst_225 : f32 to vector<8x128xf32>
    %541 = arith.addf %539, %540 : vector<8x128xf32>
    %542 = vector.extract_strided_slice %525 {offsets = [0, 256], sizes = [8, 128], strides = [1, 1]} : vector<8x512xf32> to vector<8x128xf32>
    %543 = math.tanh %542 : vector<8x128xf32>
    %544 = vector.extract_strided_slice %525 {offsets = [0, 384], sizes = [8, 128], strides = [1, 1]} : vector<8x512xf32> to vector<8x128xf32>
    %cst_226 = arith.constant 5.000000e-01 : f32
    %545 = vector.broadcast %cst_226 : f32 to vector<8x128xf32>
    %546 = arith.mulf %545, %544 : vector<8x128xf32>
    %547 = math.tanh %546 : vector<8x128xf32>
    %cst_227 = arith.constant 5.000000e-01 : f32
    %548 = vector.broadcast %cst_227 : f32 to vector<8x128xf32>
    %549 = arith.mulf %548, %547 : vector<8x128xf32>
    %cst_228 = arith.constant 5.000000e-01 : f32
    %550 = vector.broadcast %cst_228 : f32 to vector<8x128xf32>
    %551 = arith.addf %549, %550 : vector<8x128xf32>
    %552 = arith.mulf %541, %468 : vector<8x128xf32>
    %553 = arith.mulf %533, %543 : vector<8x128xf32>
    %554 = arith.addf %552, %553 : vector<8x128xf32>
    %555 = math.tanh %554 : vector<8x128xf32>
    %556 = arith.mulf %551, %555 : vector<8x128xf32>
    %c6_i32 = arith.constant 6 : i32
    %557 = arith.truncf %556 : vector<8x128xf32> to vector<8x128xbf16>
    %558 = arith.index_cast %c6_i32 : i32 to index
    %c0_229 = arith.constant 0 : index
    %c0_230 = arith.constant 0 : index
    %559 = vector.load %arg7[%558, %c0_229, %c0_230] : memref<8x128x128xbf16, #tpu.memory_space<vmem>>, vector<1x128x128xbf16>
    %560 = vector.shape_cast %559 : vector<1x128x128xbf16> to vector<128x128xbf16>
    %c0_231 = arith.constant 0 : index
    %c0_232 = arith.constant 0 : index
    %561 = vector.load %arg4[%c0_231, %c0_232] : memref<128x512xbf16, #tpu.memory_space<vmem>>, vector<128x512xbf16>
    %cst_233 = arith.constant dense<0.000000e+00> : vector<8x512xf32>
    %562 = tpu.matmul %557, %561, %cst_233 {dimension_numbers = #tpu.dot_dimension_numbers<[1], [0], [0], [1], [0, 0, 1, 1], [], []>} : vector<8x128xbf16>, vector<128x512xbf16>, vector<8x512xf32> -> vector<8x512xf32>
    %c0_234 = arith.constant 0 : index
    %c0_235 = arith.constant 0 : index
    %563 = vector.load %arg6[%c0_234, %c0_235] : memref<1x512xf32, #tpu.memory_space<vmem>>, vector<1x512xf32>
    %564 = vector.broadcast %563 : vector<1x512xf32> to vector<8x512xf32>
    %565 = arith.addf %562, %564 : vector<8x512xf32>
    %566 = arith.truncf %514 : vector<8x128xf32> to vector<8x128xbf16>
    %c0_236 = arith.constant 0 : index
    %c0_237 = arith.constant 0 : index
    %567 = vector.load %arg5[%c0_236, %c0_237] : memref<128x512xbf16, #tpu.memory_space<vmem>>, vector<128x512xbf16>
    %cst_238 = arith.constant dense<0.000000e+00> : vector<8x512xf32>
    %568 = tpu.matmul %566, %567, %cst_238 {dimension_numbers = #tpu.dot_dimension_numbers<[1], [0], [0], [1], [0, 0, 1, 1], [], []>} : vector<8x128xbf16>, vector<128x512xbf16>, vector<8x512xf32> -> vector<8x512xf32>
    %569 = arith.addf %565, %568 : vector<8x512xf32>
    %570 = vector.extract_strided_slice %569 {offsets = [0, 0], sizes = [8, 128], strides = [1, 1]} : vector<8x512xf32> to vector<8x128xf32>
    %cst_239 = arith.constant 5.000000e-01 : f32
    %571 = vector.broadcast %cst_239 : f32 to vector<8x128xf32>
    %572 = arith.mulf %571, %570 : vector<8x128xf32>
    %573 = math.tanh %572 : vector<8x128xf32>
    %cst_240 = arith.constant 5.000000e-01 : f32
    %574 = vector.broadcast %cst_240 : f32 to vector<8x128xf32>
    %575 = arith.mulf %574, %573 : vector<8x128xf32>
    %cst_241 = arith.constant 5.000000e-01 : f32
    %576 = vector.broadcast %cst_241 : f32 to vector<8x128xf32>
    %577 = arith.addf %575, %576 : vector<8x128xf32>
    %578 = vector.extract_strided_slice %569 {offsets = [0, 128], sizes = [8, 128], strides = [1, 1]} : vector<8x512xf32> to vector<8x128xf32>
    %cst_242 = arith.constant 5.000000e-01 : f32
    %579 = vector.broadcast %cst_242 : f32 to vector<8x128xf32>
    %580 = arith.mulf %579, %578 : vector<8x128xf32>
    %581 = math.tanh %580 : vector<8x128xf32>
    %cst_243 = arith.constant 5.000000e-01 : f32
    %582 = vector.broadcast %cst_243 : f32 to vector<8x128xf32>
    %583 = arith.mulf %582, %581 : vector<8x128xf32>
    %cst_244 = arith.constant 5.000000e-01 : f32
    %584 = vector.broadcast %cst_244 : f32 to vector<8x128xf32>
    %585 = arith.addf %583, %584 : vector<8x128xf32>
    %586 = vector.extract_strided_slice %569 {offsets = [0, 256], sizes = [8, 128], strides = [1, 1]} : vector<8x512xf32> to vector<8x128xf32>
    %587 = math.tanh %586 : vector<8x128xf32>
    %588 = vector.extract_strided_slice %569 {offsets = [0, 384], sizes = [8, 128], strides = [1, 1]} : vector<8x512xf32> to vector<8x128xf32>
    %cst_245 = arith.constant 5.000000e-01 : f32
    %589 = vector.broadcast %cst_245 : f32 to vector<8x128xf32>
    %590 = arith.mulf %589, %588 : vector<8x128xf32>
    %591 = math.tanh %590 : vector<8x128xf32>
    %cst_246 = arith.constant 5.000000e-01 : f32
    %592 = vector.broadcast %cst_246 : f32 to vector<8x128xf32>
    %593 = arith.mulf %592, %591 : vector<8x128xf32>
    %cst_247 = arith.constant 5.000000e-01 : f32
    %594 = vector.broadcast %cst_247 : f32 to vector<8x128xf32>
    %595 = arith.addf %593, %594 : vector<8x128xf32>
    %596 = arith.mulf %585, %512 : vector<8x128xf32>
    %597 = arith.mulf %577, %587 : vector<8x128xf32>
    %598 = arith.addf %596, %597 : vector<8x128xf32>
    %599 = math.tanh %598 : vector<8x128xf32>
    %600 = arith.mulf %595, %599 : vector<8x128xf32>
    %601 = arith.truncf %600 : vector<8x128xf32> to vector<8x128xbf16>
    %cst_248 = arith.constant dense<0.000000e+00> : vector<8x128xf32>
    %602 = tpu.matmul %601, %560, %cst_248 {dimension_numbers = #tpu.dot_dimension_numbers<[1], [0], [0], [1], [0, 0, 1, 1], [], []>} : vector<8x128xbf16>, vector<128x128xbf16>, vector<8x128xf32> -> vector<8x128xf32>
    %603 = arith.addf %517, %602 : vector<8x128xf32>
    %c1_i32_249 = arith.constant 1 : i32
    %604 = arith.addi %c6_i32, %c1_i32_249 : i32
    %c8_i32_250 = arith.constant 8 : i32
    %605 = arith.muli %604, %c8_i32_250 : i32
    %606 = tpu.assume_multiple %605, 8 : i32
    %607 = arith.index_cast %606 : i32 to index
    %c0_251 = arith.constant 0 : index
    %608 = vector.load %arg10[%607, %c0_251] : memref<64x512xf32, #tpu.memory_space<vmem>>, vector<8x512xf32>
    %c0_252 = arith.constant 0 : index
    %c0_253 = arith.constant 0 : index
    %609 = vector.load %arg2[%c0_252, %c0_253] : memref<128x512xbf16, #tpu.memory_space<vmem>>, vector<128x512xbf16>
    %cst_254 = arith.constant dense<0.000000e+00> : vector<8x512xf32>
    %610 = tpu.matmul %557, %609, %cst_254 {dimension_numbers = #tpu.dot_dimension_numbers<[1], [0], [0], [1], [0, 0, 1, 1], [], []>} : vector<8x128xbf16>, vector<128x512xbf16>, vector<8x512xf32> -> vector<8x512xf32>
    %611 = arith.addf %608, %610 : vector<8x512xf32>
    %612 = vector.extract_strided_slice %611 {offsets = [0, 0], sizes = [8, 128], strides = [1, 1]} : vector<8x512xf32> to vector<8x128xf32>
    %cst_255 = arith.constant 5.000000e-01 : f32
    %613 = vector.broadcast %cst_255 : f32 to vector<8x128xf32>
    %614 = arith.mulf %613, %612 : vector<8x128xf32>
    %615 = math.tanh %614 : vector<8x128xf32>
    %cst_256 = arith.constant 5.000000e-01 : f32
    %616 = vector.broadcast %cst_256 : f32 to vector<8x128xf32>
    %617 = arith.mulf %616, %615 : vector<8x128xf32>
    %cst_257 = arith.constant 5.000000e-01 : f32
    %618 = vector.broadcast %cst_257 : f32 to vector<8x128xf32>
    %619 = arith.addf %617, %618 : vector<8x128xf32>
    %620 = vector.extract_strided_slice %611 {offsets = [0, 128], sizes = [8, 128], strides = [1, 1]} : vector<8x512xf32> to vector<8x128xf32>
    %cst_258 = arith.constant 5.000000e-01 : f32
    %621 = vector.broadcast %cst_258 : f32 to vector<8x128xf32>
    %622 = arith.mulf %621, %620 : vector<8x128xf32>
    %623 = math.tanh %622 : vector<8x128xf32>
    %cst_259 = arith.constant 5.000000e-01 : f32
    %624 = vector.broadcast %cst_259 : f32 to vector<8x128xf32>
    %625 = arith.mulf %624, %623 : vector<8x128xf32>
    %cst_260 = arith.constant 5.000000e-01 : f32
    %626 = vector.broadcast %cst_260 : f32 to vector<8x128xf32>
    %627 = arith.addf %625, %626 : vector<8x128xf32>
    %628 = vector.extract_strided_slice %611 {offsets = [0, 256], sizes = [8, 128], strides = [1, 1]} : vector<8x512xf32> to vector<8x128xf32>
    %629 = math.tanh %628 : vector<8x128xf32>
    %630 = vector.extract_strided_slice %611 {offsets = [0, 384], sizes = [8, 128], strides = [1, 1]} : vector<8x512xf32> to vector<8x128xf32>
    %cst_261 = arith.constant 5.000000e-01 : f32
    %631 = vector.broadcast %cst_261 : f32 to vector<8x128xf32>
    %632 = arith.mulf %631, %630 : vector<8x128xf32>
    %633 = math.tanh %632 : vector<8x128xf32>
    %cst_262 = arith.constant 5.000000e-01 : f32
    %634 = vector.broadcast %cst_262 : f32 to vector<8x128xf32>
    %635 = arith.mulf %634, %633 : vector<8x128xf32>
    %cst_263 = arith.constant 5.000000e-01 : f32
    %636 = vector.broadcast %cst_263 : f32 to vector<8x128xf32>
    %637 = arith.addf %635, %636 : vector<8x128xf32>
    %638 = arith.mulf %627, %554 : vector<8x128xf32>
    %639 = arith.mulf %619, %629 : vector<8x128xf32>
    %640 = arith.addf %638, %639 : vector<8x128xf32>
    %641 = math.tanh %640 : vector<8x128xf32>
    %642 = arith.mulf %637, %641 : vector<8x128xf32>
    %c7_i32 = arith.constant 7 : i32
    %643 = arith.truncf %642 : vector<8x128xf32> to vector<8x128xbf16>
    %c7 = arith.constant 7 : index
    %c0_264 = arith.constant 0 : index
    %c0_265 = arith.constant 0 : index
    %644 = vector.load %arg7[%c7, %c0_264, %c0_265] : memref<8x128x128xbf16, #tpu.memory_space<vmem>>, vector<1x128x128xbf16>
    %645 = vector.shape_cast %644 : vector<1x128x128xbf16> to vector<128x128xbf16>
    %c0_266 = arith.constant 0 : index
    %c0_267 = arith.constant 0 : index
    %646 = vector.load %arg4[%c0_266, %c0_267] : memref<128x512xbf16, #tpu.memory_space<vmem>>, vector<128x512xbf16>
    %cst_268 = arith.constant dense<0.000000e+00> : vector<8x512xf32>
    %647 = tpu.matmul %643, %646, %cst_268 {dimension_numbers = #tpu.dot_dimension_numbers<[1], [0], [0], [1], [0, 0, 1, 1], [], []>} : vector<8x128xbf16>, vector<128x512xbf16>, vector<8x512xf32> -> vector<8x512xf32>
    %c0_269 = arith.constant 0 : index
    %c0_270 = arith.constant 0 : index
    %648 = vector.load %arg6[%c0_269, %c0_270] : memref<1x512xf32, #tpu.memory_space<vmem>>, vector<1x512xf32>
    %649 = vector.broadcast %648 : vector<1x512xf32> to vector<8x512xf32>
    %650 = arith.addf %647, %649 : vector<8x512xf32>
    %651 = arith.truncf %600 : vector<8x128xf32> to vector<8x128xbf16>
    %c0_271 = arith.constant 0 : index
    %c0_272 = arith.constant 0 : index
    %652 = vector.load %arg5[%c0_271, %c0_272] : memref<128x512xbf16, #tpu.memory_space<vmem>>, vector<128x512xbf16>
    %cst_273 = arith.constant dense<0.000000e+00> : vector<8x512xf32>
    %653 = tpu.matmul %651, %652, %cst_273 {dimension_numbers = #tpu.dot_dimension_numbers<[1], [0], [0], [1], [0, 0, 1, 1], [], []>} : vector<8x128xbf16>, vector<128x512xbf16>, vector<8x512xf32> -> vector<8x512xf32>
    %654 = arith.addf %650, %653 : vector<8x512xf32>
    %655 = vector.extract_strided_slice %654 {offsets = [0, 0], sizes = [8, 128], strides = [1, 1]} : vector<8x512xf32> to vector<8x128xf32>
    %cst_274 = arith.constant 5.000000e-01 : f32
    %656 = vector.broadcast %cst_274 : f32 to vector<8x128xf32>
    %657 = arith.mulf %656, %655 : vector<8x128xf32>
    %658 = math.tanh %657 : vector<8x128xf32>
    %cst_275 = arith.constant 5.000000e-01 : f32
    %659 = vector.broadcast %cst_275 : f32 to vector<8x128xf32>
    %660 = arith.mulf %659, %658 : vector<8x128xf32>
    %cst_276 = arith.constant 5.000000e-01 : f32
    %661 = vector.broadcast %cst_276 : f32 to vector<8x128xf32>
    %662 = arith.addf %660, %661 : vector<8x128xf32>
    %663 = vector.extract_strided_slice %654 {offsets = [0, 128], sizes = [8, 128], strides = [1, 1]} : vector<8x512xf32> to vector<8x128xf32>
    %cst_277 = arith.constant 5.000000e-01 : f32
    %664 = vector.broadcast %cst_277 : f32 to vector<8x128xf32>
    %665 = arith.mulf %664, %663 : vector<8x128xf32>
    %666 = math.tanh %665 : vector<8x128xf32>
    %cst_278 = arith.constant 5.000000e-01 : f32
    %667 = vector.broadcast %cst_278 : f32 to vector<8x128xf32>
    %668 = arith.mulf %667, %666 : vector<8x128xf32>
    %cst_279 = arith.constant 5.000000e-01 : f32
    %669 = vector.broadcast %cst_279 : f32 to vector<8x128xf32>
    %670 = arith.addf %668, %669 : vector<8x128xf32>
    %671 = vector.extract_strided_slice %654 {offsets = [0, 256], sizes = [8, 128], strides = [1, 1]} : vector<8x512xf32> to vector<8x128xf32>
    %672 = math.tanh %671 : vector<8x128xf32>
    %673 = vector.extract_strided_slice %654 {offsets = [0, 384], sizes = [8, 128], strides = [1, 1]} : vector<8x512xf32> to vector<8x128xf32>
    %cst_280 = arith.constant 5.000000e-01 : f32
    %674 = vector.broadcast %cst_280 : f32 to vector<8x128xf32>
    %675 = arith.mulf %674, %673 : vector<8x128xf32>
    %676 = math.tanh %675 : vector<8x128xf32>
    %cst_281 = arith.constant 5.000000e-01 : f32
    %677 = vector.broadcast %cst_281 : f32 to vector<8x128xf32>
    %678 = arith.mulf %677, %676 : vector<8x128xf32>
    %cst_282 = arith.constant 5.000000e-01 : f32
    %679 = vector.broadcast %cst_282 : f32 to vector<8x128xf32>
    %680 = arith.addf %678, %679 : vector<8x128xf32>
    %681 = arith.mulf %670, %598 : vector<8x128xf32>
    %682 = arith.mulf %662, %672 : vector<8x128xf32>
    %683 = arith.addf %681, %682 : vector<8x128xf32>
    %684 = math.tanh %683 : vector<8x128xf32>
    %685 = arith.mulf %680, %684 : vector<8x128xf32>
    %686 = arith.truncf %685 : vector<8x128xf32> to vector<8x128xbf16>
    %cst_283 = arith.constant dense<0.000000e+00> : vector<8x128xf32>
    %687 = tpu.matmul %686, %645, %cst_283 {dimension_numbers = #tpu.dot_dimension_numbers<[1], [0], [0], [1], [0, 0, 1, 1], [], []>} : vector<8x128xbf16>, vector<128x128xbf16>, vector<8x128xf32> -> vector<8x128xf32>
    %688 = arith.addf %603, %687 : vector<8x128xf32>
    %c0_284 = arith.constant 0 : index
    %c0_285 = arith.constant 0 : index
    %689 = vector.load %arg8[%c0_284, %c0_285] : memref<1x128xf32, #tpu.memory_space<vmem>>, vector<1x128xf32>
    %690 = vector.broadcast %689 : vector<1x128xf32> to vector<8x128xf32>
    %691 = arith.addf %688, %690 : vector<8x128xf32>
    %c0_286 = arith.constant 0 : index
    %c0_287 = arith.constant 0 : index
    %692 = vector.load %arg9[%c0_286, %c0_287] : memref<8x128xf32, #tpu.memory_space<vmem>>, vector<8x128xf32>
    tpu.vector_store %arg9[%c0_286, %c0_287], %691 {strides = array<i32>} : memref<8x128xf32, #tpu.memory_space<vmem>>, vector<8x128xf32>,
    return
  }
}

</mosaic_0001>

<bundles_post_ra>
// kernel: _lambda_.1
= control target key start
LH: loop header
LB: loop body
LE: loop exit
PB: predicated region body
PF: predicated region fallthrough
CT: control target
= control target key end

     0   :  { %v8282_v1 = vmov 0   ;;  %vm107_vm0 = vcmask 130048   ;;  %v47_v43 = vlaneseq  ;;  %vm5273_vm1 = vmmov 0   ;;  %s8268_s1 = inlined_call_operand.vmem [shape: bf16[16,512], index: 1, kind: input, shape index: {}]   ;;  %s8269_s0 = inlined_call_operand.vmem [shape: bf16[64,16], index: 0, kind: input, shape index: {}]   ;;  %s8270_s4 = inlined_call_operand.vmem [shape: bf16[128,512], index: 4, kind: input, shape index: {}]   ;;  %s8271_s5 = inlined_call_operand.vmem [shape: bf16[128,512], index: 5, kind: input, shape index: {}]   ;;  %s8272_s2 = inlined_call_operand.vmem [shape: bf16[128,512], index: 2, kind: input, shape index: {}]   ;;  %s8273_s3 = inlined_call_operand.vmem [shape: f32[1,512], index: 3, kind: input, shape index: {}]   ;;  %s8274_s7 = inlined_call_operand.vmem [shape: bf16[8,128,128], index: 7, kind: input, shape index: {}]   ;;  %s8275_s6 = inlined_call_operand.vmem [shape: f32[1,512], index: 6, kind: input, shape index: {}]   ;;  %s8276_s8 = inlined_call_operand.vmem [shape: f32[1,128], index: 8, kind: input, shape index: {}]   ;;  %s8277_s9 = inlined_call_operand.vmem [shape: f32[8,128], index: 9, kind: output, shape index: {}]  }
   0x1   :  { %v4684_v0 = vld [vmem:[%s8268_s1 + $0x4] ss:$16 sps:$4 sm:$0xff]   ;;  %152 = vmatprep.mubr.bf16.mxu0 %v8282_v1  ;;  %225 = vmatprep.mubr.bf16.mxu1 %v8282_v1  ;;  %v4686_v2 = vld [vmem:[%s8268_s1] ss:$16 sps:$4 sm:$0xff]   ;;  %v4688_v4 = vld [vmem:[%s8268_s1 + $0xc] ss:$16 sps:$4 sm:$0xff]  }
   0x2   :  { %120 = vmatprep.subr.bf16.mxu0 %v4684_v0  ;;  %v4687_v3 = vld [vmem:[%s8269_s0] sm:$0xff]   ;;  %v4690_v5 = vld [vmem:[%s8268_s1 + $0x8] ss:$16 sps:$4 sm:$0xff]   ;;  %193 = vmatprep.subr.bf16.mxu1 %v4688_v4  ;;  %v5353_v7 = vld [vmem:[%s8270_s4 + $0xc] ss:$16 sps:$4 sm:$0xff]   ;;  %v5570_v44 = vshrl.u32 %v47_v43, 7 }
   0x3   :  { %121 = vmatpush1.bf16.msra.mxu0 %v4686_v2  ;;  %194 = vmatpush1.bf16.msra.mxu1 %v4690_v5  ;;  %v5348_v6 = vld [vmem:[%s8270_s4 + $0x4] ss:$16 sps:$4 sm:$0xff]   ;;  %v5359_v8 = vld [vmem:[%s8270_s4] ss:$16 sps:$4 sm:$0xff]   ;;  %v5364_v9 = vld [vmem:[%s8270_s4 + $0x8] ss:$16 sps:$4 sm:$0xff]  }
   0x4   :  { %551 = vmatprep.subr.bf16.mxu0 %v5348_v6  ;;  %592 = vmatprep.subr.bf16.mxu1 %v5353_v7  ;;  %v5372_v10 = vld [vmem:[%s8270_s4 + $0x24] ss:$16 sps:$4 sm:$0xff]   ;;  %v5377_v11 = vld [vmem:[%s8270_s4 + $0x2c] ss:$16 sps:$4 sm:$0xff]   ;;  %v5382_v12 = vld [vmem:[%s8270_s4 + $0x20] ss:$16 sps:$4 sm:$0xff]  }
   0x5   :  { %v5387_v13 = vld [vmem:[%s8270_s4 + $0x28] ss:$16 sps:$4 sm:$0xff]   ;;  %v5399_v15 = vld [vmem:[%s8270_s4 + $0x44] ss:$16 sps:$4 sm:$0xff]   ;;  %v5404_v16 = vld [vmem:[%s8270_s4 + $0x4c] ss:$16 sps:$4 sm:$0xff]  }
   0x6   :  { %4072 = vmatmul.mubr.msk.bf16.vlgmr.msra.gmra.mrb[0].mxu0 %vm107_vm0, %v4687_v3  ;;  %4076 = vmatmul.mubr.msk.bf16.vlgmr.msra.gmra.mrb[0].mxu1 %vm107_vm0, %v4687_v3  ;;  %v4703_v14 = vld [vmem:[%s8269_s0 + $0x8] sm:$0xff]   ;;  %v5411_v17 = vld [vmem:[%s8270_s4 + $0x40] ss:$16 sps:$4 sm:$0xff]   ;;  %v5427_v19 = vld [vmem:[%s8270_s4 + $0x64] ss:$16 sps:$4 sm:$0xff]   ;;  %v8281_v45 = vsub.s32 0, %v5570_v44 }
   0x7   :  { %162 = vmatprep.mubr.bf16.mxu0 %v8282_v1  ;;  %235 = vmatprep.mubr.bf16.mxu1 %v8282_v1  ;;  %v5416_v18 = vld [vmem:[%s8270_s4 + $0x48] ss:$16 sps:$4 sm:$0xff]   ;;  %v5432_v20 = vld [vmem:[%s8270_s4 + $0x6c] ss:$16 sps:$4 sm:$0xff]   ;;  %v5437_v21 = vld [vmem:[%s8270_s4 + $0x60] ss:$16 sps:$4 sm:$0xff]  }
   0x8   :  { %552 = vmatpush1.bf16.msra.mxu0 %v5359_v8  ;;  %593 = vmatpush1.bf16.msra.mxu1 %v5364_v9  ;;  %v5442_v22 = vld [vmem:[%s8270_s4 + $0x68] ss:$16 sps:$4 sm:$0xff]   ;;  %v4716_v23 = vld [vmem:[%s8269_s0 + $0x10] sm:$0xff]   ;;  %v5459_v25 = vld [vmem:[%s8270_s4 + $0x8c] ss:$16 sps:$4 sm:$0xff]   ;;  %v8280_v47 = vsub.s32 1, %v5570_v44 }
   0x9   :  { %553 = vmatprep.subr.bf16.mxu0 %v5372_v10  ;;  %594 = vmatprep.subr.bf16.mxu1 %v5377_v11  ;;  %v5454_v24 = vld [vmem:[%s8270_s4 + $0x84] ss:$16 sps:$4 sm:$0xff]   ;;  %v5466_v26 = vld [vmem:[%s8270_s4 + $0x80] ss:$16 sps:$4 sm:$0xff]   ;;  %v5471_v27 = vld [vmem:[%s8270_s4 + $0x88] ss:$16 sps:$4 sm:$0xff]  }
   0xa   :  { %v5482_v28 = vld [vmem:[%s8270_s4 + $0xa4] ss:$16 sps:$4 sm:$0xff]   ;;  %v5487_v29 = vld [vmem:[%s8270_s4 + $0xac] ss:$16 sps:$4 sm:$0xff]   ;;  %v5492_v30 = vld [vmem:[%s8270_s4 + $0xa0] ss:$16 sps:$4 sm:$0xff]  }
   0xb   :  { %v5497_v31 = vld [vmem:[%s8270_s4 + $0xa8] ss:$16 sps:$4 sm:$0xff]   ;;  %v5509_v33 = vld [vmem:[%s8270_s4 + $0xc4] ss:$16 sps:$4 sm:$0xff]   ;;  %v5514_v34 = vld [vmem:[%s8270_s4 + $0xcc] ss:$16 sps:$4 sm:$0xff]  }
   0xc   :  { %554 = vmatpush1.bf16.msra.mxu0 %v5382_v12  ;;  %595 = vmatpush1.bf16.msra.mxu1 %v5387_v13  ;;  %v4729_v32 = vld [vmem:[%s8269_s0 + $0x18] sm:$0xff]   ;;  %v5521_v35 = vld [vmem:[%s8270_s4 + $0xc0] ss:$16 sps:$4 sm:$0xff]   ;;  %v5537_v37 = vld [vmem:[%s8270_s4 + $0xe4] ss:$16 sps:$4 sm:$0xff]   ;;  %v8279_v48 = vsub.s32 2, %v5570_v44 }
   0xd   :  { %555 = vmatprep.subr.bf16.mxu0 %v5399_v15  ;;  %596 = vmatprep.subr.bf16.mxu1 %v5404_v16  ;;  %v5526_v36 = vld [vmem:[%s8270_s4 + $0xc8] ss:$16 sps:$4 sm:$0xff]   ;;  %v5542_v38 = vld [vmem:[%s8270_s4 + $0xec] ss:$16 sps:$4 sm:$0xff]   ;;  %v5547_v39 = vld [vmem:[%s8270_s4 + $0xe0] ss:$16 sps:$4 sm:$0xff]  }
   0xe   :  { %4073 = vmatmul.mubr.msk.bf16.gmra.mrb[4].mxu0 %vm107_vm0, %v4703_v14  ;;  %4077 = vmatmul.mubr.msk.bf16.gmra.mrb[4].mxu1 %vm107_vm0, %v4703_v14  ;;  %v5552_v40 = vld [vmem:[%s8270_s4 + $0xe8] ss:$16 sps:$4 sm:$0xff]   ;;  %v5561_v41 = vld [vmem:[%s8271_s5 + $0x4] ss:$16 sps:$4 sm:$0xff]   ;;  %v5566_v42 = vld [vmem:[%s8271_s5 + $0xc] ss:$16 sps:$4 sm:$0xff]  }
   0xf   :  { %172 = vmatprep.mubr.bf16.mxu0 %v8282_v1  ;;  %245 = vmatprep.mubr.bf16.mxu1 %v8282_v1  ;;  %v45_v46 = vld [vmem:[%s8273_s3] sm:$0xf]  ;;  %v8278_v55 = vsub.s32 3, %v5570_v44 }
  0x10   :  { %556 = vmatpush1.bf16.msra.mxu0 %v5411_v17  ;;  %597 = vmatpush1.bf16.msra.mxu1 %v5416_v18  ;;  %v5580_v49 = vrot.slane %v45_v46, %v8281_v45  ;;  %v5584_v50 = vrot.slane %v45_v46, %v8280_v47  ;;  %v5588_v52 = vrot.slane %v45_v46, %v8279_v48  ;;  %v5706_v48 = vld [vmem:[%s8271_s5 + $0x8c] ss:$16 sps:$4 sm:$0xff]   ;;  %v5713_v47 = vld [vmem:[%s8271_s5 + $0x80] ss:$16 sps:$4 sm:$0xff]   ;;  %v5718_v45 = vld [vmem:[%s8271_s5 + $0x88] ss:$16 sps:$4 sm:$0xff]  }
  0x11   :  { %557 = vmatprep.subr.bf16.mxu0 %v5427_v19  ;;  %598 = vmatprep.subr.bf16.mxu1 %v5432_v20  ;;  %v5600_v0 = vrot.slane %v45_v46, %v8278_v55  ;;  %8533 = vst [vmem:[#allocation14_spill] sm:$0xff] %v5706_v48  ;;  %8534 = vst [vmem:[#allocation15_spill] sm:$0xff] %v5713_v47 }
  0x12   :  { %8522 = vst [vmem:[#allocation3_spill] sm:$0xff] %v5588_v52  ;;  %8535 = vst [vmem:[#allocation16_spill] sm:$0xff] %v5718_v45 }
  0x13   :  { %8523 = vst [vmem:[#allocation4_spill] sm:$0xff] %v5600_v0 }
  0x14   :  { %558 = vmatpush1.bf16.msra.mxu0 %v5437_v21  ;;  %599 = vmatpush1.bf16.msra.mxu1 %v5442_v22 }
  0x15   :  { %559 = vmatprep.subr.bf16.mxu0 %v5454_v24  ;;  %600 = vmatprep.subr.bf16.mxu1 %v5459_v25 }
  0x16   :  { %4074 = vmatmul.mubr.msk.bf16.gmra.mrb[8].mxu0 %vm107_vm0, %v4716_v23  ;;  %4078 = vmatmul.mubr.msk.bf16.gmra.mrb[8].mxu1 %vm107_vm0, %v4716_v23 }
  0x17   :  { %182 = vmatprep.mubr.bf16.mxu0 %v8282_v1  ;;  %255 = vmatprep.mubr.bf16.mxu1 %v8282_v1 }
  0x18   :  { %560 = vmatpush1.bf16.msra.mxu0 %v5466_v26  ;;  %601 = vmatpush1.bf16.msra.mxu1 %v5471_v27 }
  0x19   :  { %561 = vmatprep.subr.bf16.mxu0 %v5482_v28  ;;  %602 = vmatprep.subr.bf16.mxu1 %v5487_v29 }
  0x1c   :  { %562 = vmatpush1.bf16.msra.mxu0 %v5492_v30  ;;  %603 = vmatpush1.bf16.msra.mxu1 %v5497_v31 }
  0x1d   :  { %563 = vmatprep.subr.bf16.mxu0 %v5509_v33  ;;  %604 = vmatprep.subr.bf16.mxu1 %v5514_v34 }
  0x1e   :  { %4075 = vmatmul.mubr.msk.bf16.gmra.mrb[12].mxu0 %vm107_vm0, %v4729_v32  ;;  %4079 = vmatmul.mubr.msk.bf16.gmra.mrb[12].mxu1 %vm107_vm0, %v4729_v32 }
  0x1f   :  { %583 = vmatprep.mubr.bf16.mxu0 %v8282_v1  ;;  %624 = vmatprep.mubr.bf16.mxu1 %v8282_v1 }
  0x20   :  { %564 = vmatpush1.bf16.msra.mxu0 %v5521_v35  ;;  %605 = vmatpush1.bf16.msra.mxu1 %v5526_v36 }
  0x21   :  { %565 = vmatprep.subr.bf16.mxu0 %v5537_v37  ;;  %606 = vmatprep.subr.bf16.mxu1 %v5542_v38 }
  0x24   :  { %566 = vmatpush1.bf16.msra.mxu0 %v5547_v39  ;;  %607 = vmatpush1.bf16.msra.mxu1 %v5552_v40 }
  0x25   :  { %825 = vmatprep.subr.bf16.mxu0 %v5561_v41  ;;  %866 = vmatprep.subr.bf16.mxu1 %v5566_v42 }
  0xd9   :  { %v154_v51 = vpop.f32.mrb[0].mxu0  ;;  %v227_v60 = vpop.f32.mrb[0].mxu1 }
  0xda   :  { %v155_v53 = vadd.f32 %v154_v51, %v5580_v49  ;;  %v156_v54 = vpop.f32.mrb[1].mxu0  ;;  %v228_v62 = vadd.f32 %v227_v60, %v5588_v52  ;;  %v229_v63 = vpop.f32.mrb[1].mxu1 }
  0xdb   :  { %v157_v56 = vadd.f32 %v156_v54, %v5584_v50  ;;  %v5593_v57 = vpop.f32.mrb[2].mxu0  ;;  %v5602_v2 = vpop.f32.mrb[2].mxu1  ;;  %v230_v4 = vadd.f32 %v229_v63, %v5600_v0 }
  0xdc   :  { %v302_v58 = vmul.f32 0.5, %v155_v53  ;;  %v5595_v59 = vpop.f32.mrb[3].mxu0  ;;  %v5604_v3 = vpop.f32.mrb[3].mxu1 }
  0xdd   :  { %v306_v61 = vmul.f32 0.5, %v157_v56  ;;  %v311_v5 = vmul.f32 0.5, %v230_v4  ;;  %v5613_v4 = vld [vmem:[%s8271_s5] ss:$16 sps:$4 sm:$0xff]  }
  0xde   :  { %4902 = vtanh.f32 %v302_v58 }
  0xdf   :  { %4904 = vtanh.f32 %v306_v61 }
  0xe0   :  { %4906 = vtanh.f32 %v228_v62 }
  0xe1   :  { %4908 = vtanh.f32 %v311_v5  ;;  %v5618_v5 = vld [vmem:[%s8271_s5 + $0x8] ss:$16 sps:$4 sm:$0xff]  }
  0xe8   :  { %v4903_v14 = vpop.eup %4902 }
  0xe9   :  { %v4905_v23 = vpop.eup %4904  ;;  %v304_v32 = vmul.f32 0.5, %v4903_v14 }
  0xea   :  { %v4907_v43 = vpop.eup %4906  ;;  %v308_v51 = vmul.f32 0.5, %v4905_v23  ;;  %v5625_v23 = vld [vmem:[%s8271_s5 + $0x24] ss:$16 sps:$4 sm:$0xff]  }
  0xeb   :  { %v305_v53 = vadd.f32 0.5, %v304_v32  ;;  %v4909_v60 = vpop.eup %4908  ;;  %v5639_v32 = vld [vmem:[%s8271_s5 + $0x20] ss:$16 sps:$4 sm:$0xff]  }
  0xec   :  { %v309_v54 = vadd.f32 0.5, %v308_v51  ;;  %v313_v61 = vmul.f32 0.5, %v4909_v60  ;;  %v5651_v51 = vld [vmem:[%s8271_s5 + $0x44] ss:$16 sps:$4 sm:$0xff]   ;;  %v5682_v60 = vld [vmem:[%s8271_s5 + $0x6c] ss:$16 sps:$4 sm:$0xff]  }
  0xed   :  { %v316_v56 = vmul.f32 %v4907_v43, %v305_v53  ;;  %v5644_v43 = vld [vmem:[%s8271_s5 + $0x28] ss:$16 sps:$4 sm:$0xff]   ;;  %8524 = vst [vmem:[#allocation5_spill] sm:$0xff] %v5651_v51  ;;  %v5656_v53 = vld [vmem:[%s8271_s5 + $0x4c] ss:$16 sps:$4 sm:$0xff]   ;;  %8529 = vst [vmem:[#allocation10_spill] sm:$0xff] %v5682_v60 }
  0xee   :  { %v315_v46 = vmul.f32 0.0, %v309_v54  ;;  %v314_v62 = vadd.f32 0.5, %v313_v61  ;;  %8525 = vst [vmem:[#allocation6_spill] sm:$0xff] %v5656_v53  ;;  %v5665_v54 = vld [vmem:[%s8271_s5 + $0x40] ss:$16 sps:$4 sm:$0xff]  }
  0xef   :  { %8526 = vst [vmem:[#allocation7_spill] sm:$0xff] %v5665_v54  ;;  %v5689_v61 = vld [vmem:[%s8271_s5 + $0x60] ss:$16 sps:$4 sm:$0xff]  }
  0xf0   :  { %v5607_v58 = vadd.f32 %v316_v56, %v315_v46  ;;  %v5670_v56 = vld [vmem:[%s8271_s5 + $0x48] ss:$16 sps:$4 sm:$0xff]   ;;  %v5677_v46 = vld [vmem:[%s8271_s5 + $0x64] ss:$16 sps:$4 sm:$0xff]   ;;  %8530 = vst [vmem:[#allocation11_spill] sm:$0xff] %v5689_v61 }
  0xf1   :  { %8527 = vst [vmem:[#allocation8_spill] sm:$0xff] %v5670_v56  ;;  %8528 = vst [vmem:[#allocation9_spill] sm:$0xff] %v5677_v46 }
  0xf2   :  { %4910 = vtanh.f32 %v5607_v58 }
  0xfc   :  { %v4911_v55 = vpop.eup %4910 }
  0xfd   :  { %v319_v63 = vmul.f32 %v4911_v55, %v314_v62  ;;  %v5630_v55 = vld [vmem:[%s8271_s5 + $0x2c] ss:$16 sps:$4 sm:$0xff]   ;;  %v5694_v62 = vld [vmem:[%s8271_s5 + $0x68] ss:$16 sps:$4 sm:$0xff]  }
  0xfe   :  { %8531 = vst [vmem:[#allocation12_spill] sm:$0xff] %v5694_v62 }
  0xff   :  { %v5620_v14 = vpack.c.bf16 %v319_v63, %v319_v63  ;;  %v5701_v63 = vld [vmem:[%s8271_s5 + $0x84] ss:$16 sps:$4 sm:$0xff]  }
 0x100   :  { %8532 = vst [vmem:[#allocation13_spill] sm:$0xff] %v5701_v63 }
 0x101   :  { %584 = vmatmul.mubr.bf16.vlgmr.msra.gmra.mrb[16].mxu0 %v5620_v14  ;;  %625 = vmatmul.mubr.bf16.vlgmr.msra.gmra.mrb[16].mxu1 %v5620_v14 }
 0x102   :  { %826 = vmatpush1.bf16.msra.mxu0 %v5613_v4  ;;  %867 = vmatpush1.bf16.msra.mxu1 %v5618_v5 }
 0x103   :  { %827 = vmatprep.subr.bf16.mxu0 %v5625_v23  ;;  %868 = vmatprep.subr.bf16.mxu1 %v5630_v55 }
 0x104   :  { %857 = vmatprep.mubr.bf16.mxu0 %v8282_v1  ;;  %898 = vmatprep.mubr.bf16.mxu1 %v8282_v1  ;;  %v5725_v1 = vld [vmem:[%s8271_s5 + $0xa4] ss:$16 sps:$4 sm:$0xff]  }
 0x105   :  { %8536 = vst [vmem:[#allocation17_spill] sm:$0xff] %v5725_v1 }
 0x106   :  { %828 = vmatpush1.bf16.msra.mxu0 %v5639_v32  ;;  %869 = vmatpush1.bf16.msra.mxu1 %v5644_v43 }
 0x107   :  { %829 = vmatprep.subr.bf16.mxu0 %v5651_v51  ;;  %870 = vmatprep.subr.bf16.mxu1 %v5656_v53 }
 0x10a   :  { %830 = vmatpush1.bf16.msra.mxu0 %v5665_v54  ;;  %871 = vmatpush1.bf16.msra.mxu1 %v5670_v56 }
 0x10b   :  { %831 = vmatprep.subr.bf16.mxu0 %v5677_v46  ;;  %872 = vmatprep.subr.bf16.mxu1 %v5682_v60  ;;  %v5988_v60 = vpop.f32.mrb[4].mxu0  ;;  %v5990_v46 = vpop.f32.mrb[4].mxu1 }
 0x10e   :  { %832 = vmatpush1.bf16.msra.mxu0 %v5689_v61  ;;  %873 = vmatpush1.bf16.msra.mxu1 %v5694_v62  ;;  %v5730_v62 = vld [vmem:[%s8271_s5 + $0xac] ss:$16 sps:$4 sm:$0xff]   ;;  %v8554_v61 = vmov 0  }
 0x10f   :  { %833 = vmatprep.subr.bf16.mxu0 %v5701_v63  ;;  %874 = vmatprep.subr.bf16.mxu1 %v5706_v48  ;;  %8537 = vst [vmem:[#allocation18_spill] sm:$0xff] %v5730_v62  ;;  %v5737_v63 = vld [vmem:[%s8271_s5 + $0xa0] ss:$16 sps:$4 sm:$0xff]   ;;  %v5742_v48 = vld [vmem:[%s8271_s5 + $0xa8] ss:$16 sps:$4 sm:$0xff]  }
 0x110   :  { %8538 = vst [vmem:[#allocation19_spill] sm:$0xff] %v5737_v63  ;;  %8539 = vst [vmem:[#allocation20_spill] sm:$0xff] %v5742_v48 }
 0x112   :  { %834 = vmatpush1.bf16.msra.mxu0 %v5713_v47  ;;  %875 = vmatpush1.bf16.msra.mxu1 %v5718_v45  ;;  %v5749_v47 = vld [vmem:[%s8271_s5 + $0xc4] ss:$16 sps:$4 sm:$0xff]   ;;  %v5754_v45 = vld [vmem:[%s8271_s5 + $0xcc] ss:$16 sps:$4 sm:$0xff]  }
 0x113   :  { %835 = vmatprep.subr.bf16.mxu0 %v5725_v1  ;;  %876 = vmatprep.subr.bf16.mxu1 %v5730_v62  ;;  %8540 = vst [vmem:[#allocation21_spill] sm:$0xff] %v5749_v47  ;;  %8541 = vst [vmem:[#allocation22_spill] sm:$0xff] %v5754_v45  ;;  %v5761_v1 = vld [vmem:[%s8271_s5 + $0xc0] ss:$16 sps:$4 sm:$0xff]   ;;  %v5766_v62 = vld [vmem:[%s8271_s5 + $0xc8] ss:$16 sps:$4 sm:$0xff]  }
 0x114   :  { %8542 = vst [vmem:[#allocation23_spill] sm:$0xff] %v5761_v1  ;;  %8543 = vst [vmem:[#allocation24_spill] sm:$0xff] %v5766_v62 }
 0x116   :  { %836 = vmatpush1.bf16.msra.mxu0 %v5737_v63  ;;  %877 = vmatpush1.bf16.msra.mxu1 %v5742_v48  ;;  %v5773_v63 = vld [vmem:[%s8271_s5 + $0xe4] ss:$16 sps:$4 sm:$0xff]   ;;  %v5778_v48 = vld [vmem:[%s8271_s5 + $0xec] ss:$16 sps:$4 sm:$0xff]  }
 0x117   :  { %837 = vmatprep.subr.bf16.mxu0 %v5749_v47  ;;  %878 = vmatprep.subr.bf16.mxu1 %v5754_v45  ;;  %8544 = vst [vmem:[#allocation25_spill] sm:$0xff] %v5773_v63  ;;  %8545 = vst [vmem:[#allocation26_spill] sm:$0xff] %v5778_v48  ;;  %v5785_v47 = vld [vmem:[%s8271_s5 + $0xe0] ss:$16 sps:$4 sm:$0xff]   ;;  %v5790_v45 = vld [vmem:[%s8271_s5 + $0xe8] ss:$16 sps:$4 sm:$0xff]  }
 0x118   :  { %8546 = vst [vmem:[#allocation27_spill] sm:$0xff] %v5785_v47  ;;  %8547 = vst [vmem:[#allocation28_spill] sm:$0xff] %v5790_v45 }
 0x11a   :  { %838 = vmatpush1.bf16.msra.mxu0 %v5761_v1  ;;  %879 = vmatpush1.bf16.msra.mxu1 %v5766_v62  ;;  %v5797_v1 = vld [vmem:[%s8272_s2 + $0x4] ss:$16 sps:$4 sm:$0xff]   ;;  %v5802_v62 = vld [vmem:[%s8272_s2 + $0xc] ss:$16 sps:$4 sm:$0xff]  }
 0x11b   :  { %839 = vmatprep.subr.bf16.mxu0 %v5773_v63  ;;  %880 = vmatprep.subr.bf16.mxu1 %v5778_v48  ;;  %8548 = vst [vmem:[#allocation29_spill] sm:$0xff] %v5797_v1  ;;  %8549 = vst [vmem:[#allocation30_spill] sm:$0xff] %v5802_v62  ;;  %v5809_v63 = vld [vmem:[%s8272_s2] ss:$16 sps:$4 sm:$0xff]   ;;  %v5814_v48 = vld [vmem:[%s8272_s2 + $0x8] ss:$16 sps:$4 sm:$0xff]  }
 0x11c   :  { %8550 = vst [vmem:[#allocation31_spill] sm:$0xff] %v5809_v63  ;;  %8551 = vst [vmem:[#allocation32_spill] sm:$0xff] %v5814_v48 }
 0x11e   :  { %840 = vmatpush1.bf16.msra.mxu0 %v5785_v47  ;;  %881 = vmatpush1.bf16.msra.mxu1 %v5790_v45  ;;  %v5821_v47 = vld [vmem:[%s8272_s2 + $0x24] ss:$16 sps:$4 sm:$0xff]   ;;  %v5826_v45 = vld [vmem:[%s8272_s2 + $0x2c] ss:$16 sps:$4 sm:$0xff]  }
 0x11f   :  { %1129 = vmatprep.subr.bf16.mxu0 %v5797_v1  ;;  %1170 = vmatprep.subr.bf16.mxu1 %v5802_v62  ;;  %8552 = vst [vmem:[#allocation33_spill] sm:$0xff] %v5821_v47  ;;  %8553 = vst [vmem:[#allocation34_spill] sm:$0xff] %v5826_v45  ;;  %v5835_v1 = vld [vmem:[%s8272_s2 + $0x20] ss:$16 sps:$4 sm:$0xff]   ;;  %v5840_v62 = vld [vmem:[%s8272_s2 + $0x28] ss:$16 sps:$4 sm:$0xff]  }
 0x120   :  { %8555 = vst [vmem:[#allocation35_spill] sm:$0xff] %v5835_v1  ;;  %8556 = vst [vmem:[#allocation36_spill] sm:$0xff] %v5840_v62 }
 0x121   :  { %858 = vmatmul.mubr.bf16.vlgmr.msra.gmra.mrb[16].mxu0 %v8554_v61  ;;  %899 = vmatmul.mubr.bf16.vlgmr.msra.gmra.mrb[16].mxu1 %v8554_v61 }
 0x122   :  { %1130 = vmatpush1.bf16.msra.mxu0 %v5809_v63  ;;  %1171 = vmatpush1.bf16.msra.mxu1 %v5814_v48  ;;  %v5847_v63 = vld [vmem:[%s8272_s2 + $0x44] ss:$16 sps:$4 sm:$0xff]   ;;  %v5852_v48 = vld [vmem:[%s8272_s2 + $0x4c] ss:$16 sps:$4 sm:$0xff]  }
 0x123   :  { %1131 = vmatprep.subr.bf16.mxu0 %v5821_v47  ;;  %1172 = vmatprep.subr.bf16.mxu1 %v5826_v45  ;;  %8557 = vst [vmem:[#allocation37_spill] sm:$0xff] %v5847_v63  ;;  %8558 = vst [vmem:[#allocation38_spill] sm:$0xff] %v5852_v48  ;;  %v5861_v47 = vld [vmem:[%s8272_s2 + $0x40] ss:$16 sps:$4 sm:$0xff]   ;;  %v5866_v45 = vld [vmem:[%s8272_s2 + $0x48] ss:$16 sps:$4 sm:$0xff]  }
 0x124   :  { %1161 = vmatprep.mubr.bf16.mxu0 %v8554_v61  ;;  %1202 = vmatprep.mubr.bf16.mxu1 %v8554_v61  ;;  %8559 = vst [vmem:[#allocation39_spill] sm:$0xff] %v5861_v47  ;;  %8560 = vst [vmem:[#allocation40_spill] sm:$0xff] %v5866_v45 }
 0x126   :  { %1132 = vmatpush1.bf16.msra.mxu0 %v5835_v1  ;;  %1173 = vmatpush1.bf16.msra.mxu1 %v5840_v62  ;;  %v5873_v1 = vld [vmem:[%s8272_s2 + $0x64] ss:$16 sps:$4 sm:$0xff]   ;;  %v5878_v62 = vld [vmem:[%s8272_s2 + $0x6c] ss:$16 sps:$4 sm:$0xff]  }
 0x127   :  { %1133 = vmatprep.subr.bf16.mxu0 %v5847_v63  ;;  %1174 = vmatprep.subr.bf16.mxu1 %v5852_v48  ;;  %8561 = vst [vmem:[#allocation41_spill] sm:$0xff] %v5873_v1  ;;  %8562 = vst [vmem:[#allocation42_spill] sm:$0xff] %v5878_v62  ;;  %v5885_v63 = vld [vmem:[%s8272_s2 + $0x60] ss:$16 sps:$4 sm:$0xff]   ;;  %v5890_v48 = vld [vmem:[%s8272_s2 + $0x68] ss:$16 sps:$4 sm:$0xff]  }
 0x128   :  { %8563 = vst [vmem:[#allocation43_spill] sm:$0xff] %v5885_v63  ;;  %8564 = vst [vmem:[#allocation44_spill] sm:$0xff] %v5890_v48 }
 0x12a   :  { %1134 = vmatpush1.bf16.msra.mxu0 %v5861_v47  ;;  %1175 = vmatpush1.bf16.msra.mxu1 %v5866_v45  ;;  %v5897_v47 = vld [vmem:[%s8272_s2 + $0x84] ss:$16 sps:$4 sm:$0xff]   ;;  %v5902_v45 = vld [vmem:[%s8272_s2 + $0x8c] ss:$16 sps:$4 sm:$0xff]  }
 0x12b   :  { %1135 = vmatprep.subr.bf16.mxu0 %v5873_v1  ;;  %1176 = vmatprep.subr.bf16.mxu1 %v5878_v62  ;;  %8565 = vst [vmem:[#allocation45_spill] sm:$0xff] %v5897_v47  ;;  %8566 = vst [vmem:[#allocation46_spill] sm:$0xff] %v5902_v45  ;;  %v5909_v1 = vld [vmem:[%s8272_s2 + $0x80] ss:$16 sps:$4 sm:$0xff]   ;;  %v5914_v62 = vld [vmem:[%s8272_s2 + $0x88] ss:$16 sps:$4 sm:$0xff]  }
 0x12c   :  { %8567 = vst [vmem:[#allocation47_spill] sm:$0xff] %v5909_v1  ;;  %8568 = vst [vmem:[#allocation48_spill] sm:$0xff] %v5914_v62 }
 0x12e   :  { %1136 = vmatpush1.bf16.msra.mxu0 %v5885_v63  ;;  %1177 = vmatpush1.bf16.msra.mxu1 %v5890_v48  ;;  %v5921_v63 = vld [vmem:[%s8272_s2 + $0xa4] ss:$16 sps:$4 sm:$0xff]   ;;  %v5926_v48 = vld [vmem:[%s8272_s2 + $0xac] ss:$16 sps:$4 sm:$0xff]  }
 0x12f   :  { %1137 = vmatprep.subr.bf16.mxu0 %v5897_v47  ;;  %1178 = vmatprep.subr.bf16.mxu1 %v5902_v45  ;;  %8569 = vst [vmem:[#allocation49_spill] sm:$0xff] %v5921_v63  ;;  %8570 = vst [vmem:[#allocation50_spill] sm:$0xff] %v5926_v48  ;;  %v5933_v47 = vld [vmem:[%s8272_s2 + $0xa0] ss:$16 sps:$4 sm:$0xff]   ;;  %v5938_v45 = vld [vmem:[%s8272_s2 + $0xa8] ss:$16 sps:$4 sm:$0xff]  }
 0x130   :  { %8571 = vst [vmem:[#allocation51_spill] sm:$0xff] %v5933_v47  ;;  %8572 = vst [vmem:[#allocation52_spill] sm:$0xff] %v5938_v45 }
 0x132   :  { %1138 = vmatpush1.bf16.msra.mxu0 %v5909_v1  ;;  %1179 = vmatpush1.bf16.msra.mxu1 %v5914_v62  ;;  %v5945_v1 = vld [vmem:[%s8272_s2 + $0xc4] ss:$16 sps:$4 sm:$0xff]   ;;  %v5950_v62 = vld [vmem:[%s8272_s2 + $0xcc] ss:$16 sps:$4 sm:$0xff]  }
 0x133   :  { %1139 = vmatprep.subr.bf16.mxu0 %v5921_v63  ;;  %1180 = vmatprep.subr.bf16.mxu1 %v5926_v48  ;;  %8573 = vst [vmem:[#allocation53_spill] sm:$0xff] %v5945_v1  ;;  %8574 = vst [vmem:[#allocation54_spill] sm:$0xff] %v5950_v62  ;;  %v5957_v63 = vld [vmem:[%s8272_s2 + $0xc0] ss:$16 sps:$4 sm:$0xff]   ;;  %v5962_v48 = vld [vmem:[%s8272_s2 + $0xc8] ss:$16 sps:$4 sm:$0xff]  }
 0x134   :  { %8575 = vst [vmem:[#allocation55_spill] sm:$0xff] %v5957_v63  ;;  %8576 = vst [vmem:[#allocation56_spill] sm:$0xff] %v5962_v48 }
 0x136   :  { %1140 = vmatpush1.bf16.msra.mxu0 %v5933_v47  ;;  %1181 = vmatpush1.bf16.msra.mxu1 %v5938_v45  ;;  %v5969_v47 = vld [vmem:[%s8272_s2 + $0xe4] ss:$16 sps:$4 sm:$0xff]   ;;  %v5974_v45 = vld [vmem:[%s8272_s2 + $0xec] ss:$16 sps:$4 sm:$0xff]  }
 0x137   :  { %1141 = vmatprep.subr.bf16.mxu0 %v5945_v1  ;;  %1182 = vmatprep.subr.bf16.mxu1 %v5950_v62  ;;  %v5981_v1 = vld [vmem:[%s8272_s2 + $0xe0] ss:$16 sps:$4 sm:$0xff]   ;;  %v5986_v62 = vld [vmem:[%s8272_s2 + $0xe8] ss:$16 sps:$4 sm:$0xff]  }
 0x13a   :  { %1142 = vmatpush1.bf16.msra.mxu0 %v5957_v63  ;;  %1183 = vmatpush1.bf16.msra.mxu1 %v5962_v48  ;;  %v5994_v63 = vpop.f32.mrb[5].mxu0  ;;  %v5996_v48 = vpop.f32.mrb[5].mxu1 }
 0x13b   :  { %1143 = vmatprep.subr.bf16.mxu0 %v5969_v47  ;;  %1184 = vmatprep.subr.bf16.mxu1 %v5974_v45  ;;  %8577 = vst [vmem:[#allocation57_spill] sm:$0xff] %v5994_v63  ;;  %v5998_v56 = vpop.f32.mrb[6].mxu0  ;;  %v6000_v54 = vpop.f32.mrb[6].mxu1 }
 0x13c   :  { %8578 = vst [vmem:[#allocation58_spill] sm:$0xff] %v5998_v56  ;;  %8579 = vst [vmem:[#allocation59_spill] sm:$0xff] %v6000_v54  ;;  %v6002_v53 = vpop.f32.mrb[7].mxu0  ;;  %v6004_v51 = vpop.f32.mrb[7].mxu1 }
 0x13d   :  { %8580 = vst [vmem:[#allocation60_spill] sm:$0xff] %v6004_v51  ;;  %v6012_v63 = vpop.f32.mrb[8].mxu0  ;;  %v6014_v56 = vpop.f32.mrb[8].mxu1 }
 0x13e   :  { %1144 = vmatpush1.bf16.msra.mxu0 %v5981_v1  ;;  %1185 = vmatpush1.bf16.msra.mxu1 %v5986_v62  ;;  %8581 = vst [vmem:[#allocation61_spill] sm:$0xff] %v6012_v63  ;;  %8582 = vst [vmem:[#allocation62_spill] sm:$0xff] %v6014_v56  ;;  %v6018_v51 = vpop.f32.mrb[9].mxu0  ;;  %v6020_v54 = vpop.f32.mrb[9].mxu1 }
 0x13f   :  { %1251 = vmatprep.subr.bf16.mxu0 %v5348_v6  ;;  %1292 = vmatprep.subr.bf16.mxu1 %v5353_v7  ;;  %8583 = vst [vmem:[#allocation63_spill] sm:$0xff] %v6018_v51  ;;  %8584 = vst [vmem:[#allocation64_spill] sm:$0xff] %v6020_v54  ;;  %v6024_v6 = vpop.f32.mrb[10].mxu0  ;;  %v6026_v7 = vpop.f32.mrb[10].mxu1 }
 0x140   :  { %8585 = vst [vmem:[#allocation65_spill] sm:$0xff] %v6024_v6  ;;  %8586 = vst [vmem:[#allocation66_spill] sm:$0xff] %v6026_v7 }
 0x141   :  { %1162 = vmatmul.mubr.bf16.vlgmr.msra.gmra.mrb[20].mxu0 %v5620_v14  ;;  %1203 = vmatmul.mubr.bf16.vlgmr.msra.gmra.mrb[20].mxu1 %v5620_v14  ;;  %v6030_v14 = vpop.f32.mrb[11].mxu0 }
 0x142   :  { %1252 = vmatpush1.bf16.msra.mxu0 %v5359_v8  ;;  %1293 = vmatpush1.bf16.msra.mxu1 %v5364_v9  ;;  %8587 = vst [vmem:[#allocation67_spill] sm:$0xff] %v6030_v14  ;;  %v6032_v8 = vpop.f32.mrb[11].mxu1  ;;  %v6038_v9 = vpop.f32.mrb[12].mxu0 }
 0x143   :  { %1253 = vmatprep.subr.bf16.mxu0 %v5372_v10  ;;  %1294 = vmatprep.subr.bf16.mxu1 %v5377_v11  ;;  %8588 = vst [vmem:[#allocation68_spill] sm:$0xff] %v6032_v8  ;;  %8589 = vst [vmem:[#allocation69_spill] sm:$0xff] %v6038_v9  ;;  %v6040_v10 = vpop.f32.mrb[12].mxu1  ;;  %v6044_v11 = vpop.f32.mrb[13].mxu0  ;;  %v165_v9 = vadd.f32 %v5988_v60, %v5580_v49  ;;  %v8674_v8 = vld [vmem:[#allocation57_spill] sm:$0xff] }
 0x144   :  { %1283 = vmatprep.mubr.bf16.mxu0 %v8554_v61  ;;  %1324 = vmatprep.mubr.bf16.mxu1 %v8554_v61  ;;  %8590 = vst [vmem:[#allocation70_spill] sm:$0xff] %v6040_v10  ;;  %8591 = vst [vmem:[#allocation71_spill] sm:$0xff] %v6044_v11  ;;  %v6046_v7 = vpop.f32.mrb[13].mxu1  ;;  %v167_v14 = vadd.f32 %v8674_v8, %v5584_v50 }
 0x145   :  { %8592 = vst [vmem:[#allocation72_spill] sm:$0xff] %v6046_v7 }
 0x146   :  { %1254 = vmatpush1.bf16.msra.mxu0 %v5382_v12  ;;  %1295 = vmatpush1.bf16.msra.mxu1 %v5387_v13  ;;  %v6050_v12 = vpop.f32.mrb[14].mxu0  ;;  %v6052_v13 = vpop.f32.mrb[14].mxu1 }
 0x147   :  { %1255 = vmatprep.subr.bf16.mxu0 %v5399_v15  ;;  %1296 = vmatprep.subr.bf16.mxu1 %v5404_v16  ;;  %8593 = vst [vmem:[#allocation73_spill] sm:$0xff] %v6050_v12  ;;  %8594 = vst [vmem:[#allocation74_spill] sm:$0xff] %v6052_v13  ;;  %v6054_v15 = vpop.f32.mrb[15].mxu0  ;;  %v6056_v16 = vpop.f32.mrb[15].mxu1 }
 0x148   :  { %8595 = vst [vmem:[#allocation75_spill] sm:$0xff] %v6054_v15  ;;  %8596 = vst [vmem:[#allocation76_spill] sm:$0xff] %v6056_v16 }
 0x14a   :  { %1256 = vmatpush1.bf16.msra.mxu0 %v5411_v17  ;;  %1297 = vmatpush1.bf16.msra.mxu1 %v5416_v18  ;;  %v6081_v17 = vld [vmem:[%s8275_s6] sm:$0xf]  ;;  %v8597_v18 = vsub.s32 0, %v5570_v44 }
 0x14b   :  { %1257 = vmatprep.subr.bf16.mxu0 %v5427_v19  ;;  %1298 = vmatprep.subr.bf16.mxu1 %v5432_v20  ;;  %v8599_v20 = vsub.s32 1, %v5570_v44 }
 0x14c   :  { %v6086_v19 = vrot.slane %v6081_v17, %v8597_v18 }
 0x14e   :  { %1258 = vmatpush1.bf16.msra.mxu0 %v5437_v21  ;;  %1299 = vmatpush1.bf16.msra.mxu1 %v5442_v22  ;;  %8598 = vst [vmem:[#allocation77_spill] sm:$0xff] %v6086_v19  ;;  %v6091_v21 = vrot.slane %v6081_v17, %v8599_v20 }
 0x14f   :  { %1259 = vmatprep.subr.bf16.mxu0 %v5454_v24  ;;  %1300 = vmatprep.subr.bf16.mxu1 %v5459_v25 }
 0x152   :  { %1260 = vmatpush1.bf16.msra.mxu0 %v5466_v26  ;;  %1301 = vmatpush1.bf16.msra.mxu1 %v5471_v27  ;;  %v8600_v26 = vsub.s32 2, %v5570_v44 }
 0x153   :  { %1261 = vmatprep.subr.bf16.mxu0 %v5482_v28  ;;  %1302 = vmatprep.subr.bf16.mxu1 %v5487_v29 }
 0x154   :  { %v6097_v27 = vrot.slane %v6081_v17, %v8600_v26 }
 0x156   :  { %1262 = vmatpush1.bf16.msra.mxu0 %v5492_v30  ;;  %1303 = vmatpush1.bf16.msra.mxu1 %v5497_v31 }
 0x157   :  { %1263 = vmatprep.subr.bf16.mxu0 %v5509_v33  ;;  %1304 = vmatprep.subr.bf16.mxu1 %v5514_v34 }
 0x15a   :  { %1264 = vmatpush1.bf16.msra.mxu0 %v5521_v35  ;;  %1305 = vmatpush1.bf16.msra.mxu1 %v5526_v36 }
 0x15b   :  { %1265 = vmatprep.subr.bf16.mxu0 %v5537_v37  ;;  %1306 = vmatprep.subr.bf16.mxu1 %v5542_v38 }
 0x15e   :  { %1266 = vmatpush1.bf16.msra.mxu0 %v5547_v39  ;;  %1307 = vmatpush1.bf16.msra.mxu1 %v5552_v40 }
 0x15f   :  { %1333 = vmatprep.subr.bf16.mxu0 %v5561_v41  ;;  %1374 = vmatprep.subr.bf16.mxu1 %v5566_v42 }
 0x1f4   :  { %v859_v22 = vpop.f32.mrb[16].mxu0  ;;  %v900_v24 = vpop.f32.mrb[16].mxu1 }
 0x1f5   :  { %v4585_v25 = vadd.f32 %v859_v22, %v6086_v19  ;;  %v861_v28 = vpop.f32.mrb[17].mxu0  ;;  %v6099_v29 = vpop.f32.mrb[17].mxu1  ;;  %v4587_v38 = vadd.f32 %v900_v24, %v6097_v27  ;;  %v161_v24 = vadd.f32 %v5595_v59, %v5584_v50 }
 0x1f6   :  { %v4586_v30 = vadd.f32 %v861_v28, %v6091_v21  ;;  %v863_v31 = vpop.f32.mrb[18].mxu0  ;;  %v904_v33 = vpop.f32.mrb[18].mxu1 }
 0x1f7   :  { %v911_v34 = vmul.f32 0.5, %v4585_v25  ;;  %v864_v35 = vpop.f32.mrb[19].mxu0  ;;  %v905_v36 = vpop.f32.mrb[19].mxu1  ;;  %v159_v25 = vadd.f32 %v5593_v57, %v5580_v49  ;;  %v234_v33 = vadd.f32 %v5604_v3, %v5600_v0 }
 0x1f8   :  { %v915_v37 = vmul.f32 0.5, %v4586_v30  ;;  %v232_v30 = vadd.f32 %v5602_v2, %v5588_v52 }
 0x1f9   :  { %4912 = vtanh.f32 %v911_v34 }
 0x1fa   :  { %4914 = vtanh.f32 %v915_v37 }
 0x1fb   :  { %4916 = vtanh.f32 %v4587_v38 }
 0x203   :  { %v4913_v39 = vpop.eup %4912 }
 0x204   :  { %v4915_v40 = vpop.eup %4914  ;;  %v913_v41 = vmul.f32 0.5, %v4913_v39 }
 0x205   :  { %v917_v42 = vmul.f32 0.5, %v4915_v40  ;;  %v4917_v20 = vpop.eup %4916 }
 0x206   :  { %v914_v18 = vadd.f32 0.5, %v913_v41 }
 0x207   :  { %v918_v22 = vadd.f32 0.5, %v917_v42 }
 0x208   :  { %v925_v26 = vmul.f32 %v4917_v20, %v914_v18 }
 0x209   :  { %v924_v28 = vmul.f32 0.0, %v918_v22 }
 0x20b   :  { %v6103_v31 = vadd.f32 %v925_v26, %v924_v28 }
 0x214   :  { %v1163_v34 = vpop.f32.mrb[20].mxu0  ;;  %v1204_v35 = vpop.f32.mrb[20].mxu1 }
 0x215   :  { %v1211_v36 = vadd.f32 %v1163_v34, %v159_v25  ;;  %v1213_v37 = vadd.f32 %v1204_v35, %v232_v30  ;;  %v1165_v38 = vpop.f32.mrb[21].mxu0  ;;  %v1206_v39 = vpop.f32.mrb[21].mxu1 }
 0x216   :  { %v1212_v40 = vadd.f32 %v1165_v38, %v161_v24  ;;  %v1214_v41 = vadd.f32 %v1206_v39, %v234_v33  ;;  %v1167_v42 = vpop.f32.mrb[22].mxu0  ;;  %v1208_v18 = vpop.f32.mrb[22].mxu1 }
 0x217   :  { %v1215_v57 = vmul.f32 0.5, %v1211_v36  ;;  %v1168_v20 = vpop.f32.mrb[23].mxu0  ;;  %v1209_v22 = vpop.f32.mrb[23].mxu1 }
 0x218   :  { %v1219_v2 = vmul.f32 0.5, %v1212_v40  ;;  %v1224_v59 = vmul.f32 0.5, %v1214_v41  ;;  %v8601_v40 = vsub.s32 3, %v5570_v44  ;;  %v8612_v22 = vld [vmem:[#allocation15_spill] sm:$0xff] }
 0x219   :  { %4918 = vtanh.f32 %v1215_v57  ;;  %v8611_v57 = vld [vmem:[#allocation14_spill] sm:$0xff] }
 0x21a   :  { %4920 = vtanh.f32 %v1219_v2  ;;  %v6120_v41 = vrot.slane %v6081_v17, %v8601_v40  ;;  %v8603_v17 = vld [vmem:[#allocation6_spill] sm:$0xff]  ;;  %v8613_v2 = vld [vmem:[#allocation16_spill] sm:$0xff] }
 0x21b   :  { %4922 = vtanh.f32 %v1213_v37  ;;  %v8623_v40 = vld [vmem:[#allocation26_spill] sm:$0xff] }
 0x21c   :  { %4924 = vtanh.f32 %v1224_v59  ;;  %v8614_v59 = vld [vmem:[#allocation17_spill] sm:$0xff] }
 0x223   :  { %v4919_v26 = vpop.eup %4918 }
 0x224   :  { %v4921_v3 = vpop.eup %4920  ;;  %v1217_v28 = vmul.f32 0.5, %v4919_v26  ;;  %v8615_v26 = vld [vmem:[#allocation18_spill] sm:$0xff] }
 0x225   :  { %v1221_v16 = vmul.f32 0.5, %v4921_v3  ;;  %v4923_v30 = vpop.eup %4922 }
 0x226   :  { %v1218_v25 = vadd.f32 0.5, %v1217_v28  ;;  %v4925_v36 = vpop.eup %4924  ;;  %v8616_v28 = vld [vmem:[#allocation19_spill] sm:$0xff] }
 0x227   :  { %v1222_v34 = vadd.f32 0.5, %v1221_v16  ;;  %v1226_v38 = vmul.f32 0.5, %v4925_v36  ;;  %v4588_v16 = vadd.f32 %v6099_v29, %v6120_v41  ;;  %v8608_v29 = vld [vmem:[#allocation11_spill] sm:$0xff] }
 0x228   :  { %v1229_v24 = vmul.f32 %v4923_v30, %v1218_v25  ;;  %v8617_v25 = vld [vmem:[#allocation20_spill] sm:$0xff]  ;;  %v8618_v30 = vld [vmem:[#allocation21_spill] sm:$0xff]  ;;  %v8620_v36 = vld [vmem:[#allocation23_spill] sm:$0xff] }
 0x229   :  { %v1228_v33 = vmul.f32 %v1222_v34, %v5607_v58  ;;  %v1227_v39 = vadd.f32 0.5, %v1226_v38  ;;  %v920_v44 = vmul.f32 0.5, %v4588_v16  ;;  %v8602_v58 = vld [vmem:[#allocation5_spill] sm:$0xff]  ;;  %v8619_v34 = vld [vmem:[#allocation22_spill] sm:$0xff]  ;;  %v8621_v38 = vld [vmem:[#allocation24_spill] sm:$0xff] }
 0x22a   :  { %v8625_v16 = vld [vmem:[#allocation28_spill] sm:$0xff] }
 0x22b   :  { %v6114_v35 = vadd.f32 %v1229_v24, %v1228_v33 }
 0x22d   :  { %4926 = vtanh.f32 %v6114_v35 }
 0x22e   :  { %4928 = vtanh.f32 %v920_v44  ;;  %v4838_v44 = vld [vmem:[%s8274_s7] sm:$0xff]  }
 0x22f   :  { %4930 = vtanh.f32 %v6103_v31 }
 0x237   :  { %v4927_v37 = vpop.eup %4926 }
 0x238   :  { %v1232_v42 = vmul.f32 %v4927_v37, %v1227_v39  ;;  %v4929_v20 = vpop.eup %4928  ;;  %v8622_v37 = vld [vmem:[#allocation25_spill] sm:$0xff] }
 0x239   :  { %v922_v3 = vmul.f32 0.5, %v4929_v20  ;;  %v4931_v24 = vpop.eup %4930  ;;  %v8627_v20 = vld [vmem:[#allocation32_spill] sm:$0xff] }
 0x23a   :  { %v6122_v18 = vpack.c.bf16 %v1232_v42, %v1232_v42  ;;  %v8624_v42 = vld [vmem:[#allocation27_spill] sm:$0xff] }
 0x23b   :  { %v923_v33 = vadd.f32 0.5, %v922_v3  ;;  %v8632_v3 = vld [vmem:[#allocation42_spill] sm:$0xff] }
 0x23c   :  { %1284 = vmatmul.mubr.bf16.vlgmr.msra.gmra.mrb[24].mxu0 %v6122_v18  ;;  %1325 = vmatmul.mubr.bf16.vlgmr.msra.gmra.mrb[24].mxu1 %v6122_v18 }
 0x23d   :  { %1334 = vmatpush1.bf16.msra.mxu0 %v5613_v4  ;;  %1375 = vmatpush1.bf16.msra.mxu1 %v5618_v5  ;;  %v8604_v4 = vld [vmem:[#allocation7_spill] sm:$0xff]  ;;  %v8605_v5 = vld [vmem:[#allocation8_spill] sm:$0xff]  ;;  %v928_v39 = vmul.f32 %v4931_v24, %v923_v33  ;;  %v8638_v33 = vld [vmem:[#allocation54_spill] sm:$0xff] }
 0x23e   :  { %1335 = vmatprep.subr.bf16.mxu0 %v5625_v23  ;;  %1376 = vmatprep.subr.bf16.mxu1 %v5630_v55  ;;  %v8606_v23 = vld [vmem:[#allocation9_spill] sm:$0xff]  ;;  %v8607_v55 = vld [vmem:[#allocation10_spill] sm:$0xff]  ;;  %v8637_v24 = vld [vmem:[#allocation52_spill] sm:$0xff] }
 0x23f   :  { %1365 = vmatprep.mubr.bf16.mxu0 %v8554_v61  ;;  %1406 = vmatprep.mubr.bf16.mxu1 %v8554_v61 }
 0x241   :  { %1336 = vmatpush1.bf16.msra.mxu0 %v5639_v32  ;;  %1377 = vmatpush1.bf16.msra.mxu1 %v5644_v43  ;;  %v8609_v32 = vld [vmem:[#allocation12_spill] sm:$0xff]  ;;  %v8610_v43 = vld [vmem:[#allocation13_spill] sm:$0xff] }
 0x242   :  { %1337 = vmatprep.subr.bf16.mxu0 %v8602_v58  ;;  %1378 = vmatprep.subr.bf16.mxu1 %v8603_v17  ;;  %v929_v58 = vpack.c.bf16 %v928_v39, %v928_v39  ;;  %v8336_v17 = vmov 0.0   ;;  %v6225_v39 = vld [vmem:[%s8270_s4 + $0x8] ss:$16 sps:$4 sm:$0xff]  }
 0x245   :  { %1338 = vmatpush1.bf16.msra.mxu0 %v8604_v4  ;;  %1379 = vmatpush1.bf16.msra.mxu1 %v8605_v5  ;;  %v4839_v4 = vld [vmem:[%s8274_s7 + $0x8] sm:$0xff]   ;;  %v4840_v5 = vld [vmem:[%s8274_s7 + $0x10] sm:$0xff]  }
 0x246   :  { %1339 = vmatprep.subr.bf16.mxu0 %v8606_v23  ;;  %1380 = vmatprep.subr.bf16.mxu1 %v8607_v55  ;;  %v4841_v23 = vld [vmem:[%s8274_s7 + $0x18] sm:$0xff]   ;;  %v4842_v55 = vld [vmem:[%s8274_s7 + $0x20] sm:$0xff]  }
 0x249   :  { %1340 = vmatpush1.bf16.msra.mxu0 %v8608_v29  ;;  %1381 = vmatpush1.bf16.msra.mxu1 %v8609_v32  ;;  %v4843_v29 = vld [vmem:[%s8274_s7 + $0x28] sm:$0xff]   ;;  %v4844_v32 = vld [vmem:[%s8274_s7 + $0x30] sm:$0xff]  }
 0x24a   :  { %1341 = vmatprep.subr.bf16.mxu0 %v8610_v43  ;;  %1382 = vmatprep.subr.bf16.mxu1 %v8611_v57  ;;  %v4845_v43 = vld [vmem:[%s8274_s7 + $0x38] sm:$0xff]  }
 0x24b   :  { %v8626_v57 = vld [vmem:[#allocation30_spill] sm:$0xff] }
 0x24d   :  { %1342 = vmatpush1.bf16.msra.mxu0 %v8612_v22  ;;  %1383 = vmatpush1.bf16.msra.mxu1 %v8613_v2  ;;  %v8628_v22 = vld [vmem:[#allocation34_spill] sm:$0xff]  ;;  %v8629_v2 = vld [vmem:[#allocation36_spill] sm:$0xff] }
 0x24e   :  { %1343 = vmatprep.subr.bf16.mxu0 %v8614_v59  ;;  %1384 = vmatprep.subr.bf16.mxu1 %v8615_v26  ;;  %v8630_v59 = vld [vmem:[#allocation38_spill] sm:$0xff]  ;;  %v8631_v26 = vld [vmem:[#allocation40_spill] sm:$0xff] }
 0x251   :  { %1344 = vmatpush1.bf16.msra.mxu0 %v8616_v28  ;;  %1385 = vmatpush1.bf16.msra.mxu1 %v8617_v25  ;;  %v8633_v28 = vld [vmem:[#allocation44_spill] sm:$0xff]  ;;  %v8634_v25 = vld [vmem:[#allocation46_spill] sm:$0xff] }
 0x252   :  { %1345 = vmatprep.subr.bf16.mxu0 %v8618_v30  ;;  %1386 = vmatprep.subr.bf16.mxu1 %v8619_v34  ;;  %v8635_v30 = vld [vmem:[#allocation48_spill] sm:$0xff]  ;;  %v8636_v34 = vld [vmem:[#allocation50_spill] sm:$0xff] }
 0x255   :  { %1346 = vmatpush1.bf16.msra.mxu0 %v8620_v36  ;;  %1387 = vmatpush1.bf16.msra.mxu1 %v8621_v38  ;;  %v8639_v36 = vld [vmem:[#allocation56_spill] sm:$0xff] }
 0x256   :  { %1347 = vmatprep.subr.bf16.mxu0 %v8622_v37  ;;  %1388 = vmatprep.subr.bf16.mxu1 %v8623_v40  ;;  %v6218_v38 = vld [vmem:[%s8270_s4 + $0xc] ss:$16 sps:$4 sm:$0xff]   ;;  %v6250_v40 = vld [vmem:[%s8270_s4 + $0x48] ss:$16 sps:$4 sm:$0xff]  }
 0x257   :  { %v6244_v37 = vld [vmem:[%s8270_s4 + $0x4c] ss:$16 sps:$4 sm:$0xff]  }
 0x259   :  { %1348 = vmatpush1.bf16.msra.mxu0 %v8624_v42  ;;  %1389 = vmatpush1.bf16.msra.mxu1 %v8625_v16  ;;  %v6256_v42 = vld [vmem:[%s8270_s4 + $0x6c] ss:$16 sps:$4 sm:$0xff]   ;;  %v6262_v16 = vld [vmem:[%s8270_s4 + $0x68] ss:$16 sps:$4 sm:$0xff]  }
 0x25a   :  { %4445 = vmatprep.subr.bf16.mxu1 %v8336_v17  ;;  %4425 = vmatprep.subr.bf16.mxu0 %v8336_v17 }
 0x25c   :  { %1366 = vmatmul.mubr.bf16.vlgmr.msra.gmra.mrb[24].mxu0 %v929_v58  ;;  %1407 = vmatmul.mubr.bf16.vlgmr.msra.gmra.mrb[24].mxu1 %v929_v58 }
 0x25d   :  { %4446 = vmatpush3.bf16.msra.mxu1 %v4838_v44  ;;  %4461 = vmatprep.mubr.msk.bf16.mxu1 %vm5273_vm1, %v8336_v17  ;;  %v6268_v44 = vld [vmem:[%s8270_s4 + $0x8c] ss:$16 sps:$4 sm:$0xff]  }
 0x25e   :  { %4447 = vmatprep.subr.bf16.mxu1 %v8336_v17  ;;  %4441 = vmatprep.mubr.msk.bf16.mxu0 %vm5273_vm1, %v8336_v17 }
 0x261   :  { %4448 = vmatpush3.bf16.msra.mxu1 %v4839_v4  ;;  %v6280_v4 = vld [vmem:[%s8270_s4 + $0xac] ss:$16 sps:$4 sm:$0xff]  }
 0x262   :  { %4449 = vmatprep.subr.bf16.mxu1 %v8336_v17 }
 0x265   :  { %4450 = vmatpush3.bf16.msra.mxu1 %v4840_v5  ;;  %v6286_v5 = vld [vmem:[%s8270_s4 + $0xa8] ss:$16 sps:$4 sm:$0xff]  }
 0x266   :  { %4451 = vmatprep.subr.bf16.mxu1 %v8336_v17 }
 0x269   :  { %4452 = vmatpush3.bf16.msra.mxu1 %v4841_v23  ;;  %v6292_v23 = vld [vmem:[%s8270_s4 + $0xcc] ss:$16 sps:$4 sm:$0xff]  }
 0x26a   :  { %4453 = vmatprep.subr.bf16.mxu1 %v8336_v17 }
 0x26d   :  { %4454 = vmatpush3.bf16.msra.mxu1 %v4842_v55  ;;  %v6298_v55 = vld [vmem:[%s8270_s4 + $0xc8] ss:$16 sps:$4 sm:$0xff]  }
 0x26e   :  { %4455 = vmatprep.subr.bf16.mxu1 %v8336_v17 }
 0x271   :  { %4456 = vmatpush3.bf16.msra.mxu1 %v4843_v29  ;;  %v4846_v29 = vld [vmem:[%s8274_s7 + $0x40] sm:$0xff]  }
 0x272   :  { %4457 = vmatprep.subr.bf16.mxu1 %v8336_v17  ;;  %4426 = vmatpush3.bf16.msra.mxu0 %v4846_v29 }
 0x273   :  { %4427 = vmatprep.subr.bf16.mxu0 %v8336_v17 }
 0x275   :  { %4458 = vmatpush3.bf16.msra.mxu1 %v4844_v32  ;;  %v6307_v32 = vld [vmem:[%s8270_s4 + $0xec] ss:$16 sps:$4 sm:$0xff]  }
 0x276   :  { %4459 = vmatprep.subr.bf16.mxu1 %v8336_v17 }
 0x279   :  { %4460 = vmatpush3.bf16.msra.mxu1 %v4845_v43  ;;  %v6314_v43 = vld [vmem:[%s8270_s4 + $0xe8] ss:$16 sps:$4 sm:$0xff]  }
 0x27a   :  { %1662 = vmatprep.subr.bf16.mxu1 %v8626_v57  ;;  %8640 = vst [vmem:[#allocation5_spill] sm:$0xff] %v6314_v43  ;;  %v4847_v57 = vld [vmem:[%s8274_s7 + $0x48] sm:$0xff]  }
 0x27b   :  { %4428 = vmatpush3.bf16.msra.mxu0 %v4847_v57 }
 0x27c   :  { %4462 = vmatmul.mubr.bf16.vlgmr.msra.gmra.mrb[28].mxu1 %v929_v58  ;;  %v6274_v58 = vld [vmem:[%s8270_s4 + $0x88] ss:$16 sps:$4 sm:$0xff]   ;;  %4429 = vmatprep.subr.bf16.mxu0 %v8336_v17 }
 0x27d   :  { %1663 = vmatpush1.bf16.msra.mxu1 %v8627_v20  ;;  %1694 = vmatprep.mubr.bf16.mxu1 %v8554_v61  ;;  %v6323_v20 = vld [vmem:[%s8271_s5 + $0xc] ss:$16 sps:$4 sm:$0xff]  }
 0x27e   :  { %1664 = vmatprep.subr.bf16.mxu1 %v8628_v22  ;;  %8641 = vst [vmem:[#allocation6_spill] sm:$0xff] %v6323_v20  ;;  %v4848_v22 = vld [vmem:[%s8274_s7 + $0x50] sm:$0xff]  }
 0x27f   :  { %4430 = vmatpush3.bf16.msra.mxu0 %v4848_v22 }
 0x280   :  { %4431 = vmatprep.subr.bf16.mxu0 %v8336_v17 }
 0x281   :  { %1665 = vmatpush1.bf16.msra.mxu1 %v8629_v2  ;;  %v4849_v2 = vld [vmem:[%s8274_s7 + $0x58] sm:$0xff]  }
 0x282   :  { %1666 = vmatprep.subr.bf16.mxu1 %v8630_v59  ;;  %v4850_v59 = vld [vmem:[%s8274_s7 + $0x60] sm:$0xff]  }
 0x283   :  { %4432 = vmatpush3.bf16.msra.mxu0 %v4849_v2 }
 0x284   :  { %4433 = vmatprep.subr.bf16.mxu0 %v8336_v17 }
 0x285   :  { %1667 = vmatpush1.bf16.msra.mxu1 %v8631_v26  ;;  %v4851_v26 = vld [vmem:[%s8274_s7 + $0x68] sm:$0xff]  }
 0x286   :  { %1668 = vmatprep.subr.bf16.mxu1 %v8632_v3  ;;  %v4852_v3 = vld [vmem:[%s8274_s7 + $0x70] sm:$0xff]  }
 0x287   :  { %4434 = vmatpush3.bf16.msra.mxu0 %v4850_v59 }
 0x288   :  { %4435 = vmatprep.subr.bf16.mxu0 %v8336_v17 }
 0x289   :  { %1669 = vmatpush1.bf16.msra.mxu1 %v8633_v28  ;;  %v4853_v28 = vld [vmem:[%s8274_s7 + $0x78] sm:$0xff]  }
 0x28a   :  { %1670 = vmatprep.subr.bf16.mxu1 %v8634_v25  ;;  %v8642_v25 = vld [vmem:[#allocation29_spill] sm:$0xff] }
 0x28b   :  { %4436 = vmatpush3.bf16.msra.mxu0 %v4851_v26 }
 0x28c   :  { %4437 = vmatprep.subr.bf16.mxu0 %v8336_v17 }
 0x28d   :  { %1671 = vmatpush1.bf16.msra.mxu1 %v8635_v30 }
 0x28e   :  { %1672 = vmatprep.subr.bf16.mxu1 %v8636_v34 }
 0x28f   :  { %4438 = vmatpush3.bf16.msra.mxu0 %v4852_v3 }
 0x290   :  { %4439 = vmatprep.subr.bf16.mxu0 %v8336_v17 }
 0x291   :  { %1673 = vmatpush1.bf16.msra.mxu1 %v8637_v24 }
 0x292   :  { %1674 = vmatprep.subr.bf16.mxu1 %v8638_v33 }
 0x293   :  { %4440 = vmatpush3.bf16.msra.mxu0 %v4853_v28 }
 0x294   :  { %1621 = vmatprep.subr.bf16.mxu0 %v8642_v25 }
 0x295   :  { %1675 = vmatpush1.bf16.msra.mxu1 %v8639_v36 }
 0x296   :  { %1676 = vmatprep.subr.bf16.mxu1 %v5974_v45  ;;  %v6232_v45 = vld [vmem:[%s8270_s4 + $0x2c] ss:$16 sps:$4 sm:$0xff]  }
 0x299   :  { %1677 = vmatpush1.bf16.msra.mxu1 %v5986_v62  ;;  %v6238_v62 = vld [vmem:[%s8270_s4 + $0x28] ss:$16 sps:$4 sm:$0xff]  }
 0x29a   :  { %1784 = vmatprep.subr.bf16.mxu1 %v6218_v38 }
 0x29c   :  { %1695 = vmatmul.mubr.bf16.vlgmr.msra.gmra.mrb[32].mxu1 %v6122_v18 }
 0x29d   :  { %1785 = vmatpush1.bf16.msra.mxu1 %v6225_v39  ;;  %1816 = vmatprep.mubr.bf16.mxu1 %v8554_v61 }
 0x29e   :  { %1786 = vmatprep.subr.bf16.mxu1 %v6232_v45 }
 0x2a1   :  { %1787 = vmatpush1.bf16.msra.mxu1 %v6238_v62 }
 0x2a2   :  { %1788 = vmatprep.subr.bf16.mxu1 %v6244_v37 }
 0x2a5   :  { %1789 = vmatpush1.bf16.msra.mxu1 %v6250_v40 }
 0x2a6   :  { %1790 = vmatprep.subr.bf16.mxu1 %v6256_v42 }
 0x2a9   :  { %1791 = vmatpush1.bf16.msra.mxu1 %v6262_v16 }
 0x2aa   :  { %1792 = vmatprep.subr.bf16.mxu1 %v6268_v44 }
 0x2ad   :  { %1793 = vmatpush1.bf16.msra.mxu1 %v6274_v58 }
 0x2ae   :  { %1794 = vmatprep.subr.bf16.mxu1 %v6280_v4 }
 0x2b1   :  { %1795 = vmatpush1.bf16.msra.mxu1 %v6286_v5 }
 0x2b2   :  { %1796 = vmatprep.subr.bf16.mxu1 %v6292_v23 }
 0x2b5   :  { %1797 = vmatpush1.bf16.msra.mxu1 %v6298_v55 }
 0x2b6   :  { %1798 = vmatprep.subr.bf16.mxu1 %v6307_v32 }
 0x2b9   :  { %1799 = vmatpush1.bf16.msra.mxu1 %v6314_v43 }
 0x2ba   :  { %1866 = vmatprep.subr.bf16.mxu1 %v6323_v20 }
 0x32f   :  { %v1367_v30 = vpop.f32.mrb[24].mxu0  ;;  %v1408_v34 = vpop.f32.mrb[24].mxu1 }
 0x330   :  { %v4589_v24 = vadd.f32 %v1367_v30, %v6086_v19  ;;  %v1369_v33 = vpop.f32.mrb[25].mxu0  ;;  %v1410_v36 = vpop.f32.mrb[25].mxu1  ;;  %v4591_v17 = vadd.f32 %v1408_v34, %v6097_v27 }
 0x331   :  { %v4590_v29 = vadd.f32 %v1369_v33, %v6091_v21  ;;  %v1371_v57 = vpop.f32.mrb[26].mxu0  ;;  %v1412_v22 = vpop.f32.mrb[26].mxu1  ;;  %v4592_v28 = vadd.f32 %v1410_v36, %v6120_v41 }
 0x332   :  { %v1419_v2 = vmul.f32 0.5, %v4589_v24  ;;  %v1372_v59 = vpop.f32.mrb[27].mxu0  ;;  %v1413_v26 = vpop.f32.mrb[27].mxu1 }
 0x333   :  { %v1423_v3 = vmul.f32 0.5, %v4590_v29  ;;  %v1428_v25 = vmul.f32 0.5, %v4592_v28 }
 0x334   :  { %4932 = vtanh.f32 %v1419_v2 }
 0x335   :  { %4934 = vtanh.f32 %v1423_v3 }
 0x336   :  { %4936 = vtanh.f32 %v4591_v17 }
 0x337   :  { %4938 = vtanh.f32 %v1428_v25 }
 0x33e   :  { %v4933_v13 = vpop.eup %4932 }
 0x33f   :  { %v4935_v30 = vpop.eup %4934  ;;  %v1421_v15 = vmul.f32 0.5, %v4933_v13 }
 0x340   :  { %v1425_v12 = vmul.f32 0.5, %v4935_v30  ;;  %v4937_v57 = vpop.eup %4936  ;;  %v8645_v30 = vld [vmem:[#allocation35_spill] sm:$0xff] }
 0x341   :  { %v1422_v33 = vadd.f32 0.5, %v1421_v15  ;;  %v4939_v34 = vpop.eup %4938 }
 0x342   :  { %v1426_v22 = vadd.f32 0.5, %v1425_v12  ;;  %v1430_v17 = vmul.f32 0.5, %v4939_v34  ;;  %v8643_v12 = vld [vmem:[#allocation31_spill] sm:$0xff] }
 0x343   :  { %v1433_v24 = vmul.f32 %v4937_v57, %v1422_v33  ;;  %v8646_v33 = vld [vmem:[#allocation37_spill] sm:$0xff]  ;;  %v8647_v57 = vld [vmem:[#allocation39_spill] sm:$0xff] }
 0x344   :  { %v1432_v59 = vmul.f32 %v1426_v22, %v6103_v31  ;;  %v1431_v26 = vadd.f32 0.5, %v1430_v17  ;;  %v8644_v31 = vld [vmem:[#allocation33_spill] sm:$0xff]  ;;  %v8651_v34 = vld [vmem:[#allocation47_spill] sm:$0xff] }
 0x345   :  { %v8648_v22 = vld [vmem:[#allocation41_spill] sm:$0xff] }
 0x346   :  { %v6356_v29 = vadd.f32 %v1433_v24, %v1432_v59  ;;  %v8649_v24 = vld [vmem:[#allocation43_spill] sm:$0xff]  ;;  %v8650_v59 = vld [vmem:[#allocation45_spill] sm:$0xff] }
 0x347   :  { %v8652_v17 = vld [vmem:[#allocation49_spill] sm:$0xff] }
 0x348   :  { %4940 = vtanh.f32 %v6356_v29 }
 0x34f   :  { %v6359_v2 = vpop.f32.mrb[28].mxu1 }
 0x350   :  { %v4463_v36 = vpop.f32.mrb[29].mxu1 }
 0x351   :  { %v1611_v3 = vpop.f32.mrb[30].mxu1  ;;  %v8653_v36 = vld [vmem:[#allocation51_spill] sm:$0xff] }
 0x352   :  { %v4941_v13 = vpop.eup %4940  ;;  %v4464_v28 = vpop.f32.mrb[31].mxu1  ;;  %v238_v3 = vadd.f32 %v5990_v46, %v5588_v52  ;;  %v6413_v46 = vld [vmem:[%s8270_s4 + $0x44] ss:$16 sps:$4 sm:$0xff]  }
 0x353   :  { %v1436_v25 = vmul.f32 %v4941_v13, %v1431_v26  ;;  %v8654_v26 = vld [vmem:[#allocation53_spill] sm:$0xff]  ;;  %v240_v13 = vadd.f32 %v5996_v48, %v5600_v0  ;;  %8660 = vst [vmem:[#allocation11_spill] sm:$0xff] %v6413_v46 }
 0x354   :  { %v6394_v48 = vld [vmem:[%s8270_s4] ss:$16 sps:$4 sm:$0xff]  }
 0x355   :  { %v6361_v15 = vpack.c.bf16 %v1436_v25, %v1436_v25  ;;  %v8655_v25 = vld [vmem:[#allocation55_spill] sm:$0xff]  ;;  %8657 = vst [vmem:[#allocation8_spill] sm:$0xff] %v6394_v48 }
 0x357   :  { %4442 = vmatmul.mubr.bf16.vlgmr.msra.gmra.mrb[28].mxu0 %v6361_v15 }
 0x358   :  { %1622 = vmatpush1.bf16.msra.mxu0 %v8643_v12  ;;  %1653 = vmatprep.mubr.bf16.mxu0 %v8554_v61 }
 0x359   :  { %1623 = vmatprep.subr.bf16.mxu0 %v8644_v31 }
 0x35c   :  { %1624 = vmatpush1.bf16.msra.mxu0 %v8645_v30 }
 0x35d   :  { %1625 = vmatprep.subr.bf16.mxu0 %v8646_v33 }
 0x360   :  { %1626 = vmatpush1.bf16.msra.mxu0 %v8647_v57 }
 0x361   :  { %1627 = vmatprep.subr.bf16.mxu0 %v8648_v22  ;;  %v6387_v22 = vld [vmem:[%s8270_s4 + $0x4] ss:$16 sps:$4 sm:$0xff]  }
 0x362   :  { %8656 = vst [vmem:[#allocation7_spill] sm:$0xff] %v6387_v22 }
 0x364   :  { %1628 = vmatpush1.bf16.msra.mxu0 %v8649_v24  ;;  %v6425_v24 = vld [vmem:[%s8270_s4 + $0x64] ss:$16 sps:$4 sm:$0xff]  }
 0x365   :  { %1629 = vmatprep.subr.bf16.mxu0 %v8650_v59  ;;  %8662 = vst [vmem:[#allocation13_spill] sm:$0xff] %v6425_v24  ;;  %v6431_v59 = vld [vmem:[%s8270_s4 + $0x60] ss:$16 sps:$4 sm:$0xff]  }
 0x366   :  { %8663 = vst [vmem:[#allocation14_spill] sm:$0xff] %v6431_v59 }
 0x368   :  { %1630 = vmatpush1.bf16.msra.mxu0 %v8651_v34  ;;  %v6437_v34 = vld [vmem:[%s8270_s4 + $0x84] ss:$16 sps:$4 sm:$0xff]  }
 0x369   :  { %1631 = vmatprep.subr.bf16.mxu0 %v8652_v17  ;;  %8664 = vst [vmem:[#allocation15_spill] sm:$0xff] %v6437_v34  ;;  %v6443_v17 = vld [vmem:[%s8270_s4 + $0x80] ss:$16 sps:$4 sm:$0xff]  }
 0x36a   :  { %8665 = vst [vmem:[#allocation16_spill] sm:$0xff] %v6443_v17 }
 0x36c   :  { %1632 = vmatpush1.bf16.msra.mxu0 %v8653_v36  ;;  %v6449_v36 = vld [vmem:[%s8270_s4 + $0xa4] ss:$16 sps:$4 sm:$0xff]  }
 0x36d   :  { %1633 = vmatprep.subr.bf16.mxu0 %v8654_v26  ;;  %8666 = vst [vmem:[#allocation17_spill] sm:$0xff] %v6449_v36  ;;  %v6455_v26 = vld [vmem:[%s8270_s4 + $0xa0] ss:$16 sps:$4 sm:$0xff]  }
 0x36e   :  { %8667 = vst [vmem:[#allocation18_spill] sm:$0xff] %v6455_v26 }
 0x36f   :  { %v1696_v28 = vpop.f32.mrb[32].mxu1 }
 0x370   :  { %1634 = vmatpush1.bf16.msra.mxu0 %v8655_v25  ;;  %v1705_v12 = vadd.f32 %v1696_v28, %v238_v3  ;;  %v1698_v31 = vpop.f32.mrb[33].mxu1  ;;  %v6461_v3 = vld [vmem:[%s8270_s4 + $0xc4] ss:$16 sps:$4 sm:$0xff]   ;;  %v6479_v25 = vld [vmem:[%s8270_s4 + $0xe0] ss:$16 sps:$4 sm:$0xff]  }
 0x371   :  { %v1706_v30 = vadd.f32 %v1698_v31, %v240_v13  ;;  %v1700_v33 = vpop.f32.mrb[34].mxu1  ;;  %1635 = vmatprep.subr.bf16.mxu0 %v5969_v47  ;;  %v6407_v47 = vld [vmem:[%s8270_s4 + $0x20] ss:$16 sps:$4 sm:$0xff]   ;;  %8668 = vst [vmem:[#allocation19_spill] sm:$0xff] %v6461_v3  ;;  %v6473_v28 = vld [vmem:[%s8270_s4 + $0xe4] ss:$16 sps:$4 sm:$0xff]  }
 0x372   :  { %v1701_v57 = vpop.f32.mrb[35].mxu1  ;;  %8659 = vst [vmem:[#allocation10_spill] sm:$0xff] %v6407_v47  ;;  %v6467_v13 = vld [vmem:[%s8270_s4 + $0xc0] ss:$16 sps:$4 sm:$0xff]   ;;  %8670 = vst [vmem:[#allocation21_spill] sm:$0xff] %v6473_v28 }
 0x373   :  { %8669 = vst [vmem:[#allocation20_spill] sm:$0xff] %v6467_v13  ;;  %8671 = vst [vmem:[#allocation22_spill] sm:$0xff] %v6479_v25  ;;  %v6485_v31 = vld [vmem:[%s8271_s5 + $0x4] ss:$16 sps:$4 sm:$0xff]  }
 0x374   :  { %1636 = vmatpush1.bf16.msra.mxu0 %v5981_v1  ;;  %v6401_v1 = vld [vmem:[%s8270_s4 + $0x24] ss:$16 sps:$4 sm:$0xff]   ;;  %8672 = vst [vmem:[#allocation23_spill] sm:$0xff] %v6485_v31 }
 0x375   :  { %1743 = vmatprep.subr.bf16.mxu0 %v6387_v22  ;;  %8658 = vst [vmem:[#allocation9_spill] sm:$0xff] %v6401_v1 }
 0x377   :  { %1654 = vmatmul.mubr.bf16.vlgmr.msra.gmra.mrb[32].mxu0 %v6122_v18  ;;  %v6419_v18 = vld [vmem:[%s8270_s4 + $0x40] ss:$16 sps:$4 sm:$0xff]  }
 0x378   :  { %1744 = vmatpush1.bf16.msra.mxu0 %v6394_v48  ;;  %1775 = vmatprep.mubr.bf16.mxu0 %v8554_v61  ;;  %8661 = vst [vmem:[#allocation12_spill] sm:$0xff] %v6419_v18 }
 0x379   :  { %1745 = vmatprep.subr.bf16.mxu0 %v6401_v1 }
 0x37c   :  { %1746 = vmatpush1.bf16.msra.mxu0 %v6407_v47 }
 0x37d   :  { %1747 = vmatprep.subr.bf16.mxu0 %v6413_v46 }
 0x380   :  { %1748 = vmatpush1.bf16.msra.mxu0 %v6419_v18 }
 0x381   :  { %1749 = vmatprep.subr.bf16.mxu0 %v6425_v24 }
 0x384   :  { %1750 = vmatpush1.bf16.msra.mxu0 %v6431_v59 }
 0x385   :  { %1751 = vmatprep.subr.bf16.mxu0 %v6437_v34 }
 0x388   :  { %1752 = vmatpush1.bf16.msra.mxu0 %v6443_v17 }
 0x389   :  { %1753 = vmatprep.subr.bf16.mxu0 %v6449_v36 }
 0x38c   :  { %1754 = vmatpush1.bf16.msra.mxu0 %v6455_v26 }
 0x38d   :  { %1755 = vmatprep.subr.bf16.mxu0 %v6461_v3 }
 0x390   :  { %1756 = vmatpush1.bf16.msra.mxu0 %v6467_v13 }
 0x391   :  { %1757 = vmatprep.subr.bf16.mxu0 %v6473_v28 }
 0x394   :  { %1758 = vmatpush1.bf16.msra.mxu0 %v6479_v25 }
 0x395   :  { %1825 = vmatprep.subr.bf16.mxu0 %v6485_v31 }
 0x42a   :  { %v1520_v33 = vpop.f32.mrb[28].mxu0 }
 0x42b   :  { %v6489_v57 = vadd.f32 %v6359_v2, %v1520_v33  ;;  %v4443_v7 = vpop.f32.mrb[29].mxu0 }
 0x42c   :  { %v1523_v10 = vpop.f32.mrb[30].mxu0  ;;  %v1716_v7 = vmul.f32 0.5, %v1706_v30  ;;  %v6538_v30 = vld [vmem:[%s8271_s5 + $0x28] ss:$16 sps:$4 sm:$0xff]  }
 0x42d   :  { %8673 = vst [vmem:[#allocation24_spill] sm:$0xff] %v6489_v57  ;;  %v4444_v11 = vpop.f32.mrb[31].mxu0 }
 0x44a   :  { %v1655_v6 = vpop.f32.mrb[32].mxu0 }
 0x44b   :  { %v1703_v54 = vadd.f32 %v1655_v6, %v165_v9  ;;  %v1657_v56 = vpop.f32.mrb[33].mxu0  ;;  %v6506_v9 = vld [vmem:[%s8271_s5] ss:$16 sps:$4 sm:$0xff]  }
 0x44c   :  { %v1704_v51 = vadd.f32 %v1657_v56, %v167_v14  ;;  %v1659_v63 = vpop.f32.mrb[34].mxu0 }
 0x44d   :  { %v1707_v0 = vmul.f32 0.5, %v1703_v54  ;;  %v1660_v52 = vpop.f32.mrb[35].mxu0 }
 0x44e   :  { %v1711_v20 = vmul.f32 0.5, %v1704_v51 }
 0x44f   :  { %4942 = vtanh.f32 %v1707_v0 }
 0x450   :  { %4944 = vtanh.f32 %v1711_v20  ;;  %v6524_v20 = vld [vmem:[%s8271_s5 + $0x2c] ss:$16 sps:$4 sm:$0xff]  }
 0x451   :  { %4946 = vtanh.f32 %v1705_v12  ;;  %v6532_v12 = vld [vmem:[%s8271_s5 + $0x20] ss:$16 sps:$4 sm:$0xff]  }
 0x452   :  { %4948 = vtanh.f32 %v1716_v7  ;;  %v6550_v7 = vld [vmem:[%s8271_s5 + $0x4c] ss:$16 sps:$4 sm:$0xff]  }
 0x459   :  { %v4943_v10 = vpop.eup %4942 }
 0x45a   :  { %v4945_v11 = vpop.eup %4944  ;;  %v1709_v2 = vmul.f32 0.5, %v4943_v10  ;;  %v6556_v10 = vld [vmem:[%s8271_s5 + $0x40] ss:$16 sps:$4 sm:$0xff]  }
 0x45b   :  { %v1713_v60 = vmul.f32 0.5, %v4945_v11  ;;  %v4947_v57 = vpop.eup %4946  ;;  %v6562_v11 = vld [vmem:[%s8271_s5 + $0x48] ss:$16 sps:$4 sm:$0xff]  }
 0x45c   :  { %v1710_v33 = vadd.f32 0.5, %v1709_v2  ;;  %v4949_v52 = vpop.eup %4948  ;;  %v6568_v2 = vld [vmem:[%s8271_s5 + $0x64] ss:$16 sps:$4 sm:$0xff]  }
 0x45d   :  { %v1714_v8 = vadd.f32 0.5, %v1713_v60  ;;  %v1718_v0 = vmul.f32 0.5, %v4949_v52  ;;  %v6574_v60 = vld [vmem:[%s8271_s5 + $0x6c] ss:$16 sps:$4 sm:$0xff]  }
 0x45e   :  { %v1721_v43 = vmul.f32 %v4947_v57, %v1710_v33  ;;  %v6544_v57 = vld [vmem:[%s8271_s5 + $0x44] ss:$16 sps:$4 sm:$0xff]   ;;  %v6580_v33 = vld [vmem:[%s8271_s5 + $0x60] ss:$16 sps:$4 sm:$0xff]   ;;  %v6598_v52 = vld [vmem:[%s8271_s5 + $0x8c] ss:$16 sps:$4 sm:$0xff]  }
 0x45f   :  { %v1720_v6 = vmul.f32 %v1714_v8, %v6114_v35  ;;  %v1719_v51 = vadd.f32 0.5, %v1718_v0  ;;  %v6512_v35 = vld [vmem:[%s8271_s5 + $0x8] ss:$16 sps:$4 sm:$0xff]   ;;  %v6604_v0 = vld [vmem:[%s8271_s5 + $0x80] ss:$16 sps:$4 sm:$0xff]  }
 0x460   :  { %v6586_v8 = vld [vmem:[%s8271_s5 + $0x68] ss:$16 sps:$4 sm:$0xff]   ;;  %8675 = vst [vmem:[#allocation25_spill] sm:$0xff] %v6604_v0 }
 0x461   :  { %v6496_v56 = vadd.f32 %v1721_v43, %v1720_v6  ;;  %v6518_v43 = vld [vmem:[%s8271_s5 + $0x24] ss:$16 sps:$4 sm:$0xff]  }
 0x462   :  { %v6592_v6 = vld [vmem:[%s8271_s5 + $0x84] ss:$16 sps:$4 sm:$0xff]  }
 0x463   :  { %4950 = vtanh.f32 %v6496_v56 }
 0x46d   :  { %v4951_v54 = vpop.eup %4950 }
 0x46e   :  { %v1724_v63 = vmul.f32 %v4951_v54, %v1719_v51  ;;  %v6610_v51 = vld [vmem:[%s8271_s5 + $0x88] ss:$16 sps:$4 sm:$0xff]   ;;  %v6616_v54 = vld [vmem:[%s8271_s5 + $0xa4] ss:$16 sps:$4 sm:$0xff]  }
 0x46f   :  { %8676 = vst [vmem:[#allocation26_spill] sm:$0xff] %v6610_v51  ;;  %8677 = vst [vmem:[#allocation27_spill] sm:$0xff] %v6616_v54 }
 0x470   :  { %v6499_v14 = vpack.c.bf16 %v1724_v63, %v1724_v63  ;;  %v6622_v63 = vld [vmem:[%s8271_s5 + $0xac] ss:$16 sps:$4 sm:$0xff]  }
 0x471   :  { %8678 = vst [vmem:[#allocation28_spill] sm:$0xff] %v6622_v63 }
 0x472   :  { %1776 = vmatmul.mubr.bf16.vlgmr.msra.gmra.mrb[36].mxu0 %v6499_v14  ;;  %1817 = vmatmul.mubr.bf16.vlgmr.msra.gmra.mrb[36].mxu1 %v6499_v14 }
 0x473   :  { %1826 = vmatpush1.bf16.msra.mxu0 %v6506_v9  ;;  %1867 = vmatpush1.bf16.msra.mxu1 %v6512_v35 }
 0x474   :  { %1827 = vmatprep.subr.bf16.mxu0 %v6518_v43  ;;  %1868 = vmatprep.subr.bf16.mxu1 %v6524_v20 }
 0x475   :  { %1857 = vmatprep.mubr.bf16.mxu0 %v8554_v61  ;;  %1898 = vmatprep.mubr.bf16.mxu1 %v8554_v61 }
 0x477   :  { %1828 = vmatpush1.bf16.msra.mxu0 %v6532_v12  ;;  %1869 = vmatpush1.bf16.msra.mxu1 %v6538_v30 }
 0x478   :  { %1829 = vmatprep.subr.bf16.mxu0 %v6544_v57  ;;  %1870 = vmatprep.subr.bf16.mxu1 %v6550_v7 }
 0x47b   :  { %1830 = vmatpush1.bf16.msra.mxu0 %v6556_v10  ;;  %1871 = vmatpush1.bf16.msra.mxu1 %v6562_v11 }
 0x47c   :  { %1831 = vmatprep.subr.bf16.mxu0 %v6568_v2  ;;  %1872 = vmatprep.subr.bf16.mxu1 %v6574_v60 }
 0x47f   :  { %1832 = vmatpush1.bf16.msra.mxu0 %v6580_v33  ;;  %1873 = vmatpush1.bf16.msra.mxu1 %v6586_v8 }
 0x480   :  { %1833 = vmatprep.subr.bf16.mxu0 %v6592_v6  ;;  %1874 = vmatprep.subr.bf16.mxu1 %v6598_v52 }
 0x483   :  { %1834 = vmatpush1.bf16.msra.mxu0 %v6604_v0  ;;  %1875 = vmatpush1.bf16.msra.mxu1 %v6610_v51  ;;  %v6628_v0 = vld [vmem:[%s8271_s5 + $0xa0] ss:$16 sps:$4 sm:$0xff]   ;;  %v6634_v51 = vld [vmem:[%s8271_s5 + $0xa8] ss:$16 sps:$4 sm:$0xff]  }
 0x484   :  { %1835 = vmatprep.subr.bf16.mxu0 %v6616_v54  ;;  %1876 = vmatprep.subr.bf16.mxu1 %v6622_v63  ;;  %8679 = vst [vmem:[#allocation30_spill] sm:$0xff] %v6628_v0  ;;  %8680 = vst [vmem:[#allocation32_spill] sm:$0xff] %v6634_v51  ;;  %v6640_v54 = vld [vmem:[%s8271_s5 + $0xc4] ss:$16 sps:$4 sm:$0xff]   ;;  %v6646_v63 = vld [vmem:[%s8271_s5 + $0xcc] ss:$16 sps:$4 sm:$0xff]  }
 0x485   :  { %8681 = vst [vmem:[#allocation34_spill] sm:$0xff] %v6640_v54  ;;  %8682 = vst [vmem:[#allocation36_spill] sm:$0xff] %v6646_v63 }
 0x487   :  { %1836 = vmatpush1.bf16.msra.mxu0 %v6628_v0  ;;  %1877 = vmatpush1.bf16.msra.mxu1 %v6634_v51  ;;  %v6652_v0 = vld [vmem:[%s8271_s5 + $0xc0] ss:$16 sps:$4 sm:$0xff]   ;;  %v6658_v51 = vld [vmem:[%s8271_s5 + $0xc8] ss:$16 sps:$4 sm:$0xff]  }
 0x488   :  { %1837 = vmatprep.subr.bf16.mxu0 %v6640_v54  ;;  %1878 = vmatprep.subr.bf16.mxu1 %v6646_v63  ;;  %8683 = vst [vmem:[#allocation38_spill] sm:$0xff] %v6652_v0  ;;  %8684 = vst [vmem:[#allocation40_spill] sm:$0xff] %v6658_v51  ;;  %v6664_v54 = vld [vmem:[%s8271_s5 + $0xe4] ss:$16 sps:$4 sm:$0xff]   ;;  %v6670_v63 = vld [vmem:[%s8271_s5 + $0xec] ss:$16 sps:$4 sm:$0xff]  }
 0x489   :  { %8685 = vst [vmem:[#allocation42_spill] sm:$0xff] %v6664_v54  ;;  %8686 = vst [vmem:[#allocation44_spill] sm:$0xff] %v6670_v63 }
 0x48b   :  { %1838 = vmatpush1.bf16.msra.mxu0 %v6652_v0  ;;  %1879 = vmatpush1.bf16.msra.mxu1 %v6658_v51  ;;  %v6676_v0 = vld [vmem:[%s8271_s5 + $0xe0] ss:$16 sps:$4 sm:$0xff]   ;;  %v6682_v51 = vld [vmem:[%s8271_s5 + $0xe8] ss:$16 sps:$4 sm:$0xff]  }
 0x48c   :  { %1839 = vmatprep.subr.bf16.mxu0 %v6664_v54  ;;  %1880 = vmatprep.subr.bf16.mxu1 %v6670_v63  ;;  %8687 = vst [vmem:[#allocation46_spill] sm:$0xff] %v6676_v0  ;;  %8688 = vst [vmem:[#allocation48_spill] sm:$0xff] %v6682_v51  ;;  %v6688_v54 = vld [vmem:[%s8272_s2 + $0x4] ss:$16 sps:$4 sm:$0xff]   ;;  %v8690_v63 = vmov 0.0  }
 0x48d   :  { %8689 = vst [vmem:[#allocation50_spill] sm:$0xff] %v6688_v54 }
 0x48f   :  { %1840 = vmatpush1.bf16.msra.mxu0 %v6676_v0  ;;  %1881 = vmatpush1.bf16.msra.mxu1 %v6682_v51  ;;  %v6697_v0 = vld [vmem:[%s8272_s2] ss:$16 sps:$4 sm:$0xff]   ;;  %v6704_v51 = vld [vmem:[%s8272_s2 + $0x24] ss:$16 sps:$4 sm:$0xff]  }
 0x490   :  { %2026 = vmatprep.subr.bf16.mxu1 %v6688_v54  ;;  %4465 = vmatprep.subr.bf16.mxu0 %v8690_v63  ;;  %8691 = vst [vmem:[#allocation52_spill] sm:$0xff] %v6697_v0  ;;  %8692 = vst [vmem:[#allocation54_spill] sm:$0xff] %v6704_v51  ;;  %v6730_v54 = vld [vmem:[%s8272_s2 + $0x64] ss:$16 sps:$4 sm:$0xff]  }
 0x491   :  { %8696 = vst [vmem:[#allocation33_spill] sm:$0xff] %v6730_v54 }
 0x492   :  { %1858 = vmatmul.mubr.bf16.vlgmr.msra.gmra.mrb[36].mxu0 %v6361_v15  ;;  %1899 = vmatmul.mubr.bf16.vlgmr.msra.gmra.mrb[36].mxu1 %v6361_v15  ;;  %v6712_v15 = vld [vmem:[%s8272_s2 + $0x20] ss:$16 sps:$4 sm:$0xff]  }
 0x493   :  { %2027 = vmatpush1.bf16.msra.mxu1 %v6697_v0  ;;  %2058 = vmatprep.mubr.bf16.mxu1 %v8554_v61  ;;  %8693 = vst [vmem:[#allocation56_spill] sm:$0xff] %v6712_v15  ;;  %v6718_v0 = vld [vmem:[%s8272_s2 + $0x44] ss:$16 sps:$4 sm:$0xff]  }
 0x494   :  { %2028 = vmatprep.subr.bf16.mxu1 %v6704_v51  ;;  %4481 = vmatprep.mubr.msk.bf16.mxu0 %vm5273_vm1, %v8690_v63  ;;  %8694 = vst [vmem:[#allocation29_spill] sm:$0xff] %v6718_v0  ;;  %v6724_v51 = vld [vmem:[%s8272_s2 + $0x40] ss:$16 sps:$4 sm:$0xff]  }
 0x495   :  { %8695 = vst [vmem:[#allocation31_spill] sm:$0xff] %v6724_v51 }
 0x497   :  { %2029 = vmatpush1.bf16.msra.mxu1 %v6712_v15  ;;  %v6736_v15 = vld [vmem:[%s8272_s2 + $0x60] ss:$16 sps:$4 sm:$0xff]  }
 0x498   :  { %2030 = vmatprep.subr.bf16.mxu1 %v6718_v0  ;;  %8697 = vst [vmem:[#allocation35_spill] sm:$0xff] %v6736_v15  ;;  %v6742_v0 = vld [vmem:[%s8272_s2 + $0x84] ss:$16 sps:$4 sm:$0xff]  }
 0x499   :  { %8698 = vst [vmem:[#allocation37_spill] sm:$0xff] %v6742_v0 }
 0x49b   :  { %2031 = vmatpush1.bf16.msra.mxu1 %v6724_v51  ;;  %v6748_v51 = vld [vmem:[%s8272_s2 + $0x80] ss:$16 sps:$4 sm:$0xff]  }
 0x49c   :  { %2032 = vmatprep.subr.bf16.mxu1 %v6730_v54  ;;  %8699 = vst [vmem:[#allocation39_spill] sm:$0xff] %v6748_v51  ;;  %v6754_v54 = vld [vmem:[%s8272_s2 + $0xa4] ss:$16 sps:$4 sm:$0xff]  }
 0x49d   :  { %8700 = vst [vmem:[#allocation41_spill] sm:$0xff] %v6754_v54 }
 0x49f   :  { %2033 = vmatpush1.bf16.msra.mxu1 %v6736_v15  ;;  %v6760_v15 = vld [vmem:[%s8272_s2 + $0xa0] ss:$16 sps:$4 sm:$0xff]  }
 0x4a0   :  { %2034 = vmatprep.subr.bf16.mxu1 %v6742_v0  ;;  %8701 = vst [vmem:[#allocation43_spill] sm:$0xff] %v6760_v15  ;;  %v6766_v0 = vld [vmem:[%s8272_s2 + $0xc4] ss:$16 sps:$4 sm:$0xff]  }
 0x4a1   :  { %8702 = vst [vmem:[#allocation45_spill] sm:$0xff] %v6766_v0 }
 0x4a3   :  { %2035 = vmatpush1.bf16.msra.mxu1 %v6748_v51  ;;  %v6772_v51 = vld [vmem:[%s8272_s2 + $0xc0] ss:$16 sps:$4 sm:$0xff]  }
 0x4a4   :  { %2036 = vmatprep.subr.bf16.mxu1 %v6754_v54  ;;  %8703 = vst [vmem:[#allocation47_spill] sm:$0xff] %v6772_v51  ;;  %v6778_v54 = vld [vmem:[%s8272_s2 + $0xe4] ss:$16 sps:$4 sm:$0xff]  }
 0x4a5   :  { %8704 = vst [vmem:[#allocation49_spill] sm:$0xff] %v6778_v54 }
 0x4a7   :  { %2037 = vmatpush1.bf16.msra.mxu1 %v6760_v15  ;;  %v6784_v15 = vld [vmem:[%s8272_s2 + $0xe0] ss:$16 sps:$4 sm:$0xff]  }
 0x4a8   :  { %2038 = vmatprep.subr.bf16.mxu1 %v6766_v0  ;;  %8705 = vst [vmem:[#allocation51_spill] sm:$0xff] %v6784_v15 }
 0x4ab   :  { %2039 = vmatpush1.bf16.msra.mxu1 %v6772_v51 }
 0x4ac   :  { %2040 = vmatprep.subr.bf16.mxu1 %v6778_v54 }
 0x4af   :  { %2041 = vmatpush1.bf16.msra.mxu1 %v6784_v15 }
 0x4b0   :  { %2148 = vmatprep.subr.bf16.mxu1 %v6387_v22 }
 0x4b2   :  { %2059 = vmatmul.mubr.bf16.vlgmr.msra.gmra.mrb[40].mxu1 %v6499_v14 }
 0x4b3   :  { %2149 = vmatpush1.bf16.msra.mxu1 %v6394_v48  ;;  %2180 = vmatprep.mubr.bf16.mxu1 %v8554_v61 }
 0x4b4   :  { %2150 = vmatprep.subr.bf16.mxu1 %v6401_v1 }
 0x4b7   :  { %2151 = vmatpush1.bf16.msra.mxu1 %v6407_v47 }
 0x4b8   :  { %2152 = vmatprep.subr.bf16.mxu1 %v6413_v46 }
 0x4bb   :  { %2153 = vmatpush1.bf16.msra.mxu1 %v6419_v18 }
 0x4bc   :  { %2154 = vmatprep.subr.bf16.mxu1 %v6425_v24 }
 0x4bf   :  { %2155 = vmatpush1.bf16.msra.mxu1 %v6431_v59 }
 0x4c0   :  { %2156 = vmatprep.subr.bf16.mxu1 %v6437_v34  ;;  %v4854_v34 = vld [vmem:[%s8274_s7 + $0x80] sm:$0xff]  }
 0x4c1   :  { %4466 = vmatpush3.bf16.msra.mxu0 %v4854_v34  ;;  %v4857_v34 = vld [vmem:[%s8274_s7 + $0x98] sm:$0xff]  }
 0x4c2   :  { %4467 = vmatprep.subr.bf16.mxu0 %v8690_v63 }
 0x4c3   :  { %2157 = vmatpush1.bf16.msra.mxu1 %v6443_v17 }
 0x4c4   :  { %2158 = vmatprep.subr.bf16.mxu1 %v6449_v36 }
 0x4c7   :  { %2159 = vmatpush1.bf16.msra.mxu1 %v6455_v26  ;;  %v4855_v26 = vld [vmem:[%s8274_s7 + $0x88] sm:$0xff]  }
 0x4c8   :  { %2160 = vmatprep.subr.bf16.mxu1 %v6461_v3  ;;  %4468 = vmatpush3.bf16.msra.mxu0 %v4855_v26  ;;  %v4858_v26 = vld [vmem:[%s8274_s7 + $0xa0] sm:$0xff]  }
 0x4c9   :  { %4469 = vmatprep.subr.bf16.mxu0 %v8690_v63 }
 0x4cb   :  { %2161 = vmatpush1.bf16.msra.mxu1 %v6467_v13 }
 0x4cc   :  { %2162 = vmatprep.subr.bf16.mxu1 %v6473_v28 }
 0x4cf   :  { %2163 = vmatpush1.bf16.msra.mxu1 %v6479_v25  ;;  %v4856_v25 = vld [vmem:[%s8274_s7 + $0x90] sm:$0xff]  }
 0x4d0   :  { %2230 = vmatprep.subr.bf16.mxu1 %v6485_v31  ;;  %4470 = vmatpush3.bf16.msra.mxu0 %v4856_v25  ;;  %v4859_v25 = vld [vmem:[%s8274_s7 + $0xa8] sm:$0xff]  }
 0x4d1   :  { %4471 = vmatprep.subr.bf16.mxu0 %v8690_v63  ;;  %v6840_v31 = vld [vmem:[%s8272_s2 + $0xc] ss:$16 sps:$4 sm:$0xff]  }
 0x4d2   :  { %8706 = vst [vmem:[#allocation53_spill] sm:$0xff] %v6840_v31 }
 0x4d4   :  { %4472 = vmatpush3.bf16.msra.mxu0 %v4857_v34  ;;  %v4860_v34 = vld [vmem:[%s8274_s7 + $0xb0] sm:$0xff]  }
 0x4d5   :  { %4473 = vmatprep.subr.bf16.mxu0 %v8690_v63 }
 0x4d8   :  { %4474 = vmatpush3.bf16.msra.mxu0 %v4858_v26  ;;  %v4861_v26 = vld [vmem:[%s8274_s7 + $0xb8] sm:$0xff]  }
 0x4d9   :  { %4475 = vmatprep.subr.bf16.mxu0 %v8690_v63 }
 0x4dc   :  { %4476 = vmatpush3.bf16.msra.mxu0 %v4859_v25 }
 0x4dd   :  { %4477 = vmatprep.subr.bf16.mxu0 %v8690_v63 }
 0x4e0   :  { %4478 = vmatpush3.bf16.msra.mxu0 %v4860_v34 }
 0x4e1   :  { %4479 = vmatprep.subr.bf16.mxu0 %v8690_v63 }
 0x4e4   :  { %4480 = vmatpush3.bf16.msra.mxu0 %v4861_v26 }
 0x4e5   :  { %2067 = vmatprep.subr.bf16.mxu0 %v6840_v31 }
 0x565   :  { %v1859_v25 = vpop.f32.mrb[36].mxu0  ;;  %v1900_v28 = vpop.f32.mrb[36].mxu1 }
 0x566   :  { %v4593_v13 = vadd.f32 %v1859_v25, %v6086_v19  ;;  %v1861_v3 = vpop.f32.mrb[37].mxu0  ;;  %v1902_v34 = vpop.f32.mrb[37].mxu1  ;;  %v4595_v47 = vadd.f32 %v1900_v28, %v6097_v27 }
 0x567   :  { %v4594_v36 = vadd.f32 %v1861_v3, %v6091_v21  ;;  %v1863_v17 = vpop.f32.mrb[38].mxu0  ;;  %v1904_v59 = vpop.f32.mrb[38].mxu1  ;;  %v4596_v31 = vadd.f32 %v1902_v34, %v6120_v41 }
 0x568   :  { %v1911_v24 = vmul.f32 0.5, %v4593_v13  ;;  %v1864_v18 = vpop.f32.mrb[39].mxu0  ;;  %v1905_v26 = vpop.f32.mrb[39].mxu1 }
 0x569   :  { %v1915_v46 = vmul.f32 0.5, %v4594_v36  ;;  %v1920_v1 = vmul.f32 0.5, %v4596_v31 }
 0x56a   :  { %4952 = vtanh.f32 %v1911_v24  ;;  %v8707_v24 = vld [vmem:[#allocation58_spill] sm:$0xff] }
 0x56b   :  { %4954 = vtanh.f32 %v1915_v46  ;;  %v169_v28 = vadd.f32 %v8707_v24, %v5580_v49  ;;  %v6900_v24 = vld [vmem:[%s8272_s2 + $0x68] ss:$16 sps:$4 sm:$0xff]  }
 0x56c   :  { %4956 = vtanh.f32 %v4595_v47 }
 0x56d   :  { %4958 = vtanh.f32 %v1920_v1 }
 0x574   :  { %v4953_v48 = vpop.eup %4952 }
 0x575   :  { %v4955_v25 = vpop.eup %4954  ;;  %v1913_v19 = vmul.f32 0.5, %v4953_v48  ;;  %v171_v48 = vadd.f32 %v6002_v53, %v5584_v50  ;;  %v6870_v53 = vld [vmem:[%s8272_s2 + $0x2c] ss:$16 sps:$4 sm:$0xff]  }
 0x576   :  { %v1917_v22 = vmul.f32 0.5, %v4955_v25  ;;  %v4957_v17 = vpop.eup %4956 }
 0x577   :  { %v1914_v3 = vadd.f32 0.5, %v1913_v19  ;;  %v4959_v46 = vpop.eup %4958 }
 0x578   :  { %v1918_v59 = vadd.f32 0.5, %v1917_v22  ;;  %v1922_v47 = vmul.f32 0.5, %v4959_v46  ;;  %v6888_v46 = vld [vmem:[%s8272_s2 + $0x48] ss:$16 sps:$4 sm:$0xff]  }
 0x579   :  { %v1925_v13 = vmul.f32 %v4957_v17, %v1914_v3 }
 0x57a   :  { %v1924_v18 = vmul.f32 %v1918_v59, %v6356_v29  ;;  %v1923_v22 = vadd.f32 0.5, %v1922_v47  ;;  %v6863_v59 = vld [vmem:[%s8272_s2 + $0x8] ss:$16 sps:$4 sm:$0xff]   ;;  %v6894_v47 = vld [vmem:[%s8272_s2 + $0x6c] ss:$16 sps:$4 sm:$0xff]  }
 0x57c   :  { %v6848_v36 = vadd.f32 %v1925_v13, %v1924_v18  ;;  %v6876_v13 = vld [vmem:[%s8272_s2 + $0x28] ss:$16 sps:$4 sm:$0xff]   ;;  %v6882_v18 = vld [vmem:[%s8272_s2 + $0x4c] ss:$16 sps:$4 sm:$0xff]  }
 0x57e   :  { %4960 = vtanh.f32 %v6848_v36 }
 0x585   :  { %v2060_v31 = vpop.f32.mrb[40].mxu1 }
 0x586   :  { %v6855_v1 = vadd.f32 %v2060_v31, %v169_v28  ;;  %v2062_v19 = vpop.f32.mrb[41].mxu1  ;;  %v6906_v28 = vld [vmem:[%s8272_s2 + $0x8c] ss:$16 sps:$4 sm:$0xff]  }
 0x587   :  { %v2109_v34 = vadd.f32 %v2062_v19, %v171_v48  ;;  %v2064_v26 = vpop.f32.mrb[42].mxu1  ;;  %v6912_v48 = vld [vmem:[%s8272_s2 + $0x88] ss:$16 sps:$4 sm:$0xff]   ;;  %v6918_v31 = vld [vmem:[%s8272_s2 + $0xac] ss:$16 sps:$4 sm:$0xff]  }
 0x588   :  { %v4961_v29 = vpop.eup %4960  ;;  %v2065_v25 = vpop.f32.mrb[43].mxu1  ;;  %v6924_v19 = vld [vmem:[%s8272_s2 + $0xa8] ss:$16 sps:$4 sm:$0xff]  }
 0x589   :  { %v1928_v3 = vmul.f32 %v4961_v29, %v1923_v22  ;;  %v6930_v22 = vld [vmem:[%s8272_s2 + $0xcc] ss:$16 sps:$4 sm:$0xff]   ;;  %v6936_v26 = vld [vmem:[%s8272_s2 + $0xc8] ss:$16 sps:$4 sm:$0xff]  }
 0x58a   :  { %v6942_v29 = vld [vmem:[%s8272_s2 + $0xec] ss:$16 sps:$4 sm:$0xff]   ;;  %v6948_v25 = vld [vmem:[%s8272_s2 + $0xe8] ss:$16 sps:$4 sm:$0xff]  }
 0x58b   :  { %v6857_v17 = vpack.c.bf16 %v1928_v3, %v1928_v3  ;;  %8708 = vst [vmem:[#allocation55_spill] sm:$0xff] %v6942_v29  ;;  %8709 = vst [vmem:[#allocation57_spill] sm:$0xff] %v6948_v25 }
 0x58d   :  { %4482 = vmatmul.mubr.bf16.vlgmr.msra.gmra.mrb[40].mxu0 %v6857_v17 }
 0x58e   :  { %2068 = vmatpush1.bf16.msra.mxu0 %v6863_v59  ;;  %2099 = vmatprep.mubr.bf16.mxu0 %v8554_v61 }
 0x58f   :  { %2069 = vmatprep.subr.bf16.mxu0 %v6870_v53 }
 0x592   :  { %2070 = vmatpush1.bf16.msra.mxu0 %v6876_v13 }
 0x593   :  { %2071 = vmatprep.subr.bf16.mxu0 %v6882_v18 }
 0x596   :  { %2072 = vmatpush1.bf16.msra.mxu0 %v6888_v46 }
 0x597   :  { %2073 = vmatprep.subr.bf16.mxu0 %v6894_v47 }
 0x59a   :  { %2074 = vmatpush1.bf16.msra.mxu0 %v6900_v24 }
 0x59b   :  { %2075 = vmatprep.subr.bf16.mxu0 %v6906_v28 }
 0x59e   :  { %2076 = vmatpush1.bf16.msra.mxu0 %v6912_v48 }
 0x59f   :  { %2077 = vmatprep.subr.bf16.mxu0 %v6918_v31 }
 0x5a2   :  { %2078 = vmatpush1.bf16.msra.mxu0 %v6924_v19 }
 0x5a3   :  { %2079 = vmatprep.subr.bf16.mxu0 %v6930_v22 }
 0x5a6   :  { %2080 = vmatpush1.bf16.msra.mxu0 %v6936_v26 }
 0x5a7   :  { %2081 = vmatprep.subr.bf16.mxu0 %v6942_v29 }
 0x5aa   :  { %2082 = vmatpush1.bf16.msra.mxu0 %v6948_v25 }
 0x5ab   :  { %2189 = vmatprep.subr.bf16.mxu0 %v6218_v38  ;;  %v8710_v38 = vld [vmem:[#allocation5_spill] sm:$0xff] }
 0x5ad   :  { %2100 = vmatmul.mubr.bf16.vlgmr.msra.gmra.mrb[44].mxu0 %v6499_v14 }
 0x5ae   :  { %2190 = vmatpush1.bf16.msra.mxu0 %v6225_v39  ;;  %2221 = vmatprep.mubr.bf16.mxu0 %v8554_v61  ;;  %v8711_v39 = vld [vmem:[#allocation6_spill] sm:$0xff] }
 0x5af   :  { %2191 = vmatprep.subr.bf16.mxu0 %v6232_v45 }
 0x5b2   :  { %2192 = vmatpush1.bf16.msra.mxu0 %v6238_v62  ;;  %v8712_v62 = vld [vmem:[#allocation24_spill] sm:$0xff] }
 0x5b3   :  { %2193 = vmatprep.subr.bf16.mxu0 %v6244_v37 }
 0x5b6   :  { %2194 = vmatpush1.bf16.msra.mxu0 %v6250_v40 }
 0x5b7   :  { %2195 = vmatprep.subr.bf16.mxu0 %v6256_v42 }
 0x5ba   :  { %2196 = vmatpush1.bf16.msra.mxu0 %v6262_v16 }
 0x5bb   :  { %2197 = vmatprep.subr.bf16.mxu0 %v6268_v44  ;;  %v2116_v44 = vmul.f32 0.5, %v2109_v34 }
 0x5bd   :  { %4962 = vtanh.f32 %v2116_v44 }
 0x5be   :  { %2198 = vmatpush1.bf16.msra.mxu0 %v6274_v58  ;;  %v2112_v58 = vmul.f32 0.5, %v6855_v1 }
 0x5bf   :  { %2199 = vmatprep.subr.bf16.mxu0 %v6280_v4  ;;  %v8714_v4 = vld [vmem:[#allocation3_spill] sm:$0xff] }
 0x5c0   :  { %4964 = vtanh.f32 %v2112_v58 }
 0x5c2   :  { %2200 = vmatpush1.bf16.msra.mxu0 %v6286_v5  ;;  %v8715_v5 = vld [vmem:[#allocation59_spill] sm:$0xff] }
 0x5c3   :  { %2201 = vmatprep.subr.bf16.mxu0 %v6292_v23  ;;  %v242_v23 = vadd.f32 %v8715_v5, %v8714_v4 }
 0x5c6   :  { %2202 = vmatpush1.bf16.msra.mxu0 %v6298_v55  ;;  %v8716_v55 = vld [vmem:[#allocation4_spill] sm:$0xff] }
 0x5c7   :  { %2203 = vmatprep.subr.bf16.mxu0 %v6307_v32  ;;  %v8717_v32 = vld [vmem:[#allocation60_spill] sm:$0xff] }
 0x5c8   :  { %v244_v14 = vadd.f32 %v8717_v32, %v8716_v55 }
 0x5ca   :  { %2204 = vmatpush1.bf16.msra.mxu0 %v8710_v38 }
 0x5cb   :  { %2271 = vmatprep.subr.bf16.mxu0 %v8711_v39 }
 0x660   :  { %v2012_v45 = vpop.f32.mrb[40].mxu0 }
 0x661   :  { %v6971_v37 = vadd.f32 %v2012_v45, %v8712_v62  ;;  %v4483_v40 = vpop.f32.mrb[41].mxu0  ;;  %v4963_v62 = vpop.eup %4962 }
 0x662   :  { %v2015_v42 = vpop.f32.mrb[42].mxu0  ;;  %v2118_v34 = vmul.f32 0.5, %v4963_v62  ;;  %v8722_v62 = vld [vmem:[#allocation30_spill] sm:$0xff] }
 0x663   :  { %8713 = vst [vmem:[#allocation58_spill] sm:$0xff] %v6971_v37  ;;  %v4484_v16 = vpop.f32.mrb[43].mxu0  ;;  %v4965_v42 = vpop.eup %4964 }
 0x664   :  { %v2114_v1 = vmul.f32 0.5, %v4965_v42  ;;  %v2119_v44 = vadd.f32 0.5, %v2118_v34  ;;  %v8724_v42 = vld [vmem:[#allocation34_spill] sm:$0xff]  ;;  %v8725_v34 = vld [vmem:[#allocation36_spill] sm:$0xff] }
 0x666   :  { %v2115_v58 = vadd.f32 0.5, %v2114_v1  ;;  %v2125_v5 = vmul.f32 %v2119_v44, %v6496_v56  ;;  %v8718_v56 = vld [vmem:[#allocation25_spill] sm:$0xff]  ;;  %v8727_v1 = vld [vmem:[#allocation40_spill] sm:$0xff]  ;;  %v8728_v44 = vld [vmem:[#allocation42_spill] sm:$0xff] }
 0x680   :  { %v2101_v3 = vpop.f32.mrb[44].mxu0 }
 0x681   :  { %v2110_v38 = vadd.f32 %v2101_v3, %v242_v23  ;;  %v2103_v39 = vpop.f32.mrb[45].mxu0 }
 0x682   :  { %v2111_v25 = vadd.f32 %v2103_v39, %v244_v14  ;;  %v2105_v45 = vpop.f32.mrb[46].mxu0 }
 0x683   :  { %4966 = vtanh.f32 %v2110_v38  ;;  %v2106_v40 = vpop.f32.mrb[47].mxu0 }
 0x684   :  { %v2121_v16 = vmul.f32 0.5, %v2111_v25  ;;  %v8719_v25 = vld [vmem:[#allocation26_spill] sm:$0xff]  ;;  %v8723_v40 = vld [vmem:[#allocation32_spill] sm:$0xff] }
 0x686   :  { %4968 = vtanh.f32 %v2121_v16  ;;  %v8726_v16 = vld [vmem:[#allocation38_spill] sm:$0xff] }
 0x68d   :  { %v4967_v37 = vpop.eup %4966 }
 0x68e   :  { %v2126_v4 = vmul.f32 %v4967_v37, %v2115_v58  ;;  %v8720_v37 = vld [vmem:[#allocation27_spill] sm:$0xff]  ;;  %v8729_v58 = vld [vmem:[#allocation44_spill] sm:$0xff] }
 0x690   :  { %v6979_v32 = vadd.f32 %v2126_v4, %v2125_v5  ;;  %v4969_v23 = vpop.eup %4968  ;;  %v8721_v4 = vld [vmem:[#allocation28_spill] sm:$0xff]  ;;  %v8730_v5 = vld [vmem:[#allocation46_spill] sm:$0xff] }
 0x691   :  { %v2123_v14 = vmul.f32 0.5, %v4969_v23  ;;  %v8731_v23 = vld [vmem:[#allocation48_spill] sm:$0xff] }
 0x692   :  { %4970 = vtanh.f32 %v6979_v32 }
 0x693   :  { %v2124_v3 = vadd.f32 0.5, %v2123_v14  ;;  %v8732_v14 = vld [vmem:[#allocation50_spill] sm:$0xff] }
 0x69c   :  { %v4971_v38 = vpop.eup %4970 }
 0x69d   :  { %v2129_v39 = vmul.f32 %v4971_v38, %v2124_v3  ;;  %v8733_v3 = vld [vmem:[#allocation52_spill] sm:$0xff]  ;;  %v8734_v38 = vld [vmem:[#allocation54_spill] sm:$0xff] }
 0x69f   :  { %v6982_v45 = vpack.c.bf16 %v2129_v39, %v2129_v39  ;;  %v8735_v39 = vld [vmem:[#allocation56_spill] sm:$0xff] }
 0x6a1   :  { %2181 = vmatmul.mubr.bf16.vlgmr.msra.gmra.mrb[44].mxu1 %v6982_v45  ;;  %2222 = vmatmul.mubr.bf16.vlgmr.msra.gmra.mrb[48].mxu0 %v6982_v45 }
 0x6a2   :  { %2231 = vmatpush1.bf16.msra.mxu1 %v6506_v9  ;;  %2272 = vmatpush1.bf16.msra.mxu0 %v6512_v35 }
 0x6a3   :  { %2232 = vmatprep.subr.bf16.mxu1 %v6518_v43  ;;  %2273 = vmatprep.subr.bf16.mxu0 %v6524_v20 }
 0x6a4   :  { %2262 = vmatprep.mubr.bf16.mxu1 %v8554_v61  ;;  %2303 = vmatprep.mubr.bf16.mxu0 %v8554_v61 }
 0x6a6   :  { %2233 = vmatpush1.bf16.msra.mxu1 %v6532_v12  ;;  %2274 = vmatpush1.bf16.msra.mxu0 %v6538_v30 }
 0x6a7   :  { %2234 = vmatprep.subr.bf16.mxu1 %v6544_v57  ;;  %2275 = vmatprep.subr.bf16.mxu0 %v6550_v7 }
 0x6aa   :  { %2235 = vmatpush1.bf16.msra.mxu1 %v6556_v10  ;;  %2276 = vmatpush1.bf16.msra.mxu0 %v6562_v11 }
 0x6ab   :  { %2236 = vmatprep.subr.bf16.mxu1 %v6568_v2  ;;  %2277 = vmatprep.subr.bf16.mxu0 %v6574_v60 }
 0x6ae   :  { %2237 = vmatpush1.bf16.msra.mxu1 %v6580_v33  ;;  %2278 = vmatpush1.bf16.msra.mxu0 %v6586_v8 }
 0x6af   :  { %2238 = vmatprep.subr.bf16.mxu1 %v6592_v6  ;;  %2279 = vmatprep.subr.bf16.mxu0 %v6598_v52 }
 0x6b2   :  { %2239 = vmatpush1.bf16.msra.mxu1 %v8718_v56  ;;  %2280 = vmatpush1.bf16.msra.mxu0 %v8719_v25 }
 0x6b3   :  { %2240 = vmatprep.subr.bf16.mxu1 %v8720_v37  ;;  %2281 = vmatprep.subr.bf16.mxu0 %v8721_v4 }
 0x6b6   :  { %2241 = vmatpush1.bf16.msra.mxu1 %v8722_v62  ;;  %2282 = vmatpush1.bf16.msra.mxu0 %v8723_v40 }
 0x6b7   :  { %2242 = vmatprep.subr.bf16.mxu1 %v8724_v42  ;;  %2283 = vmatprep.subr.bf16.mxu0 %v8725_v34 }
 0x6ba   :  { %2243 = vmatpush1.bf16.msra.mxu1 %v8726_v16  ;;  %2284 = vmatpush1.bf16.msra.mxu0 %v8727_v1 }
 0x6bb   :  { %2244 = vmatprep.subr.bf16.mxu1 %v8728_v44  ;;  %2285 = vmatprep.subr.bf16.mxu0 %v8729_v58  ;;  %v8739_v58 = vld [vmem:[#allocation35_spill] sm:$0xff]  ;;  %v8742_v44 = vld [vmem:[#allocation41_spill] sm:$0xff] }
 0x6be   :  { %2245 = vmatpush1.bf16.msra.mxu1 %v8730_v5  ;;  %2286 = vmatpush1.bf16.msra.mxu0 %v8731_v23  ;;  %v8736_v23 = vld [vmem:[#allocation29_spill] sm:$0xff] }
 0x6bf   :  { %2431 = vmatprep.subr.bf16.mxu0 %v8732_v14  ;;  %4485 = vmatprep.subr.bf16.mxu1 %v8690_v63  ;;  %v8737_v14 = vld [vmem:[#allocation31_spill] sm:$0xff]  ;;  %v8738_v5 = vld [vmem:[#allocation33_spill] sm:$0xff] }
 0x6c1   :  { %2263 = vmatmul.mubr.bf16.vlgmr.msra.gmra.mrb[44].mxu1 %v6857_v17  ;;  %2304 = vmatmul.mubr.bf16.vlgmr.msra.gmra.mrb[48].mxu0 %v6857_v17  ;;  %v8740_v17 = vld [vmem:[#allocation37_spill] sm:$0xff] }
 0x6c2   :  { %2432 = vmatpush1.bf16.msra.mxu0 %v8733_v3  ;;  %2463 = vmatprep.mubr.bf16.mxu0 %v8554_v61  ;;  %v8741_v3 = vld [vmem:[#allocation39_spill] sm:$0xff] }
 0x6c3   :  { %2433 = vmatprep.subr.bf16.mxu0 %v8734_v38  ;;  %4501 = vmatprep.mubr.msk.bf16.mxu1 %vm5273_vm1, %v8690_v63  ;;  %v8743_v38 = vld [vmem:[#allocation43_spill] sm:$0xff] }
 0x6c6   :  { %2434 = vmatpush1.bf16.msra.mxu0 %v8735_v39 }
 0x6c7   :  { %2435 = vmatprep.subr.bf16.mxu0 %v8736_v23 }
 0x6ca   :  { %2436 = vmatpush1.bf16.msra.mxu0 %v8737_v14  ;;  %v8744_v14 = vld [vmem:[#allocation7_spill] sm:$0xff] }
 0x6cb   :  { %2437 = vmatprep.subr.bf16.mxu0 %v8738_v5  ;;  %v8756_v5 = vld [vmem:[#allocation19_spill] sm:$0xff] }
 0x6ce   :  { %2438 = vmatpush1.bf16.msra.mxu0 %v8739_v58  ;;  %v8745_v58 = vld [vmem:[#allocation8_spill] sm:$0xff] }
 0x6cf   :  { %2439 = vmatprep.subr.bf16.mxu0 %v8740_v17  ;;  %v8754_v17 = vld [vmem:[#allocation17_spill] sm:$0xff] }
 0x6d2   :  { %2440 = vmatpush1.bf16.msra.mxu0 %v8741_v3  ;;  %v8746_v3 = vld [vmem:[#allocation9_spill] sm:$0xff] }
 0x6d3   :  { %2441 = vmatprep.subr.bf16.mxu0 %v8742_v44  ;;  %v8747_v44 = vld [vmem:[#allocation10_spill] sm:$0xff] }
 0x6d6   :  { %2442 = vmatpush1.bf16.msra.mxu0 %v8743_v38  ;;  %v8748_v38 = vld [vmem:[#allocation11_spill] sm:$0xff] }
 0x6d7   :  { %2443 = vmatprep.subr.bf16.mxu0 %v6766_v0  ;;  %v8749_v0 = vld [vmem:[#allocation12_spill] sm:$0xff] }
 0x6da   :  { %2444 = vmatpush1.bf16.msra.mxu0 %v6772_v51  ;;  %v8750_v51 = vld [vmem:[#allocation13_spill] sm:$0xff] }
 0x6db   :  { %2445 = vmatprep.subr.bf16.mxu0 %v6778_v54  ;;  %v8751_v54 = vld [vmem:[#allocation14_spill] sm:$0xff] }
 0x6de   :  { %2446 = vmatpush1.bf16.msra.mxu0 %v6784_v15  ;;  %v8752_v15 = vld [vmem:[#allocation15_spill] sm:$0xff] }
 0x6df   :  { %2553 = vmatprep.subr.bf16.mxu0 %v8744_v14  ;;  %v8753_v14 = vld [vmem:[#allocation16_spill] sm:$0xff] }
 0x6e1   :  { %2464 = vmatmul.mubr.bf16.vlgmr.msra.gmra.mrb[52].mxu0 %v6982_v45 }
 0x6e2   :  { %2554 = vmatpush1.bf16.msra.mxu0 %v8745_v58  ;;  %2585 = vmatprep.mubr.bf16.mxu0 %v8554_v61  ;;  %v8755_v58 = vld [vmem:[#allocation18_spill] sm:$0xff] }
 0x6e3   :  { %2555 = vmatprep.subr.bf16.mxu0 %v8746_v3  ;;  %v8757_v3 = vld [vmem:[#allocation20_spill] sm:$0xff] }
 0x6e6   :  { %2556 = vmatpush1.bf16.msra.mxu0 %v8747_v44  ;;  %v8758_v44 = vld [vmem:[#allocation21_spill] sm:$0xff] }
 0x6e7   :  { %2557 = vmatprep.subr.bf16.mxu0 %v8748_v38  ;;  %v8759_v38 = vld [vmem:[#allocation22_spill] sm:$0xff] }
 0x6ea   :  { %2558 = vmatpush1.bf16.msra.mxu0 %v8749_v0  ;;  %v8760_v0 = vld [vmem:[#allocation23_spill] sm:$0xff] }
 0x6eb   :  { %2559 = vmatprep.subr.bf16.mxu0 %v8750_v51  ;;  %v4862_v51 = vld [vmem:[%s8274_s7 + $0xc0] sm:$0xff]  }
 0x6ec   :  { %4486 = vmatpush3.bf16.msra.mxu1 %v4862_v51  ;;  %v8762_v51 = vld [vmem:[#allocation77_spill] sm:$0xff] }
 0x6ed   :  { %4487 = vmatprep.subr.bf16.mxu1 %v8690_v63 }
 0x6ee   :  { %2560 = vmatpush1.bf16.msra.mxu0 %v8751_v54  ;;  %v4863_v54 = vld [vmem:[%s8274_s7 + $0xc8] sm:$0xff]  }
 0x6ef   :  { %2561 = vmatprep.subr.bf16.mxu0 %v8752_v15  ;;  %v4864_v15 = vld [vmem:[%s8274_s7 + $0xd0] sm:$0xff]  }
 0x6f0   :  { %4488 = vmatpush3.bf16.msra.mxu1 %v4863_v54 }
 0x6f1   :  { %4489 = vmatprep.subr.bf16.mxu1 %v8690_v63 }
 0x6f2   :  { %2562 = vmatpush1.bf16.msra.mxu0 %v8753_v14  ;;  %v4867_v14 = vld [vmem:[%s8274_s7 + $0xe8] sm:$0xff]  }
 0x6f3   :  { %2563 = vmatprep.subr.bf16.mxu0 %v8754_v17  ;;  %v4866_v17 = vld [vmem:[%s8274_s7 + $0xe0] sm:$0xff]  }
 0x6f4   :  { %4490 = vmatpush3.bf16.msra.mxu1 %v4864_v15 }
 0x6f5   :  { %4491 = vmatprep.subr.bf16.mxu1 %v8690_v63 }
 0x6f6   :  { %2564 = vmatpush1.bf16.msra.mxu0 %v8755_v58  ;;  %v4868_v58 = vld [vmem:[%s8274_s7 + $0xf0] sm:$0xff]  }
 0x6f7   :  { %2565 = vmatprep.subr.bf16.mxu0 %v8756_v5  ;;  %v4865_v5 = vld [vmem:[%s8274_s7 + $0xd8] sm:$0xff]  }
 0x6f8   :  { %4492 = vmatpush3.bf16.msra.mxu1 %v4865_v5 }
 0x6f9   :  { %4493 = vmatprep.subr.bf16.mxu1 %v8690_v63 }
 0x6fa   :  { %2566 = vmatpush1.bf16.msra.mxu0 %v8757_v3  ;;  %v4869_v3 = vld [vmem:[%s8274_s7 + $0xf8] sm:$0xff]  }
 0x6fb   :  { %2567 = vmatprep.subr.bf16.mxu0 %v8758_v44  ;;  %v8761_v44 = vld [vmem:[#allocation53_spill] sm:$0xff] }
 0x6fc   :  { %4494 = vmatpush3.bf16.msra.mxu1 %v4866_v17 }
 0x6fd   :  { %4495 = vmatprep.subr.bf16.mxu1 %v8690_v63 }
 0x6fe   :  { %2568 = vmatpush1.bf16.msra.mxu0 %v8759_v38 }
 0x6ff   :  { %2635 = vmatprep.subr.bf16.mxu0 %v8760_v0 }
 0x700   :  { %4496 = vmatpush3.bf16.msra.mxu1 %v4867_v14 }
 0x701   :  { %4497 = vmatprep.subr.bf16.mxu1 %v8690_v63 }
 0x704   :  { %4498 = vmatpush3.bf16.msra.mxu1 %v4868_v58 }
 0x705   :  { %4499 = vmatprep.subr.bf16.mxu1 %v8690_v63 }
 0x708   :  { %4500 = vmatpush3.bf16.msra.mxu1 %v4869_v3 }
 0x709   :  { %2472 = vmatprep.subr.bf16.mxu1 %v8761_v44 }
 0x794   :  { %v2264_v38 = vpop.f32.mrb[44].mxu1  ;;  %v2305_v0 = vpop.f32.mrb[48].mxu0 }
 0x795   :  { %v4597_v54 = vadd.f32 %v2264_v38, %v8762_v51  ;;  %v2266_v15 = vpop.f32.mrb[45].mxu1  ;;  %v2307_v5 = vpop.f32.mrb[49].mxu0  ;;  %v4599_v16 = vadd.f32 %v2305_v0, %v6097_v27  ;;  %v8763_v0 = vld [vmem:[#allocation61_spill] sm:$0xff] }
 0x796   :  { %v4598_v17 = vadd.f32 %v2266_v15, %v6091_v21  ;;  %v2268_v14 = vpop.f32.mrb[46].mxu1  ;;  %v2309_v23 = vpop.f32.mrb[50].mxu0  ;;  %v4600_v3 = vadd.f32 %v2307_v5, %v6120_v41  ;;  %v175_v5 = vadd.f32 %v8763_v0, %v5580_v49  ;;  %v7155_v0 = vld [vmem:[%s8270_s4 + $0x4c] ss:$16 sps:$4 sm:$0xff]  }
 0x797   :  { %v2316_v58 = vmul.f32 0.5, %v4597_v54  ;;  %v2269_v39 = vpop.f32.mrb[47].mxu1  ;;  %v2310_v63 = vpop.f32.mrb[51].mxu0  ;;  %8770 = vst [vmem:[#allocation4_spill] sm:$0xff] %v7155_v0 }
 0x798   :  { %v2320_v1 = vmul.f32 0.5, %v4598_v17  ;;  %v2325_v44 = vmul.f32 0.5, %v4600_v3  ;;  %v8764_v17 = vld [vmem:[#allocation63_spill] sm:$0xff] }
 0x799   :  { %4972 = vtanh.f32 %v2316_v58 }
 0x79a   :  { %4974 = vtanh.f32 %v2320_v1 }
 0x79b   :  { %4976 = vtanh.f32 %v4599_v16 }
 0x79c   :  { %4978 = vtanh.f32 %v2325_v44 }
 0x7a3   :  { %v4973_v34 = vpop.eup %4972 }
 0x7a4   :  { %v4975_v38 = vpop.eup %4974  ;;  %v2318_v51 = vmul.f32 0.5, %v4973_v34  ;;  %v177_v34 = vadd.f32 %v8764_v17, %v5584_v50  ;;  %v7167_v17 = vld [vmem:[%s8270_s4 + $0x6c] ss:$16 sps:$4 sm:$0xff]  }
 0x7a5   :  { %v2322_v42 = vmul.f32 0.5, %v4975_v38  ;;  %v4977_v14 = vpop.eup %4976  ;;  %8772 = vst [vmem:[#allocation25_spill] sm:$0xff] %v7167_v17 }
 0x7a6   :  { %v2319_v15 = vadd.f32 0.5, %v2318_v51  ;;  %v4979_v1 = vpop.eup %4978 }
 0x7a7   :  { %v2323_v23 = vadd.f32 0.5, %v2322_v42  ;;  %v2327_v16 = vmul.f32 0.5, %v4979_v1  ;;  %v7136_v1 = vld [vmem:[%s8270_s4 + $0x8] ss:$16 sps:$4 sm:$0xff]  }
 0x7a8   :  { %v2330_v54 = vmul.f32 %v4977_v14, %v2319_v15  ;;  %8767 = vst [vmem:[#allocation6_spill] sm:$0xff] %v7136_v1 }
 0x7a9   :  { %v2329_v63 = vmul.f32 %v2323_v23, %v6848_v36  ;;  %v2328_v42 = vadd.f32 0.5, %v2327_v16  ;;  %v7143_v16 = vld [vmem:[%s8270_s4 + $0x2c] ss:$16 sps:$4 sm:$0xff]  }
 0x7aa   :  { %8768 = vst [vmem:[#allocation24_spill] sm:$0xff] %v7143_v16 }
 0x7ab   :  { %v7096_v39 = vadd.f32 %v2330_v54, %v2329_v63  ;;  %v8765_v54 = vld [vmem:[#allocation57_spill] sm:$0xff]  ;;  %v7129_v63 = vld [vmem:[%s8270_s4 + $0xc] ss:$16 sps:$4 sm:$0xff]  }
 0x7ac   :  { %8766 = vst [vmem:[#allocation5_spill] sm:$0xff] %v7129_v63 }
 0x7ad   :  { %4980 = vtanh.f32 %v7096_v39 }
 0x7b4   :  { %v2465_v58 = vpop.f32.mrb[52].mxu0 }
 0x7b5   :  { %v7103_v44 = vadd.f32 %v2465_v58, %v175_v5  ;;  %v2467_v51 = vpop.f32.mrb[53].mxu0  ;;  %v7161_v5 = vld [vmem:[%s8270_s4 + $0x48] ss:$16 sps:$4 sm:$0xff]   ;;  %v7179_v58 = vld [vmem:[%s8270_s4 + $0x8c] ss:$16 sps:$4 sm:$0xff]  }
 0x7b6   :  { %v7105_v3 = vadd.f32 %v2467_v51, %v177_v34  ;;  %v2469_v36 = vpop.f32.mrb[54].mxu0  ;;  %8771 = vst [vmem:[#allocation60_spill] sm:$0xff] %v7161_v5  ;;  %v7173_v34 = vld [vmem:[%s8270_s4 + $0x68] ss:$16 sps:$4 sm:$0xff]   ;;  %8774 = vst [vmem:[#allocation27_spill] sm:$0xff] %v7179_v58 }
 0x7b7   :  { %v4981_v38 = vpop.eup %4980  ;;  %v2470_v15 = vpop.f32.mrb[55].mxu0  ;;  %8773 = vst [vmem:[#allocation26_spill] sm:$0xff] %v7173_v34  ;;  %v7185_v51 = vld [vmem:[%s8270_s4 + $0x88] ss:$16 sps:$4 sm:$0xff]  }
 0x7b8   :  { %v2333_v14 = vmul.f32 %v4981_v38, %v2328_v42  ;;  %8775 = vst [vmem:[#allocation28_spill] sm:$0xff] %v7185_v51  ;;  %v7191_v42 = vld [vmem:[%s8270_s4 + $0xac] ss:$16 sps:$4 sm:$0xff]   ;;  %v7197_v36 = vld [vmem:[%s8270_s4 + $0xa8] ss:$16 sps:$4 sm:$0xff]  }
 0x7b9   :  { %8776 = vst [vmem:[#allocation30_spill] sm:$0xff] %v7191_v42  ;;  %8777 = vst [vmem:[#allocation32_spill] sm:$0xff] %v7197_v36  ;;  %v7203_v38 = vld [vmem:[%s8270_s4 + $0xcc] ss:$16 sps:$4 sm:$0xff]   ;;  %v7209_v15 = vld [vmem:[%s8270_s4 + $0xc8] ss:$16 sps:$4 sm:$0xff]  }
 0x7ba   :  { %v7107_v23 = vpack.c.bf16 %v2333_v14, %v2333_v14  ;;  %8778 = vst [vmem:[#allocation7_spill] sm:$0xff] %v7203_v38  ;;  %8779 = vst [vmem:[#allocation8_spill] sm:$0xff] %v7209_v15  ;;  %v7215_v14 = vld [vmem:[%s8270_s4 + $0xec] ss:$16 sps:$4 sm:$0xff]  }
 0x7bb   :  { %8780 = vst [vmem:[#allocation9_spill] sm:$0xff] %v7215_v14 }
 0x7bc   :  { %4502 = vmatmul.mubr.bf16.vlgmr.msra.gmra.mrb[48].mxu1 %v7107_v23 }
 0x7bd   :  { %2473 = vmatpush1.bf16.msra.mxu1 %v6863_v59  ;;  %2504 = vmatprep.mubr.bf16.mxu1 %v8554_v61 }
 0x7be   :  { %2474 = vmatprep.subr.bf16.mxu1 %v6870_v53 }
 0x7c1   :  { %2475 = vmatpush1.bf16.msra.mxu1 %v6876_v13 }
 0x7c2   :  { %2476 = vmatprep.subr.bf16.mxu1 %v6882_v18 }
 0x7c5   :  { %2477 = vmatpush1.bf16.msra.mxu1 %v6888_v46 }
 0x7c6   :  { %2478 = vmatprep.subr.bf16.mxu1 %v6894_v47 }
 0x7c9   :  { %2479 = vmatpush1.bf16.msra.mxu1 %v6900_v24 }
 0x7ca   :  { %2480 = vmatprep.subr.bf16.mxu1 %v6906_v28 }
 0x7cd   :  { %2481 = vmatpush1.bf16.msra.mxu1 %v6912_v48 }
 0x7ce   :  { %2482 = vmatprep.subr.bf16.mxu1 %v6918_v31 }
 0x7d1   :  { %2483 = vmatpush1.bf16.msra.mxu1 %v6924_v19 }
 0x7d2   :  { %2484 = vmatprep.subr.bf16.mxu1 %v6930_v22 }
 0x7d5   :  { %2485 = vmatpush1.bf16.msra.mxu1 %v6936_v26 }
 0x7d6   :  { %2486 = vmatprep.subr.bf16.mxu1 %v6942_v29 }
 0x7d9   :  { %2487 = vmatpush1.bf16.msra.mxu1 %v8765_v54 }
 0x7da   :  { %2594 = vmatprep.subr.bf16.mxu1 %v7129_v63 }
 0x7dc   :  { %2505 = vmatmul.mubr.bf16.vlgmr.msra.gmra.mrb[52].mxu1 %v6982_v45  ;;  %v7149_v45 = vld [vmem:[%s8270_s4 + $0x28] ss:$16 sps:$4 sm:$0xff]  }
 0x7dd   :  { %2595 = vmatpush1.bf16.msra.mxu1 %v7136_v1  ;;  %2626 = vmatprep.mubr.bf16.mxu1 %v8554_v61  ;;  %8769 = vst [vmem:[#allocation59_spill] sm:$0xff] %v7149_v45 }
 0x7de   :  { %2596 = vmatprep.subr.bf16.mxu1 %v7143_v16  ;;  %v8787_v16 = vld [vmem:[#allocation64_spill] sm:$0xff] }
 0x7df   :  { %v250_v1 = vadd.f32 %v8787_v16, %v8716_v55 }
 0x7e1   :  { %2597 = vmatpush1.bf16.msra.mxu1 %v7149_v45 }
 0x7e2   :  { %2598 = vmatprep.subr.bf16.mxu1 %v7155_v0  ;;  %v8786_v0 = vld [vmem:[#allocation62_spill] sm:$0xff] }
 0x7e5   :  { %2599 = vmatpush1.bf16.msra.mxu1 %v7161_v5  ;;  %v2517_v5 = vmul.f32 0.5, %v7103_v44 }
 0x7e6   :  { %2600 = vmatprep.subr.bf16.mxu1 %v7167_v17  ;;  %v2521_v17 = vmul.f32 0.5, %v7105_v3 }
 0x7e8   :  { %4982 = vtanh.f32 %v2521_v17 }
 0x7e9   :  { %2601 = vmatpush1.bf16.msra.mxu1 %v7173_v34  ;;  %4984 = vtanh.f32 %v2517_v5 }
 0x7ea   :  { %2602 = vmatprep.subr.bf16.mxu1 %v7179_v58 }
 0x7ed   :  { %2603 = vmatpush1.bf16.msra.mxu1 %v7185_v51 }
 0x7ee   :  { %2604 = vmatprep.subr.bf16.mxu1 %v7191_v42  ;;  %v8783_v42 = vld [vmem:[#allocation58_spill] sm:$0xff] }
 0x7f1   :  { %2605 = vmatpush1.bf16.msra.mxu1 %v7197_v36  ;;  %v7221_v36 = vld [vmem:[%s8270_s4 + $0xe8] ss:$16 sps:$4 sm:$0xff]  }
 0x7f2   :  { %2606 = vmatprep.subr.bf16.mxu1 %v7203_v38  ;;  %8781 = vst [vmem:[#allocation10_spill] sm:$0xff] %v7221_v36  ;;  %v7227_v38 = vld [vmem:[%s8271_s5 + $0xc] ss:$16 sps:$4 sm:$0xff]  }
 0x7f3   :  { %8782 = vst [vmem:[#allocation11_spill] sm:$0xff] %v7227_v38 }
 0x7f5   :  { %2607 = vmatpush1.bf16.msra.mxu1 %v7209_v15 }
 0x7f6   :  { %2608 = vmatprep.subr.bf16.mxu1 %v7215_v14 }
 0x7f9   :  { %2609 = vmatpush1.bf16.msra.mxu1 %v7221_v36  ;;  %v8785_v36 = vld [vmem:[#allocation3_spill] sm:$0xff] }
 0x7fa   :  { %2676 = vmatprep.subr.bf16.mxu1 %v7227_v38  ;;  %v248_v45 = vadd.f32 %v8786_v0, %v8785_v36 }
 0x88f   :  { %v2417_v15 = vpop.f32.mrb[48].mxu1 }
 0x890   :  { %v7231_v51 = vadd.f32 %v2417_v15, %v8783_v42  ;;  %v4503_v58 = vpop.f32.mrb[49].mxu1 }
 0x891   :  { %v2420_v14 = vpop.f32.mrb[50].mxu1  ;;  %v4983_v58 = vpop.eup %4982 }
 0x892   :  { %8784 = vst [vmem:[#allocation12_spill] sm:$0xff] %v7231_v51  ;;  %v4504_v34 = vpop.f32.mrb[51].mxu1  ;;  %v4985_v14 = vpop.eup %4984  ;;  %v2523_v3 = vmul.f32 0.5, %v4983_v58  ;;  %v7324_v58 = vld [vmem:[%s8270_s4 + $0x20] ss:$16 sps:$4 sm:$0xff]  }
 0x893   :  { %v2519_v44 = vmul.f32 0.5, %v4985_v14  ;;  %8816 = vst [vmem:[#allocation16_spill] sm:$0xff] %v7324_v58  ;;  %v7336_v14 = vld [vmem:[%s8270_s4 + $0x40] ss:$16 sps:$4 sm:$0xff]  }
 0x894   :  { %v2524_v17 = vadd.f32 0.5, %v2523_v3  ;;  %8818 = vst [vmem:[#allocation18_spill] sm:$0xff] %v7336_v14  ;;  %v7342_v3 = vld [vmem:[%s8270_s4 + $0x64] ss:$16 sps:$4 sm:$0xff]  }
 0x895   :  { %v2520_v5 = vadd.f32 0.5, %v2519_v44  ;;  %8819 = vst [vmem:[#allocation19_spill] sm:$0xff] %v7342_v3  ;;  %v7348_v44 = vld [vmem:[%s8270_s4 + $0x60] ss:$16 sps:$4 sm:$0xff]  }
 0x896   :  { %v2530_v0 = vmul.f32 %v2524_v17, %v6979_v32  ;;  %v8805_v32 = vld [vmem:[#allocation37_spill] sm:$0xff]  ;;  %8820 = vst [vmem:[#allocation20_spill] sm:$0xff] %v7348_v44 }
 0x897   :  { %v7354_v17 = vld [vmem:[%s8270_s4 + $0x84] ss:$16 sps:$4 sm:$0xff]  }
 0x898   :  { %8821 = vst [vmem:[#allocation21_spill] sm:$0xff] %v7354_v17 }
 0x8af   :  { %v2506_v38 = vpop.f32.mrb[52].mxu1 }
 0x8b0   :  { %v2515_v63 = vadd.f32 %v2506_v38, %v248_v45  ;;  %v2508_v54 = vpop.f32.mrb[53].mxu1 }
 0x8b1   :  { %v2516_v42 = vadd.f32 %v2508_v54, %v250_v1  ;;  %v2510_v15 = vpop.f32.mrb[54].mxu1 }
 0x8b2   :  { %4986 = vtanh.f32 %v2515_v63  ;;  %v2511_v34 = vpop.f32.mrb[55].mxu1 }
 0x8b3   :  { %v2526_v51 = vmul.f32 0.5, %v2516_v42  ;;  %v7318_v42 = vld [vmem:[%s8270_s4 + $0x24] ss:$16 sps:$4 sm:$0xff]  }
 0x8b4   :  { %8815 = vst [vmem:[#allocation15_spill] sm:$0xff] %v7318_v42  ;;  %v7330_v34 = vld [vmem:[%s8270_s4 + $0x44] ss:$16 sps:$4 sm:$0xff]  }
 0x8b5   :  { %4988 = vtanh.f32 %v2526_v51  ;;  %v7304_v51 = vld [vmem:[%s8270_s4 + $0x4] ss:$16 sps:$4 sm:$0xff]   ;;  %8817 = vst [vmem:[#allocation17_spill] sm:$0xff] %v7330_v34 }
 0x8b6   :  { %8813 = vst [vmem:[#allocation13_spill] sm:$0xff] %v7304_v51 }
 0x8bc   :  { %v4987_v29 = vpop.eup %4986 }
 0x8bd   :  { %v2531_v36 = vmul.f32 %v4987_v29, %v2520_v5  ;;  %v8804_v29 = vld [vmem:[#allocation35_spill] sm:$0xff] }
 0x8be   :  { %v7360_v5 = vld [vmem:[%s8270_s4 + $0x80] ss:$16 sps:$4 sm:$0xff]  }
 0x8bf   :  { %v7240_v16 = vadd.f32 %v2531_v36, %v2530_v0  ;;  %v4989_v54 = vpop.eup %4988  ;;  %v7311_v36 = vld [vmem:[%s8270_s4] ss:$16 sps:$4 sm:$0xff]   ;;  %8822 = vst [vmem:[#allocation22_spill] sm:$0xff] %v7360_v5  ;;  %v7366_v0 = vld [vmem:[%s8270_s4 + $0xa4] ss:$16 sps:$4 sm:$0xff]  }
 0x8c0   :  { %v2528_v1 = vmul.f32 0.5, %v4989_v54  ;;  %8814 = vst [vmem:[#allocation14_spill] sm:$0xff] %v7311_v36  ;;  %8823 = vst [vmem:[#allocation23_spill] sm:$0xff] %v7366_v0  ;;  %v7372_v54 = vld [vmem:[%s8270_s4 + $0xa0] ss:$16 sps:$4 sm:$0xff]  }
 0x8c1   :  { %4990 = vtanh.f32 %v7240_v16  ;;  %8824 = vst [vmem:[#allocation61_spill] sm:$0xff] %v7372_v54 }
 0x8c2   :  { %v2529_v45 = vadd.f32 0.5, %v2528_v1  ;;  %v7378_v1 = vld [vmem:[%s8270_s4 + $0xc4] ss:$16 sps:$4 sm:$0xff]  }
 0x8c3   :  { %8825 = vst [vmem:[#allocation63_spill] sm:$0xff] %v7378_v1 }
 0x8cb   :  { %v4991_v63 = vpop.eup %4990 }
 0x8cc   :  { %v2534_v38 = vmul.f32 %v4991_v63, %v2529_v45  ;;  %v7384_v45 = vld [vmem:[%s8270_s4 + $0xc0] ss:$16 sps:$4 sm:$0xff]   ;;  %v7390_v63 = vld [vmem:[%s8270_s4 + $0xe4] ss:$16 sps:$4 sm:$0xff]  }
 0x8cd   :  { %8826 = vst [vmem:[#allocation58_spill] sm:$0xff] %v7384_v45  ;;  %8827 = vst [vmem:[#allocation62_spill] sm:$0xff] %v7390_v63 }
 0x8ce   :  { %v7243_v15 = vpack.c.bf16 %v2534_v38, %v2534_v38  ;;  %v7396_v38 = vld [vmem:[%s8270_s4 + $0xe0] ss:$16 sps:$4 sm:$0xff]  }
 0x8cf   :  { %8828 = vst [vmem:[#allocation64_spill] sm:$0xff] %v7396_v38 }
 0x8d0   :  { %2586 = vmatmul.mubr.bf16.vlgmr.msra.gmra.mrb[56].mxu0 %v7243_v15  ;;  %2627 = vmatmul.mubr.bf16.vlgmr.msra.gmra.mrb[56].mxu1 %v7243_v15 }
 0x8d1   :  { %2636 = vmatpush1.bf16.msra.mxu0 %v6506_v9  ;;  %2677 = vmatpush1.bf16.msra.mxu1 %v6512_v35  ;;  %v8788_v9 = vld [vmem:[#allocation34_spill] sm:$0xff]  ;;  %v8789_v35 = vld [vmem:[#allocation36_spill] sm:$0xff] }
 0x8d2   :  { %2637 = vmatprep.subr.bf16.mxu0 %v6518_v43  ;;  %2678 = vmatprep.subr.bf16.mxu1 %v6524_v20  ;;  %v8790_v43 = vld [vmem:[#allocation38_spill] sm:$0xff]  ;;  %v8791_v20 = vld [vmem:[#allocation40_spill] sm:$0xff] }
 0x8d3   :  { %2667 = vmatprep.mubr.bf16.mxu0 %v8554_v61  ;;  %2708 = vmatprep.mubr.bf16.mxu1 %v8554_v61 }
 0x8d5   :  { %2638 = vmatpush1.bf16.msra.mxu0 %v6532_v12  ;;  %2679 = vmatpush1.bf16.msra.mxu1 %v6538_v30  ;;  %v8792_v12 = vld [vmem:[#allocation42_spill] sm:$0xff]  ;;  %v8793_v30 = vld [vmem:[#allocation44_spill] sm:$0xff] }
 0x8d6   :  { %2639 = vmatprep.subr.bf16.mxu0 %v6544_v57  ;;  %2680 = vmatprep.subr.bf16.mxu1 %v6550_v7  ;;  %v8794_v57 = vld [vmem:[#allocation46_spill] sm:$0xff]  ;;  %v8795_v7 = vld [vmem:[#allocation48_spill] sm:$0xff] }
 0x8d9   :  { %2640 = vmatpush1.bf16.msra.mxu0 %v6556_v10  ;;  %2681 = vmatpush1.bf16.msra.mxu1 %v6562_v11  ;;  %v8796_v10 = vld [vmem:[#allocation50_spill] sm:$0xff]  ;;  %v8797_v11 = vmov 0.0  }
 0x8da   :  { %2641 = vmatprep.subr.bf16.mxu0 %v6568_v2  ;;  %2682 = vmatprep.subr.bf16.mxu1 %v6574_v60  ;;  %v8798_v2 = vld [vmem:[#allocation52_spill] sm:$0xff]  ;;  %v8799_v60 = vld [vmem:[#allocation54_spill] sm:$0xff] }
 0x8dd   :  { %2642 = vmatpush1.bf16.msra.mxu0 %v6580_v33  ;;  %2683 = vmatpush1.bf16.msra.mxu1 %v6586_v8  ;;  %v8800_v33 = vld [vmem:[#allocation56_spill] sm:$0xff]  ;;  %v8801_v8 = vld [vmem:[#allocation29_spill] sm:$0xff] }
 0x8de   :  { %2643 = vmatprep.subr.bf16.mxu0 %v6592_v6  ;;  %2684 = vmatprep.subr.bf16.mxu1 %v6598_v52  ;;  %v8802_v6 = vld [vmem:[#allocation31_spill] sm:$0xff]  ;;  %v8803_v52 = vld [vmem:[#allocation33_spill] sm:$0xff] }
 0x8e1   :  { %2644 = vmatpush1.bf16.msra.mxu0 %v8718_v56  ;;  %2685 = vmatpush1.bf16.msra.mxu1 %v8719_v25  ;;  %v8806_v56 = vld [vmem:[#allocation39_spill] sm:$0xff]  ;;  %v8807_v25 = vld [vmem:[#allocation41_spill] sm:$0xff] }
 0x8e2   :  { %2645 = vmatprep.subr.bf16.mxu0 %v8720_v37  ;;  %2686 = vmatprep.subr.bf16.mxu1 %v8721_v4  ;;  %v8808_v37 = vld [vmem:[#allocation43_spill] sm:$0xff]  ;;  %v8809_v4 = vld [vmem:[#allocation45_spill] sm:$0xff] }
 0x8e5   :  { %2646 = vmatpush1.bf16.msra.mxu0 %v8722_v62  ;;  %2687 = vmatpush1.bf16.msra.mxu1 %v8723_v40  ;;  %v8810_v62 = vld [vmem:[#allocation47_spill] sm:$0xff]  ;;  %v8811_v40 = vld [vmem:[#allocation49_spill] sm:$0xff] }
 0x8e6   :  { %2647 = vmatprep.subr.bf16.mxu0 %v8788_v9  ;;  %2688 = vmatprep.subr.bf16.mxu1 %v8789_v35  ;;  %v7402_v9 = vld [vmem:[%s8271_s5 + $0x4] ss:$16 sps:$4 sm:$0xff]  }
 0x8e7   :  { %8829 = vst [vmem:[#allocation34_spill] sm:$0xff] %v7402_v9  ;;  %v4870_v35 = vld [vmem:[%s8274_s7 + $0x100] sm:$0xff]  }
 0x8e9   :  { %2648 = vmatpush1.bf16.msra.mxu0 %v8790_v43  ;;  %2689 = vmatpush1.bf16.msra.mxu1 %v8791_v20  ;;  %v4871_v43 = vld [vmem:[%s8274_s7 + $0x108] sm:$0xff]   ;;  %v4872_v20 = vld [vmem:[%s8274_s7 + $0x110] sm:$0xff]  }
 0x8ea   :  { %2649 = vmatprep.subr.bf16.mxu0 %v8792_v12  ;;  %2690 = vmatprep.subr.bf16.mxu1 %v8793_v30  ;;  %v4873_v12 = vld [vmem:[%s8274_s7 + $0x118] sm:$0xff]   ;;  %v4874_v30 = vld [vmem:[%s8274_s7 + $0x120] sm:$0xff]  }
 0x8ed   :  { %2650 = vmatpush1.bf16.msra.mxu0 %v8794_v57  ;;  %2691 = vmatpush1.bf16.msra.mxu1 %v8795_v7  ;;  %v4875_v57 = vld [vmem:[%s8274_s7 + $0x128] sm:$0xff]   ;;  %v4876_v7 = vld [vmem:[%s8274_s7 + $0x130] sm:$0xff]  }
 0x8ee   :  { %2836 = vmatprep.subr.bf16.mxu1 %v8796_v10  ;;  %4505 = vmatprep.subr.bf16.mxu0 %v8797_v11  ;;  %v4877_v10 = vld [vmem:[%s8274_s7 + $0x138] sm:$0xff]  }
 0x8f0   :  { %2668 = vmatmul.mubr.bf16.vlgmr.msra.gmra.mrb[56].mxu0 %v7107_v23  ;;  %2709 = vmatmul.mubr.bf16.vlgmr.msra.gmra.mrb[56].mxu1 %v7107_v23  ;;  %v8812_v23 = vld [vmem:[#allocation51_spill] sm:$0xff] }
 0x8f1   :  { %2837 = vmatpush1.bf16.msra.mxu1 %v8798_v2  ;;  %2868 = vmatprep.mubr.bf16.mxu1 %v8554_v61  ;;  %v8830_v2 = vld [vmem:[#allocation53_spill] sm:$0xff] }
 0x8f2   :  { %2838 = vmatprep.subr.bf16.mxu1 %v8799_v60  ;;  %4521 = vmatprep.mubr.msk.bf16.mxu0 %vm5273_vm1, %v8797_v11 }
 0x8f3   :  { %4506 = vmatpush3.bf16.msra.mxu0 %v4870_v35 }
 0x8f4   :  { %4507 = vmatprep.subr.bf16.mxu0 %v8797_v11 }
 0x8f5   :  { %2839 = vmatpush1.bf16.msra.mxu1 %v8800_v33 }
 0x8f6   :  { %2840 = vmatprep.subr.bf16.mxu1 %v8801_v8  ;;  %v8831_v8 = vld [vmem:[#allocation77_spill] sm:$0xff] }
 0x8f7   :  { %4508 = vmatpush3.bf16.msra.mxu0 %v4871_v43 }
 0x8f8   :  { %4509 = vmatprep.subr.bf16.mxu0 %v8797_v11 }
 0x8f9   :  { %2841 = vmatpush1.bf16.msra.mxu1 %v8802_v6 }
 0x8fa   :  { %2842 = vmatprep.subr.bf16.mxu1 %v8803_v52 }
 0x8fb   :  { %4510 = vmatpush3.bf16.msra.mxu0 %v4872_v20 }
 0x8fc   :  { %4511 = vmatprep.subr.bf16.mxu0 %v8797_v11 }
 0x8fd   :  { %2843 = vmatpush1.bf16.msra.mxu1 %v8804_v29 }
 0x8fe   :  { %2844 = vmatprep.subr.bf16.mxu1 %v8805_v32 }
 0x8ff   :  { %4512 = vmatpush3.bf16.msra.mxu0 %v4873_v12 }
 0x900   :  { %4513 = vmatprep.subr.bf16.mxu0 %v8797_v11 }
 0x901   :  { %2845 = vmatpush1.bf16.msra.mxu1 %v8806_v56 }
 0x902   :  { %2846 = vmatprep.subr.bf16.mxu1 %v8807_v25 }
 0x903   :  { %4514 = vmatpush3.bf16.msra.mxu0 %v4874_v30 }
 0x904   :  { %4515 = vmatprep.subr.bf16.mxu0 %v8797_v11 }
 0x905   :  { %2847 = vmatpush1.bf16.msra.mxu1 %v8808_v37 }
 0x906   :  { %2848 = vmatprep.subr.bf16.mxu1 %v8809_v4 }
 0x907   :  { %4516 = vmatpush3.bf16.msra.mxu0 %v4875_v57 }
 0x908   :  { %4517 = vmatprep.subr.bf16.mxu0 %v8797_v11 }
 0x909   :  { %2849 = vmatpush1.bf16.msra.mxu1 %v8810_v62 }
 0x90a   :  { %2850 = vmatprep.subr.bf16.mxu1 %v8811_v40 }
 0x90b   :  { %4518 = vmatpush3.bf16.msra.mxu0 %v4876_v7 }
 0x90c   :  { %4519 = vmatprep.subr.bf16.mxu0 %v8797_v11 }
 0x90d   :  { %2851 = vmatpush1.bf16.msra.mxu1 %v8812_v23 }
 0x90e   :  { %2958 = vmatprep.subr.bf16.mxu1 %v7304_v51 }
 0x90f   :  { %4520 = vmatpush3.bf16.msra.mxu0 %v4877_v10 }
 0x910   :  { %2869 = vmatmul.mubr.bf16.vlgmr.msra.gmra.mrb[60].mxu1 %v7243_v15  ;;  %2877 = vmatprep.subr.bf16.mxu0 %v8830_v2 }
 0x911   :  { %2959 = vmatpush1.bf16.msra.mxu1 %v7311_v36  ;;  %2990 = vmatprep.mubr.bf16.mxu1 %v8554_v61 }
 0x912   :  { %2960 = vmatprep.subr.bf16.mxu1 %v7318_v42 }
 0x915   :  { %2961 = vmatpush1.bf16.msra.mxu1 %v7324_v58 }
 0x916   :  { %2962 = vmatprep.subr.bf16.mxu1 %v7330_v34 }
 0x919   :  { %2963 = vmatpush1.bf16.msra.mxu1 %v7336_v14 }
 0x91a   :  { %2964 = vmatprep.subr.bf16.mxu1 %v7342_v3 }
 0x91d   :  { %2965 = vmatpush1.bf16.msra.mxu1 %v7348_v44 }
 0x91e   :  { %2966 = vmatprep.subr.bf16.mxu1 %v7354_v17 }
 0x921   :  { %2967 = vmatpush1.bf16.msra.mxu1 %v7360_v5 }
 0x922   :  { %2968 = vmatprep.subr.bf16.mxu1 %v7366_v0 }
 0x925   :  { %2969 = vmatpush1.bf16.msra.mxu1 %v7372_v54 }
 0x926   :  { %2970 = vmatprep.subr.bf16.mxu1 %v7378_v1 }
 0x929   :  { %2971 = vmatpush1.bf16.msra.mxu1 %v7384_v45 }
 0x92a   :  { %2972 = vmatprep.subr.bf16.mxu1 %v7390_v63 }
 0x92d   :  { %2973 = vmatpush1.bf16.msra.mxu1 %v7396_v38 }
 0x92e   :  { %3040 = vmatprep.subr.bf16.mxu1 %v7402_v9 }
 0x9c3   :  { %v2669_v60 = vpop.f32.mrb[56].mxu0  ;;  %v2710_v33 = vpop.f32.mrb[56].mxu1 }
 0x9c4   :  { %v4601_v6 = vadd.f32 %v2669_v60, %v8831_v8  ;;  %v2671_v52 = vpop.f32.mrb[57].mxu0  ;;  %v2712_v29 = vpop.f32.mrb[57].mxu1  ;;  %v4603_v23 = vadd.f32 %v2710_v33, %v6097_v27 }
 0x9c5   :  { %v4602_v32 = vadd.f32 %v2671_v52, %v6091_v21  ;;  %v2673_v56 = vpop.f32.mrb[58].mxu0  ;;  %v2714_v25 = vpop.f32.mrb[58].mxu1  ;;  %v4604_v35 = vadd.f32 %v2712_v29, %v6120_v41  ;;  %v8832_v29 = vld [vmem:[#allocation65_spill] sm:$0xff] }
 0x9c6   :  { %v2721_v37 = vmul.f32 0.5, %v4601_v6  ;;  %v2674_v4 = vpop.f32.mrb[59].mxu0  ;;  %v2715_v62 = vpop.f32.mrb[59].mxu1  ;;  %v179_v56 = vadd.f32 %v8832_v29, %v5580_v49  ;;  %v8833_v25 = vld [vmem:[#allocation67_spill] sm:$0xff] }
 0x9c7   :  { %v2725_v40 = vmul.f32 0.5, %v4602_v32  ;;  %v2730_v43 = vmul.f32 0.5, %v4604_v35 }
 0x9c8   :  { %4992 = vtanh.f32 %v2721_v37  ;;  %v181_v37 = vadd.f32 %v8833_v25, %v5584_v50 }
 0x9c9   :  { %4994 = vtanh.f32 %v2725_v40 }
 0x9ca   :  { %4996 = vtanh.f32 %v4603_v23 }
 0x9cb   :  { %4998 = vtanh.f32 %v2730_v43 }
 0x9d2   :  { %v4993_v20 = vpop.eup %4992 }
 0x9d3   :  { %v4995_v12 = vpop.eup %4994  ;;  %v2723_v30 = vmul.f32 0.5, %v4993_v20 }
 0x9d4   :  { %v2727_v57 = vmul.f32 0.5, %v4995_v12  ;;  %v4997_v10 = vpop.eup %4996 }
 0x9d5   :  { %v2724_v7 = vadd.f32 0.5, %v2723_v30  ;;  %v4999_v33 = vpop.eup %4998 }
 0x9d6   :  { %v2728_v2 = vadd.f32 0.5, %v2727_v57  ;;  %v2732_v32 = vmul.f32 0.5, %v4999_v33  ;;  %v8848_v57 = vld [vmem:[#allocation7_spill] sm:$0xff]  ;;  %v8853_v33 = vld [vmem:[#allocation12_spill] sm:$0xff] }
 0x9d7   :  { %v2735_v60 = vmul.f32 %v4997_v10, %v2724_v7  ;;  %v8849_v7 = vld [vmem:[#allocation8_spill] sm:$0xff]  ;;  %v8850_v10 = vld [vmem:[#allocation9_spill] sm:$0xff] }
 0x9d8   :  { %v2734_v6 = vmul.f32 %v2728_v2, %v7096_v39  ;;  %v2733_v23 = vadd.f32 0.5, %v2732_v32  ;;  %v8851_v2 = vld [vmem:[#allocation10_spill] sm:$0xff] }
 0x9da   :  { %v7442_v52 = vadd.f32 %v2735_v60, %v2734_v6  ;;  %v8852_v60 = vld [vmem:[#allocation11_spill] sm:$0xff] }
 0x9dc   :  { %5000 = vtanh.f32 %v7442_v52 }
 0x9e3   :  { %v2870_v4 = vpop.f32.mrb[60].mxu1 }
 0x9e4   :  { %v2918_v62 = vadd.f32 %v2870_v4, %v179_v56  ;;  %v2872_v40 = vpop.f32.mrb[61].mxu1 }
 0x9e5   :  { %v2919_v35 = vadd.f32 %v2872_v40, %v181_v37  ;;  %v2874_v43 = vpop.f32.mrb[62].mxu1  ;;  %v8854_v40 = vld [vmem:[#allocation3_spill] sm:$0xff] }
 0x9e6   :  { %v5001_v20 = vpop.eup %5000  ;;  %v2875_v39 = vpop.f32.mrb[63].mxu1  ;;  %v2922_v4 = vmul.f32 0.5, %v2918_v62 }
 0x9e7   :  { %v2738_v12 = vmul.f32 %v5001_v20, %v2733_v23  ;;  %v2926_v37 = vmul.f32 0.5, %v2919_v35  ;;  %v8855_v23 = vld [vmem:[#allocation66_spill] sm:$0xff]  ;;  %v8856_v20 = vld [vmem:[#allocation68_spill] sm:$0xff] }
 0x9e8   :  { %v252_v43 = vadd.f32 %v8855_v23, %v8854_v40  ;;  %v254_v39 = vadd.f32 %v8856_v20, %v8716_v55 }
 0x9e9   :  { %v7449_v30 = vpack.c.bf16 %v2738_v12, %v2738_v12  ;;  %5002 = vtanh.f32 %v2926_v37 }
 0x9ea   :  { %5004 = vtanh.f32 %v2922_v4 }
 0x9eb   :  { %4522 = vmatmul.mubr.bf16.vlgmr.msra.gmra.mrb[60].mxu0 %v7449_v30 }
 0x9ec   :  { %2878 = vmatpush1.bf16.msra.mxu0 %v6863_v59  ;;  %2909 = vmatprep.mubr.bf16.mxu0 %v8554_v61  ;;  %v8834_v59 = vld [vmem:[#allocation55_spill] sm:$0xff] }
 0x9ed   :  { %2879 = vmatprep.subr.bf16.mxu0 %v6870_v53  ;;  %v8835_v53 = vld [vmem:[#allocation57_spill] sm:$0xff] }
 0x9f0   :  { %2880 = vmatpush1.bf16.msra.mxu0 %v6876_v13  ;;  %v8836_v13 = vld [vmem:[#allocation5_spill] sm:$0xff] }
 0x9f1   :  { %2881 = vmatprep.subr.bf16.mxu0 %v6882_v18  ;;  %v8837_v18 = vld [vmem:[#allocation6_spill] sm:$0xff] }
 0x9f4   :  { %2882 = vmatpush1.bf16.msra.mxu0 %v6888_v46  ;;  %v8838_v46 = vld [vmem:[#allocation24_spill] sm:$0xff] }
 0x9f5   :  { %2883 = vmatprep.subr.bf16.mxu0 %v6894_v47  ;;  %v8839_v47 = vld [vmem:[#allocation59_spill] sm:$0xff] }
 0x9f8   :  { %2884 = vmatpush1.bf16.msra.mxu0 %v6900_v24  ;;  %v8840_v24 = vld [vmem:[#allocation4_spill] sm:$0xff] }
 0x9f9   :  { %2885 = vmatprep.subr.bf16.mxu0 %v6906_v28  ;;  %v8841_v28 = vld [vmem:[#allocation60_spill] sm:$0xff] }
 0x9fc   :  { %2886 = vmatpush1.bf16.msra.mxu0 %v6912_v48  ;;  %v8842_v48 = vld [vmem:[#allocation25_spill] sm:$0xff] }
 0x9fd   :  { %2887 = vmatprep.subr.bf16.mxu0 %v6918_v31  ;;  %v8843_v31 = vld [vmem:[#allocation26_spill] sm:$0xff] }
 0xa00   :  { %2888 = vmatpush1.bf16.msra.mxu0 %v6924_v19  ;;  %v8844_v19 = vld [vmem:[#allocation27_spill] sm:$0xff] }
 0xa01   :  { %2889 = vmatprep.subr.bf16.mxu0 %v6930_v22  ;;  %v8845_v22 = vld [vmem:[#allocation28_spill] sm:$0xff] }
 0xa04   :  { %2890 = vmatpush1.bf16.msra.mxu0 %v6936_v26  ;;  %v8846_v26 = vld [vmem:[#allocation30_spill] sm:$0xff] }
 0xa05   :  { %2891 = vmatprep.subr.bf16.mxu0 %v8834_v59 }
 0xa08   :  { %2892 = vmatpush1.bf16.msra.mxu0 %v8835_v53 }
 0xa09   :  { %2999 = vmatprep.subr.bf16.mxu0 %v8836_v13 }
 0xa0b   :  { %2910 = vmatmul.mubr.bf16.vlgmr.msra.gmra.mrb[64].mxu0 %v7243_v15  ;;  %v8847_v15 = vld [vmem:[#allocation32_spill] sm:$0xff] }
 0xa0c   :  { %3000 = vmatpush1.bf16.msra.mxu0 %v8837_v18  ;;  %3031 = vmatprep.mubr.bf16.mxu0 %v8554_v61 }
 0xa0d   :  { %3001 = vmatprep.subr.bf16.mxu0 %v8838_v46 }
 0xa10   :  { %3002 = vmatpush1.bf16.msra.mxu0 %v8839_v47 }
 0xa11   :  { %3003 = vmatprep.subr.bf16.mxu0 %v8840_v24 }
 0xa14   :  { %3004 = vmatpush1.bf16.msra.mxu0 %v8841_v28 }
 0xa15   :  { %3005 = vmatprep.subr.bf16.mxu0 %v8842_v48 }
 0xa18   :  { %3006 = vmatpush1.bf16.msra.mxu0 %v8843_v31 }
 0xa19   :  { %3007 = vmatprep.subr.bf16.mxu0 %v8844_v19 }
 0xa1c   :  { %3008 = vmatpush1.bf16.msra.mxu0 %v8845_v22 }
 0xa1d   :  { %3009 = vmatprep.subr.bf16.mxu0 %v8846_v26 }
 0xa20   :  { %3010 = vmatpush1.bf16.msra.mxu0 %v8847_v15 }
 0xa21   :  { %3011 = vmatprep.subr.bf16.mxu0 %v8848_v57 }
 0xa24   :  { %3012 = vmatpush1.bf16.msra.mxu0 %v8849_v7 }
 0xa25   :  { %3013 = vmatprep.subr.bf16.mxu0 %v8850_v10 }
 0xa28   :  { %3014 = vmatpush1.bf16.msra.mxu0 %v8851_v2 }
 0xa29   :  { %3081 = vmatprep.subr.bf16.mxu0 %v8852_v60 }
 0xabe   :  { %v2822_v6 = vpop.f32.mrb[60].mxu0 }
 0xabf   :  { %v7488_v32 = vadd.f32 %v2822_v6, %v8853_v33  ;;  %v4523_v29 = vpop.f32.mrb[61].mxu0  ;;  %v5003_v6 = vpop.eup %5002 }
 0xac0   :  { %v2825_v56 = vpop.f32.mrb[62].mxu0  ;;  %v5005_v29 = vpop.eup %5004 }
 0xac1   :  { %v4524_v25 = vpop.f32.mrb[63].mxu0  ;;  %v2928_v56 = vmul.f32 0.5, %v5003_v6  ;;  %v2924_v62 = vmul.f32 0.5, %v5005_v29  ;;  %v7523_v6 = vld [vmem:[%s8271_s5 + $0x2c] ss:$16 sps:$4 sm:$0xff]  }
 0xac2   :  { %v7537_v29 = vld [vmem:[%s8271_s5 + $0x28] ss:$16 sps:$4 sm:$0xff]  }
 0xac3   :  { %v2929_v25 = vadd.f32 0.5, %v2928_v56  ;;  %v2925_v37 = vadd.f32 0.5, %v2924_v62  ;;  %v7543_v56 = vld [vmem:[%s8271_s5 + $0x44] ss:$16 sps:$4 sm:$0xff]   ;;  %v7555_v62 = vld [vmem:[%s8271_s5 + $0x40] ss:$16 sps:$4 sm:$0xff]  }
 0xac5   :  { %v2935_v23 = vmul.f32 %v2929_v25, %v7240_v16  ;;  %v7505_v16 = vld [vmem:[%s8271_s5] ss:$16 sps:$4 sm:$0xff]   ;;  %v7561_v25 = vld [vmem:[%s8271_s5 + $0x48] ss:$16 sps:$4 sm:$0xff]  }
 0xade   :  { %v2911_v12 = vpop.f32.mrb[64].mxu0 }
 0xadf   :  { %v2920_v59 = vadd.f32 %v2911_v12, %v252_v43  ;;  %v2913_v53 = vpop.f32.mrb[65].mxu0 }
 0xae0   :  { %v2921_v60 = vadd.f32 %v2913_v53, %v254_v39  ;;  %v2915_v2 = vpop.f32.mrb[66].mxu0 }
 0xae1   :  { %5006 = vtanh.f32 %v2920_v59  ;;  %v2916_v33 = vpop.f32.mrb[67].mxu0 }
 0xae2   :  { %v2931_v35 = vmul.f32 0.5, %v2921_v60  ;;  %v7511_v60 = vld [vmem:[%s8271_s5 + $0x8] ss:$16 sps:$4 sm:$0xff]   ;;  %v7531_v33 = vld [vmem:[%s8271_s5 + $0x20] ss:$16 sps:$4 sm:$0xff]  }
 0xae4   :  { %5008 = vtanh.f32 %v2931_v35  ;;  %v7549_v35 = vld [vmem:[%s8271_s5 + $0x4c] ss:$16 sps:$4 sm:$0xff]  }
 0xaeb   :  { %v5007_v4 = vpop.eup %5006 }
 0xaec   :  { %v2936_v40 = vmul.f32 %v5007_v4, %v2925_v37  ;;  %v7567_v37 = vld [vmem:[%s8271_s5 + $0x64] ss:$16 sps:$4 sm:$0xff]   ;;  %v7573_v4 = vld [vmem:[%s8271_s5 + $0x6c] ss:$16 sps:$4 sm:$0xff]  }
 0xaee   :  { %v7495_v20 = vadd.f32 %v2936_v40, %v2935_v23  ;;  %v5009_v43 = vpop.eup %5008  ;;  %v7517_v40 = vld [vmem:[%s8271_s5 + $0x24] ss:$16 sps:$4 sm:$0xff]   ;;  %v7579_v23 = vld [vmem:[%s8271_s5 + $0x60] ss:$16 sps:$4 sm:$0xff]  }
 0xaef   :  { %v2933_v2 = vmul.f32 0.5, %v5009_v43  ;;  %v7585_v43 = vld [vmem:[%s8271_s5 + $0x68] ss:$16 sps:$4 sm:$0xff]  }
 0xaf0   :  { %5010 = vtanh.f32 %v7495_v20 }
 0xaf1   :  { %v2934_v39 = vadd.f32 0.5, %v2933_v2  ;;  %v7591_v2 = vld [vmem:[%s8271_s5 + $0x84] ss:$16 sps:$4 sm:$0xff]  }
 0xaf2   :  { %8857 = vst [vmem:[#allocation36_spill] sm:$0xff] %v7591_v2 }
 0xafa   :  { %v5011_v12 = vpop.eup %5010 }
 0xafb   :  { %v2939_v59 = vmul.f32 %v5011_v12, %v2934_v39  ;;  %v7597_v39 = vld [vmem:[%s8271_s5 + $0x8c] ss:$16 sps:$4 sm:$0xff]   ;;  %v7603_v12 = vld [vmem:[%s8271_s5 + $0x80] ss:$16 sps:$4 sm:$0xff]  }
 0xafc   :  { %8858 = vst [vmem:[#allocation38_spill] sm:$0xff] %v7597_v39  ;;  %8859 = vst [vmem:[#allocation40_spill] sm:$0xff] %v7603_v12 }
 0xafd   :  { %v7498_v53 = vpack.c.bf16 %v2939_v59, %v2939_v59  ;;  %v7609_v59 = vld [vmem:[%s8271_s5 + $0x88] ss:$16 sps:$4 sm:$0xff]  }
 0xafe   :  { %8860 = vst [vmem:[#allocation42_spill] sm:$0xff] %v7609_v59 }
 0xaff   :  { %2991 = vmatmul.mubr.bf16.vlgmr.msra.gmra.mrb[64].mxu1 %v7498_v53  ;;  %3032 = vmatmul.mubr.bf16.vlgmr.msra.gmra.mrb[68].mxu0 %v7498_v53 }
 0xb00   :  { %3041 = vmatpush1.bf16.msra.mxu1 %v7505_v16  ;;  %3082 = vmatpush1.bf16.msra.mxu0 %v7511_v60 }
 0xb01   :  { %3042 = vmatprep.subr.bf16.mxu1 %v7517_v40  ;;  %3083 = vmatprep.subr.bf16.mxu0 %v7523_v6 }
 0xb02   :  { %3072 = vmatprep.mubr.bf16.mxu1 %v8554_v61  ;;  %3113 = vmatprep.mubr.bf16.mxu0 %v8554_v61 }
 0xb04   :  { %3043 = vmatpush1.bf16.msra.mxu1 %v7531_v33  ;;  %3084 = vmatpush1.bf16.msra.mxu0 %v7537_v29 }
 0xb05   :  { %3044 = vmatprep.subr.bf16.mxu1 %v7543_v56  ;;  %3085 = vmatprep.subr.bf16.mxu0 %v7549_v35 }
 0xb08   :  { %3045 = vmatpush1.bf16.msra.mxu1 %v7555_v62  ;;  %3086 = vmatpush1.bf16.msra.mxu0 %v7561_v25 }
 0xb09   :  { %3046 = vmatprep.subr.bf16.mxu1 %v7567_v37  ;;  %3087 = vmatprep.subr.bf16.mxu0 %v7573_v4 }
 0xb0c   :  { %3047 = vmatpush1.bf16.msra.mxu1 %v7579_v23  ;;  %3088 = vmatpush1.bf16.msra.mxu0 %v7585_v43 }
 0xb0d   :  { %3048 = vmatprep.subr.bf16.mxu1 %v7591_v2  ;;  %3089 = vmatprep.subr.bf16.mxu0 %v7597_v39  ;;  %v7615_v2 = vld [vmem:[%s8271_s5 + $0xa4] ss:$16 sps:$4 sm:$0xff]   ;;  %v7621_v39 = vld [vmem:[%s8271_s5 + $0xac] ss:$16 sps:$4 sm:$0xff]  }
 0xb0e   :  { %8861 = vst [vmem:[#allocation44_spill] sm:$0xff] %v7615_v2  ;;  %8862 = vst [vmem:[#allocation46_spill] sm:$0xff] %v7621_v39 }
 0xb10   :  { %3049 = vmatpush1.bf16.msra.mxu1 %v7603_v12  ;;  %3090 = vmatpush1.bf16.msra.mxu0 %v7609_v59  ;;  %v7627_v12 = vld [vmem:[%s8271_s5 + $0xa0] ss:$16 sps:$4 sm:$0xff]   ;;  %v7633_v59 = vld [vmem:[%s8271_s5 + $0xa8] ss:$16 sps:$4 sm:$0xff]  }
 0xb11   :  { %3050 = vmatprep.subr.bf16.mxu1 %v7615_v2  ;;  %3091 = vmatprep.subr.bf16.mxu0 %v7621_v39  ;;  %8863 = vst [vmem:[#allocation48_spill] sm:$0xff] %v7627_v12  ;;  %8864 = vst [vmem:[#allocation50_spill] sm:$0xff] %v7633_v59  ;;  %v7639_v2 = vld [vmem:[%s8271_s5 + $0xc4] ss:$16 sps:$4 sm:$0xff]   ;;  %v7645_v39 = vld [vmem:[%s8271_s5 + $0xcc] ss:$16 sps:$4 sm:$0xff]  }
 0xb12   :  { %8865 = vst [vmem:[#allocation52_spill] sm:$0xff] %v7639_v2  ;;  %8866 = vst [vmem:[#allocation54_spill] sm:$0xff] %v7645_v39 }
 0xb14   :  { %3051 = vmatpush1.bf16.msra.mxu1 %v7627_v12  ;;  %3092 = vmatpush1.bf16.msra.mxu0 %v7633_v59  ;;  %v7651_v12 = vld [vmem:[%s8271_s5 + $0xc0] ss:$16 sps:$4 sm:$0xff]   ;;  %v7657_v59 = vld [vmem:[%s8271_s5 + $0xc8] ss:$16 sps:$4 sm:$0xff]  }
 0xb15   :  { %3052 = vmatprep.subr.bf16.mxu1 %v7639_v2  ;;  %3093 = vmatprep.subr.bf16.mxu0 %v7645_v39  ;;  %8867 = vst [vmem:[#allocation56_spill] sm:$0xff] %v7651_v12  ;;  %8868 = vst [vmem:[#allocation29_spill] sm:$0xff] %v7657_v59  ;;  %v7663_v2 = vld [vmem:[%s8271_s5 + $0xe4] ss:$16 sps:$4 sm:$0xff]   ;;  %v7669_v39 = vld [vmem:[%s8271_s5 + $0xec] ss:$16 sps:$4 sm:$0xff]  }
 0xb16   :  { %8869 = vst [vmem:[#allocation31_spill] sm:$0xff] %v7663_v2  ;;  %8870 = vst [vmem:[#allocation33_spill] sm:$0xff] %v7669_v39 }
 0xb18   :  { %3053 = vmatpush1.bf16.msra.mxu1 %v7651_v12  ;;  %3094 = vmatpush1.bf16.msra.mxu0 %v7657_v59  ;;  %v7675_v12 = vld [vmem:[%s8271_s5 + $0xe0] ss:$16 sps:$4 sm:$0xff]   ;;  %v7681_v59 = vld [vmem:[%s8271_s5 + $0xe8] ss:$16 sps:$4 sm:$0xff]  }
 0xb19   :  { %3054 = vmatprep.subr.bf16.mxu1 %v7663_v2  ;;  %3095 = vmatprep.subr.bf16.mxu0 %v7669_v39  ;;  %8871 = vst [vmem:[#allocation35_spill] sm:$0xff] %v7675_v12  ;;  %8872 = vst [vmem:[#allocation37_spill] sm:$0xff] %v7681_v59  ;;  %v7687_v2 = vld [vmem:[%s8272_s2 + $0x4] ss:$16 sps:$4 sm:$0xff]  }
 0xb1a   :  { %8873 = vst [vmem:[#allocation39_spill] sm:$0xff] %v7687_v2 }
 0xb1c   :  { %3055 = vmatpush1.bf16.msra.mxu1 %v7675_v12  ;;  %3096 = vmatpush1.bf16.msra.mxu0 %v7681_v59  ;;  %v7696_v12 = vld [vmem:[%s8272_s2] ss:$16 sps:$4 sm:$0xff]   ;;  %v7703_v59 = vld [vmem:[%s8272_s2 + $0x24] ss:$16 sps:$4 sm:$0xff]  }
 0xb1d   :  { %3241 = vmatprep.subr.bf16.mxu0 %v7687_v2  ;;  %4525 = vmatprep.subr.bf16.mxu1 %v8797_v11  ;;  %8874 = vst [vmem:[#allocation41_spill] sm:$0xff] %v7696_v12  ;;  %8875 = vst [vmem:[#allocation43_spill] sm:$0xff] %v7703_v59  ;;  %v7729_v2 = vld [vmem:[%s8272_s2 + $0x64] ss:$16 sps:$4 sm:$0xff]  }
 0xb1e   :  { %8879 = vst [vmem:[#allocation51_spill] sm:$0xff] %v7729_v2 }
 0xb1f   :  { %3073 = vmatmul.mubr.bf16.vlgmr.msra.gmra.mrb[64].mxu1 %v7449_v30  ;;  %3114 = vmatmul.mubr.bf16.vlgmr.msra.gmra.mrb[68].mxu0 %v7449_v30  ;;  %v7711_v30 = vld [vmem:[%s8272_s2 + $0x20] ss:$16 sps:$4 sm:$0xff]  }
 0xb20   :  { %3242 = vmatpush1.bf16.msra.mxu0 %v7696_v12  ;;  %3273 = vmatprep.mubr.bf16.mxu0 %v8554_v61  ;;  %8876 = vst [vmem:[#allocation45_spill] sm:$0xff] %v7711_v30  ;;  %v7717_v12 = vld [vmem:[%s8272_s2 + $0x44] ss:$16 sps:$4 sm:$0xff]  }
 0xb21   :  { %3243 = vmatprep.subr.bf16.mxu0 %v7703_v59  ;;  %4541 = vmatprep.mubr.msk.bf16.mxu1 %vm5273_vm1, %v8797_v11  ;;  %8877 = vst [vmem:[#allocation47_spill] sm:$0xff] %v7717_v12  ;;  %v7723_v59 = vld [vmem:[%s8272_s2 + $0x40] ss:$16 sps:$4 sm:$0xff]  }
 0xb22   :  { %8878 = vst [vmem:[#allocation49_spill] sm:$0xff] %v7723_v59 }
 0xb24   :  { %3244 = vmatpush1.bf16.msra.mxu0 %v7711_v30  ;;  %v7735_v30 = vld [vmem:[%s8272_s2 + $0x60] ss:$16 sps:$4 sm:$0xff]  }
 0xb25   :  { %3245 = vmatprep.subr.bf16.mxu0 %v7717_v12  ;;  %8880 = vst [vmem:[#allocation53_spill] sm:$0xff] %v7735_v30  ;;  %v7741_v12 = vld [vmem:[%s8272_s2 + $0x84] ss:$16 sps:$4 sm:$0xff]  }
 0xb26   :  { %8881 = vst [vmem:[#allocation65_spill] sm:$0xff] %v7741_v12 }
 0xb28   :  { %3246 = vmatpush1.bf16.msra.mxu0 %v7723_v59  ;;  %v7747_v59 = vld [vmem:[%s8272_s2 + $0x80] ss:$16 sps:$4 sm:$0xff]  }
 0xb29   :  { %3247 = vmatprep.subr.bf16.mxu0 %v7729_v2  ;;  %8882 = vst [vmem:[#allocation67_spill] sm:$0xff] %v7747_v59  ;;  %v7753_v2 = vld [vmem:[%s8272_s2 + $0xa4] ss:$16 sps:$4 sm:$0xff]  }
 0xb2a   :  { %8883 = vst [vmem:[#allocation55_spill] sm:$0xff] %v7753_v2 }
 0xb2c   :  { %3248 = vmatpush1.bf16.msra.mxu0 %v7735_v30  ;;  %v7759_v30 = vld [vmem:[%s8272_s2 + $0xa0] ss:$16 sps:$4 sm:$0xff]  }
 0xb2d   :  { %3249 = vmatprep.subr.bf16.mxu0 %v7741_v12  ;;  %8884 = vst [vmem:[#allocation57_spill] sm:$0xff] %v7759_v30  ;;  %v7765_v12 = vld [vmem:[%s8272_s2 + $0xc4] ss:$16 sps:$4 sm:$0xff]  }
 0xb30   :  { %3250 = vmatpush1.bf16.msra.mxu0 %v7747_v59  ;;  %v7771_v59 = vld [vmem:[%s8272_s2 + $0xc0] ss:$16 sps:$4 sm:$0xff]  }
 0xb31   :  { %3251 = vmatprep.subr.bf16.mxu0 %v7753_v2  ;;  %v7777_v2 = vld [vmem:[%s8272_s2 + $0xe4] ss:$16 sps:$4 sm:$0xff]  }
 0xb34   :  { %3252 = vmatpush1.bf16.msra.mxu0 %v7759_v30  ;;  %v7783_v30 = vld [vmem:[%s8272_s2 + $0xe0] ss:$16 sps:$4 sm:$0xff]  }
 0xb35   :  { %3253 = vmatprep.subr.bf16.mxu0 %v7765_v12 }
 0xb38   :  { %3254 = vmatpush1.bf16.msra.mxu0 %v7771_v59 }
 0xb39   :  { %3255 = vmatprep.subr.bf16.mxu0 %v7777_v2 }
 0xb3c   :  { %3256 = vmatpush1.bf16.msra.mxu0 %v7783_v30 }
 0xb3d   :  { %3363 = vmatprep.subr.bf16.mxu0 %v7304_v51 }
 0xb3f   :  { %3274 = vmatmul.mubr.bf16.vlgmr.msra.gmra.mrb[72].mxu0 %v7498_v53 }
 0xb40   :  { %3364 = vmatpush1.bf16.msra.mxu0 %v7311_v36  ;;  %3395 = vmatprep.mubr.bf16.mxu0 %v8554_v61 }
 0xb41   :  { %3365 = vmatprep.subr.bf16.mxu0 %v7318_v42 }
 0xb44   :  { %3366 = vmatpush1.bf16.msra.mxu0 %v7324_v58 }
 0xb45   :  { %3367 = vmatprep.subr.bf16.mxu0 %v7330_v34 }
 0xb48   :  { %3368 = vmatpush1.bf16.msra.mxu0 %v7336_v14 }
 0xb49   :  { %3369 = vmatprep.subr.bf16.mxu0 %v7342_v3 }
 0xb4c   :  { %3370 = vmatpush1.bf16.msra.mxu0 %v7348_v44 }
 0xb4d   :  { %3371 = vmatprep.subr.bf16.mxu0 %v7354_v17  ;;  %v4878_v17 = vld [vmem:[%s8274_s7 + $0x140] sm:$0xff]  }
 0xb4e   :  { %4526 = vmatpush3.bf16.msra.mxu1 %v4878_v17  ;;  %v4881_v17 = vld [vmem:[%s8274_s7 + $0x158] sm:$0xff]  }
 0xb4f   :  { %4527 = vmatprep.subr.bf16.mxu1 %v8797_v11 }
 0xb50   :  { %3372 = vmatpush1.bf16.msra.mxu0 %v7360_v5 }
 0xb51   :  { %3373 = vmatprep.subr.bf16.mxu0 %v7366_v0 }
 0xb54   :  { %3374 = vmatpush1.bf16.msra.mxu0 %v7372_v54  ;;  %v4879_v54 = vld [vmem:[%s8274_s7 + $0x148] sm:$0xff]  }
 0xb55   :  { %3375 = vmatprep.subr.bf16.mxu0 %v7378_v1  ;;  %4528 = vmatpush3.bf16.msra.mxu1 %v4879_v54  ;;  %v4882_v54 = vld [vmem:[%s8274_s7 + $0x160] sm:$0xff]  }
 0xb56   :  { %4529 = vmatprep.subr.bf16.mxu1 %v8797_v11 }
 0xb58   :  { %3376 = vmatpush1.bf16.msra.mxu0 %v7384_v45 }
 0xb59   :  { %3377 = vmatprep.subr.bf16.mxu0 %v7390_v63 }
 0xb5c   :  { %3378 = vmatpush1.bf16.msra.mxu0 %v7396_v38  ;;  %v4880_v38 = vld [vmem:[%s8274_s7 + $0x150] sm:$0xff]  }
 0xb5d   :  { %3445 = vmatprep.subr.bf16.mxu0 %v7402_v9  ;;  %4530 = vmatpush3.bf16.msra.mxu1 %v4880_v38  ;;  %v4883_v38 = vld [vmem:[%s8274_s7 + $0x168] sm:$0xff]  }
 0xb5e   :  { %4531 = vmatprep.subr.bf16.mxu1 %v8797_v11  ;;  %v7839_v9 = vld [vmem:[%s8272_s2 + $0xc] ss:$16 sps:$4 sm:$0xff]  }
 0xb5f   :  { %8885 = vst [vmem:[#allocation5_spill] sm:$0xff] %v7839_v9 }
 0xb61   :  { %4532 = vmatpush3.bf16.msra.mxu1 %v4881_v17  ;;  %v4884_v17 = vld [vmem:[%s8274_s7 + $0x170] sm:$0xff]  }
 0xb62   :  { %4533 = vmatprep.subr.bf16.mxu1 %v8797_v11 }
 0xb65   :  { %4534 = vmatpush3.bf16.msra.mxu1 %v4882_v54  ;;  %v4885_v54 = vld [vmem:[%s8274_s7 + $0x178] sm:$0xff]  }
 0xb66   :  { %4535 = vmatprep.subr.bf16.mxu1 %v8797_v11 }
 0xb69   :  { %4536 = vmatpush3.bf16.msra.mxu1 %v4883_v38 }
 0xb6a   :  { %4537 = vmatprep.subr.bf16.mxu1 %v8797_v11 }
 0xb6d   :  { %4538 = vmatpush3.bf16.msra.mxu1 %v4884_v17 }
 0xb6e   :  { %4539 = vmatprep.subr.bf16.mxu1 %v8797_v11 }
 0xb71   :  { %4540 = vmatpush3.bf16.msra.mxu1 %v4885_v54 }
 0xb72   :  { %3282 = vmatprep.subr.bf16.mxu1 %v7839_v9 }
 0xbf2   :  { %v3074_v38 = vpop.f32.mrb[64].mxu1  ;;  %v3115_v63 = vpop.f32.mrb[68].mxu0 }
 0xbf3   :  { %v4605_v45 = vadd.f32 %v3074_v38, %v8831_v8  ;;  %v3076_v1 = vpop.f32.mrb[65].mxu1  ;;  %v3117_v17 = vpop.f32.mrb[69].mxu0  ;;  %v4607_v58 = vadd.f32 %v3115_v63, %v6097_v27 }
 0xbf4   :  { %v4606_v0 = vadd.f32 %v3076_v1, %v6091_v21  ;;  %v3078_v5 = vpop.f32.mrb[66].mxu1  ;;  %v3119_v44 = vpop.f32.mrb[70].mxu0  ;;  %v4608_v9 = vadd.f32 %v3117_v17, %v6120_v41 }
 0xbf5   :  { %v3126_v3 = vmul.f32 0.5, %v4605_v45  ;;  %v3079_v14 = vpop.f32.mrb[67].mxu1  ;;  %v3120_v54 = vpop.f32.mrb[71].mxu0 }
 0xbf6   :  { %v3130_v34 = vmul.f32 0.5, %v4606_v0  ;;  %v3135_v42 = vmul.f32 0.5, %v4608_v9  ;;  %v8887_v9 = vld [vmem:[#allocation71_spill] sm:$0xff] }
 0xbf7   :  { %5012 = vtanh.f32 %v3126_v3  ;;  %v8886_v3 = vld [vmem:[#allocation69_spill] sm:$0xff] }
 0xbf8   :  { %5014 = vtanh.f32 %v3130_v34  ;;  %v185_v63 = vadd.f32 %v8886_v3, %v5580_v49  ;;  %v7887_v3 = vld [vmem:[%s8272_s2 + $0x48] ss:$16 sps:$4 sm:$0xff]  }
 0xbf9   :  { %5016 = vtanh.f32 %v4607_v58 }
 0xbfa   :  { %5018 = vtanh.f32 %v3135_v42 }
 0xc01   :  { %v5013_v36 = vpop.eup %5012 }
 0xc02   :  { %v5015_v38 = vpop.eup %5014  ;;  %v3128_v8 = vmul.f32 0.5, %v5013_v36  ;;  %v187_v36 = vadd.f32 %v8887_v9, %v5584_v50  ;;  %v7899_v9 = vld [vmem:[%s8272_s2 + $0x68] ss:$16 sps:$4 sm:$0xff]  }
 0xc03   :  { %v3132_v51 = vmul.f32 0.5, %v5015_v38  ;;  %v5017_v5 = vpop.eup %5016 }
 0xc04   :  { %v3129_v1 = vadd.f32 0.5, %v3128_v8  ;;  %v5019_v34 = vpop.eup %5018 }
 0xc05   :  { %v3133_v44 = vadd.f32 0.5, %v3132_v51  ;;  %v3137_v58 = vmul.f32 0.5, %v5019_v34  ;;  %v7875_v34 = vld [vmem:[%s8272_s2 + $0x28] ss:$16 sps:$4 sm:$0xff]  }
 0xc06   :  { %v3140_v45 = vmul.f32 %v5017_v5, %v3129_v1 }
 0xc07   :  { %v3139_v14 = vmul.f32 %v3133_v44, %v7442_v52  ;;  %v3138_v51 = vadd.f32 0.5, %v3137_v58  ;;  %v7881_v58 = vld [vmem:[%s8272_s2 + $0x4c] ss:$16 sps:$4 sm:$0xff]  }
 0xc09   :  { %v7847_v0 = vadd.f32 %v3140_v45, %v3139_v14  ;;  %v7862_v45 = vld [vmem:[%s8272_s2 + $0x8] ss:$16 sps:$4 sm:$0xff]   ;;  %v7869_v14 = vld [vmem:[%s8272_s2 + $0x2c] ss:$16 sps:$4 sm:$0xff]  }
 0xc0b   :  { %5020 = vtanh.f32 %v7847_v0 }
 0xc12   :  { %v3275_v17 = vpop.f32.mrb[72].mxu0 }
 0xc13   :  { %v7854_v42 = vadd.f32 %v3275_v17, %v185_v63  ;;  %v3277_v8 = vpop.f32.mrb[73].mxu0  ;;  %v7893_v63 = vld [vmem:[%s8272_s2 + $0x6c] ss:$16 sps:$4 sm:$0xff]   ;;  %v7911_v17 = vld [vmem:[%s8272_s2 + $0x88] ss:$16 sps:$4 sm:$0xff]  }
 0xc14   :  { %v3324_v54 = vadd.f32 %v3277_v8, %v187_v36  ;;  %v3279_v38 = vpop.f32.mrb[74].mxu0  ;;  %v7905_v36 = vld [vmem:[%s8272_s2 + $0x8c] ss:$16 sps:$4 sm:$0xff]  }
 0xc15   :  { %v5021_v52 = vpop.eup %5020  ;;  %v3280_v1 = vpop.f32.mrb[75].mxu0  ;;  %v7917_v8 = vld [vmem:[%s8272_s2 + $0xac] ss:$16 sps:$4 sm:$0xff]  }
 0xc16   :  { %v3143_v5 = vmul.f32 %v5021_v52, %v3138_v51  ;;  %v7923_v51 = vld [vmem:[%s8272_s2 + $0xa8] ss:$16 sps:$4 sm:$0xff]   ;;  %v7929_v38 = vld [vmem:[%s8272_s2 + $0xcc] ss:$16 sps:$4 sm:$0xff]  }
 0xc17   :  { %v7935_v52 = vld [vmem:[%s8272_s2 + $0xc8] ss:$16 sps:$4 sm:$0xff]   ;;  %v7941_v1 = vld [vmem:[%s8272_s2 + $0xec] ss:$16 sps:$4 sm:$0xff]  }
 0xc18   :  { %v7856_v44 = vpack.c.bf16 %v3143_v5, %v3143_v5  ;;  %v7947_v5 = vld [vmem:[%s8272_s2 + $0xe8] ss:$16 sps:$4 sm:$0xff]  }
 0xc1a   :  { %4542 = vmatmul.mubr.bf16.vlgmr.msra.gmra.mrb[68].mxu1 %v7856_v44 }
 0xc1b   :  { %3283 = vmatpush1.bf16.msra.mxu1 %v7862_v45  ;;  %3314 = vmatprep.mubr.bf16.mxu1 %v8554_v61 }
 0xc1c   :  { %3284 = vmatprep.subr.bf16.mxu1 %v7869_v14 }
 0xc1f   :  { %3285 = vmatpush1.bf16.msra.mxu1 %v7875_v34 }
 0xc20   :  { %3286 = vmatprep.subr.bf16.mxu1 %v7881_v58 }
 0xc23   :  { %3287 = vmatpush1.bf16.msra.mxu1 %v7887_v3 }
 0xc24   :  { %3288 = vmatprep.subr.bf16.mxu1 %v7893_v63 }
 0xc27   :  { %3289 = vmatpush1.bf16.msra.mxu1 %v7899_v9 }
 0xc28   :  { %3290 = vmatprep.subr.bf16.mxu1 %v7905_v36 }
 0xc2b   :  { %3291 = vmatpush1.bf16.msra.mxu1 %v7911_v17 }
 0xc2c   :  { %3292 = vmatprep.subr.bf16.mxu1 %v7917_v8 }
 0xc2f   :  { %3293 = vmatpush1.bf16.msra.mxu1 %v7923_v51 }
 0xc30   :  { %3294 = vmatprep.subr.bf16.mxu1 %v7929_v38 }
 0xc33   :  { %3295 = vmatpush1.bf16.msra.mxu1 %v7935_v52 }
 0xc34   :  { %3296 = vmatprep.subr.bf16.mxu1 %v7941_v1 }
 0xc37   :  { %3297 = vmatpush1.bf16.msra.mxu1 %v7947_v5 }
 0xc38   :  { %3404 = vmatprep.subr.bf16.mxu1 %v8836_v13  ;;  %v8888_v13 = vld [vmem:[#allocation10_spill] sm:$0xff] }
 0xc3a   :  { %3315 = vmatmul.mubr.bf16.vlgmr.msra.gmra.mrb[72].mxu1 %v7498_v53 }
 0xc3b   :  { %3405 = vmatpush1.bf16.msra.mxu1 %v8837_v18  ;;  %3436 = vmatprep.mubr.bf16.mxu1 %v8554_v61  ;;  %v8889_v18 = vld [vmem:[#allocation11_spill] sm:$0xff] }
 0xc3c   :  { %3406 = vmatprep.subr.bf16.mxu1 %v8838_v46 }
 0xc3f   :  { %3407 = vmatpush1.bf16.msra.mxu1 %v8839_v47 }
 0xc40   :  { %3408 = vmatprep.subr.bf16.mxu1 %v8840_v24 }
 0xc43   :  { %3409 = vmatpush1.bf16.msra.mxu1 %v8841_v28 }
 0xc44   :  { %3410 = vmatprep.subr.bf16.mxu1 %v8842_v48 }
 0xc47   :  { %3411 = vmatpush1.bf16.msra.mxu1 %v8843_v31  ;;  %v3331_v31 = vmul.f32 0.5, %v3324_v54 }
 0xc48   :  { %3412 = vmatprep.subr.bf16.mxu1 %v8844_v19  ;;  %v3327_v19 = vmul.f32 0.5, %v7854_v42 }
 0xc49   :  { %5022 = vtanh.f32 %v3331_v31 }
 0xc4a   :  { %5024 = vtanh.f32 %v3327_v19 }
 0xc4b   :  { %3413 = vmatpush1.bf16.msra.mxu1 %v8845_v22  ;;  %v8891_v22 = vld [vmem:[#allocation3_spill] sm:$0xff] }
 0xc4c   :  { %3414 = vmatprep.subr.bf16.mxu1 %v8846_v26  ;;  %v8892_v26 = vld [vmem:[#allocation70_spill] sm:$0xff] }
 0xc4f   :  { %3415 = vmatpush1.bf16.msra.mxu1 %v8847_v15  ;;  %v258_v15 = vadd.f32 %v8892_v26, %v8891_v22 }
 0xc50   :  { %3416 = vmatprep.subr.bf16.mxu1 %v8848_v57  ;;  %v8893_v57 = vld [vmem:[#allocation72_spill] sm:$0xff] }
 0xc53   :  { %3417 = vmatpush1.bf16.msra.mxu1 %v8849_v7  ;;  %v260_v7 = vadd.f32 %v8893_v57, %v8716_v55 }
 0xc54   :  { %3418 = vmatprep.subr.bf16.mxu1 %v8850_v10 }
 0xc57   :  { %3419 = vmatpush1.bf16.msra.mxu1 %v8888_v13 }
 0xc58   :  { %3486 = vmatprep.subr.bf16.mxu1 %v8889_v18 }
 0xced   :  { %v3227_v46 = vpop.f32.mrb[68].mxu1 }
 0xcee   :  { %v7970_v47 = vadd.f32 %v3227_v46, %v7488_v32  ;;  %v4543_v24 = vpop.f32.mrb[69].mxu1  ;;  %v5023_v46 = vpop.eup %5022 }
 0xcef   :  { %v3230_v28 = vpop.f32.mrb[70].mxu1  ;;  %v3333_v54 = vmul.f32 0.5, %v5023_v46  ;;  %v8898_v46 = vld [vmem:[#allocation44_spill] sm:$0xff] }
 0xcf0   :  { %8890 = vst [vmem:[#allocation6_spill] sm:$0xff] %v7970_v47  ;;  %v4544_v48 = vpop.f32.mrb[71].mxu1  ;;  %v5025_v28 = vpop.eup %5024 }
 0xcf1   :  { %v3329_v42 = vmul.f32 0.5, %v5025_v28  ;;  %v3334_v31 = vadd.f32 0.5, %v3333_v54  ;;  %v8900_v28 = vld [vmem:[#allocation48_spill] sm:$0xff]  ;;  %v8901_v54 = vld [vmem:[#allocation50_spill] sm:$0xff] }
 0xcf3   :  { %v3330_v19 = vadd.f32 0.5, %v3329_v42  ;;  %v3340_v26 = vmul.f32 %v3334_v31, %v7495_v20  ;;  %v8894_v20 = vld [vmem:[#allocation36_spill] sm:$0xff]  ;;  %v8903_v42 = vld [vmem:[#allocation54_spill] sm:$0xff] }
 0xcf4   :  { %v8904_v31 = vld [vmem:[#allocation56_spill] sm:$0xff] }
 0xd0d   :  { %v3316_v10 = vpop.f32.mrb[72].mxu1 }
 0xd0e   :  { %v3325_v53 = vadd.f32 %v3316_v10, %v258_v15  ;;  %v3318_v13 = vpop.f32.mrb[73].mxu1 }
 0xd0f   :  { %v3326_v18 = vadd.f32 %v3318_v13, %v260_v7  ;;  %v3320_v32 = vpop.f32.mrb[74].mxu1 }
 0xd10   :  { %5026 = vtanh.f32 %v3325_v53  ;;  %v3321_v24 = vpop.f32.mrb[75].mxu1 }
 0xd11   :  { %v3336_v48 = vmul.f32 0.5, %v3326_v18  ;;  %v8897_v18 = vld [vmem:[#allocation42_spill] sm:$0xff] }
 0xd12   :  { %v8899_v24 = vld [vmem:[#allocation46_spill] sm:$0xff] }
 0xd13   :  { %5028 = vtanh.f32 %v3336_v48  ;;  %v8902_v48 = vld [vmem:[#allocation52_spill] sm:$0xff] }
 0xd1a   :  { %v5027_v47 = vpop.eup %5026 }
 0xd1b   :  { %v3341_v22 = vmul.f32 %v5027_v47, %v3330_v19  ;;  %v8895_v47 = vld [vmem:[#allocation38_spill] sm:$0xff]  ;;  %v8905_v19 = vld [vmem:[#allocation29_spill] sm:$0xff] }
 0xd1d   :  { %v7978_v57 = vadd.f32 %v3341_v22, %v3340_v26  ;;  %v5029_v15 = vpop.eup %5028  ;;  %v8896_v22 = vld [vmem:[#allocation40_spill] sm:$0xff]  ;;  %v8906_v26 = vld [vmem:[#allocation31_spill] sm:$0xff] }
 0xd1e   :  { %v3338_v7 = vmul.f32 0.5, %v5029_v15  ;;  %v8907_v15 = vld [vmem:[#allocation35_spill] sm:$0xff] }
 0xd1f   :  { %5030 = vtanh.f32 %v7978_v57 }
 0xd20   :  { %v3339_v10 = vadd.f32 0.5, %v3338_v7  ;;  %v8908_v7 = vld [vmem:[#allocation37_spill] sm:$0xff] }
 0xd29   :  { %v5031_v53 = vpop.eup %5030 }
 0xd2a   :  { %v3344_v13 = vmul.f32 %v5031_v53, %v3339_v10  ;;  %v8909_v10 = vld [vmem:[#allocation39_spill] sm:$0xff]  ;;  %v8910_v53 = vld [vmem:[#allocation41_spill] sm:$0xff] }
 0xd2c   :  { %v7981_v32 = vpack.c.bf16 %v3344_v13, %v3344_v13  ;;  %v8911_v13 = vld [vmem:[#allocation43_spill] sm:$0xff] }
 0xd2e   :  { %3396 = vmatmul.mubr.bf16.vlgmr.msra.gmra.mrb[76].mxu0 %v7981_v32  ;;  %3437 = vmatmul.mubr.bf16.vlgmr.msra.gmra.mrb[76].mxu1 %v7981_v32 }
 0xd2f   :  { %3446 = vmatpush1.bf16.msra.mxu0 %v7505_v16  ;;  %3487 = vmatpush1.bf16.msra.mxu1 %v7511_v60 }
 0xd30   :  { %3447 = vmatprep.subr.bf16.mxu0 %v7517_v40  ;;  %3488 = vmatprep.subr.bf16.mxu1 %v7523_v6 }
 0xd31   :  { %3477 = vmatprep.mubr.bf16.mxu0 %v8554_v61  ;;  %3518 = vmatprep.mubr.bf16.mxu1 %v8554_v61 }
 0xd33   :  { %3448 = vmatpush1.bf16.msra.mxu0 %v7531_v33  ;;  %3489 = vmatpush1.bf16.msra.mxu1 %v7537_v29 }
 0xd34   :  { %3449 = vmatprep.subr.bf16.mxu0 %v7543_v56  ;;  %3490 = vmatprep.subr.bf16.mxu1 %v7549_v35 }
 0xd37   :  { %3450 = vmatpush1.bf16.msra.mxu0 %v7555_v62  ;;  %3491 = vmatpush1.bf16.msra.mxu1 %v7561_v25 }
 0xd38   :  { %3451 = vmatprep.subr.bf16.mxu0 %v7567_v37  ;;  %3492 = vmatprep.subr.bf16.mxu1 %v7573_v4 }
 0xd3b   :  { %3452 = vmatpush1.bf16.msra.mxu0 %v7579_v23  ;;  %3493 = vmatpush1.bf16.msra.mxu1 %v7585_v43 }
 0xd3c   :  { %3453 = vmatprep.subr.bf16.mxu0 %v8894_v20  ;;  %3494 = vmatprep.subr.bf16.mxu1 %v8895_v47 }
 0xd3f   :  { %3454 = vmatpush1.bf16.msra.mxu0 %v8896_v22  ;;  %3495 = vmatpush1.bf16.msra.mxu1 %v8897_v18 }
 0xd40   :  { %3455 = vmatprep.subr.bf16.mxu0 %v8898_v46  ;;  %3496 = vmatprep.subr.bf16.mxu1 %v8899_v24 }
 0xd43   :  { %3456 = vmatpush1.bf16.msra.mxu0 %v8900_v28  ;;  %3497 = vmatpush1.bf16.msra.mxu1 %v8901_v54 }
 0xd44   :  { %3457 = vmatprep.subr.bf16.mxu0 %v8902_v48  ;;  %3498 = vmatprep.subr.bf16.mxu1 %v8903_v42 }
 0xd47   :  { %3458 = vmatpush1.bf16.msra.mxu0 %v8904_v31  ;;  %3499 = vmatpush1.bf16.msra.mxu1 %v8905_v19  ;;  %v8919_v19 = vld [vmem:[#allocation55_spill] sm:$0xff] }
 0xd48   :  { %3459 = vmatprep.subr.bf16.mxu0 %v8906_v26  ;;  %3500 = vmatprep.subr.bf16.mxu1 %v7669_v39  ;;  %v8915_v39 = vld [vmem:[#allocation51_spill] sm:$0xff]  ;;  %v8916_v26 = vld [vmem:[#allocation53_spill] sm:$0xff] }
 0xd4b   :  { %3460 = vmatpush1.bf16.msra.mxu0 %v8907_v15  ;;  %3501 = vmatpush1.bf16.msra.mxu1 %v8908_v7  ;;  %v8912_v15 = vld [vmem:[#allocation45_spill] sm:$0xff]  ;;  %v8913_v7 = vld [vmem:[#allocation47_spill] sm:$0xff] }
 0xd4c   :  { %3646 = vmatprep.subr.bf16.mxu1 %v8909_v10  ;;  %4545 = vmatprep.subr.bf16.mxu0 %v8797_v11  ;;  %v8914_v10 = vld [vmem:[#allocation49_spill] sm:$0xff] }
 0xd4e   :  { %3478 = vmatmul.mubr.bf16.vlgmr.msra.gmra.mrb[76].mxu0 %v7856_v44  ;;  %3519 = vmatmul.mubr.bf16.vlgmr.msra.gmra.mrb[76].mxu1 %v7856_v44  ;;  %v8917_v44 = vld [vmem:[#allocation65_spill] sm:$0xff] }
 0xd4f   :  { %3647 = vmatpush1.bf16.msra.mxu1 %v8910_v53  ;;  %3678 = vmatprep.mubr.bf16.mxu1 %v8554_v61  ;;  %v8918_v53 = vld [vmem:[#allocation67_spill] sm:$0xff] }
 0xd50   :  { %3648 = vmatprep.subr.bf16.mxu1 %v8911_v13  ;;  %4561 = vmatprep.mubr.msk.bf16.mxu0 %vm5273_vm1, %v8797_v11  ;;  %v8920_v13 = vld [vmem:[#allocation57_spill] sm:$0xff] }
 0xd53   :  { %3649 = vmatpush1.bf16.msra.mxu1 %v8912_v15  ;;  %v8921_v15 = vld [vmem:[#allocation13_spill] sm:$0xff] }
 0xd54   :  { %3650 = vmatprep.subr.bf16.mxu1 %v8913_v7  ;;  %v8925_v7 = vld [vmem:[#allocation17_spill] sm:$0xff] }
 0xd57   :  { %3651 = vmatpush1.bf16.msra.mxu1 %v8914_v10  ;;  %v8930_v10 = vld [vmem:[#allocation22_spill] sm:$0xff] }
 0xd58   :  { %3652 = vmatprep.subr.bf16.mxu1 %v8915_v39  ;;  %v8922_v39 = vld [vmem:[#allocation14_spill] sm:$0xff] }
 0xd5b   :  { %3653 = vmatpush1.bf16.msra.mxu1 %v8916_v26  ;;  %v8923_v26 = vld [vmem:[#allocation15_spill] sm:$0xff] }
 0xd5c   :  { %3654 = vmatprep.subr.bf16.mxu1 %v8917_v44  ;;  %v8931_v44 = vld [vmem:[#allocation23_spill] sm:$0xff] }
 0xd5f   :  { %3655 = vmatpush1.bf16.msra.mxu1 %v8918_v53  ;;  %v8932_v53 = vld [vmem:[#allocation61_spill] sm:$0xff] }
 0xd60   :  { %3656 = vmatprep.subr.bf16.mxu1 %v8919_v19  ;;  %v8924_v19 = vld [vmem:[#allocation16_spill] sm:$0xff] }
 0xd63   :  { %3657 = vmatpush1.bf16.msra.mxu1 %v8920_v13  ;;  %v8933_v13 = vld [vmem:[#allocation63_spill] sm:$0xff] }
 0xd64   :  { %3658 = vmatprep.subr.bf16.mxu1 %v7765_v12  ;;  %v8926_v12 = vld [vmem:[#allocation18_spill] sm:$0xff] }
 0xd67   :  { %3659 = vmatpush1.bf16.msra.mxu1 %v7771_v59  ;;  %v8927_v59 = vld [vmem:[#allocation19_spill] sm:$0xff] }
 0xd68   :  { %3660 = vmatprep.subr.bf16.mxu1 %v7777_v2  ;;  %v8928_v2 = vld [vmem:[#allocation20_spill] sm:$0xff] }
 0xd6b   :  { %3661 = vmatpush1.bf16.msra.mxu1 %v7783_v30  ;;  %v8929_v30 = vld [vmem:[#allocation21_spill] sm:$0xff] }
 0xd6c   :  { %3768 = vmatprep.subr.bf16.mxu1 %v8921_v15  ;;  %v8934_v15 = vld [vmem:[#allocation58_spill] sm:$0xff] }
 0xd6e   :  { %3679 = vmatmul.mubr.bf16.vlgmr.msra.gmra.mrb[80].mxu1 %v7981_v32 }
 0xd6f   :  { %3769 = vmatpush1.bf16.msra.mxu1 %v8922_v39  ;;  %3800 = vmatprep.mubr.bf16.mxu1 %v8554_v61  ;;  %v8935_v39 = vld [vmem:[#allocation62_spill] sm:$0xff] }
 0xd70   :  { %3770 = vmatprep.subr.bf16.mxu1 %v8923_v26  ;;  %v8936_v26 = vld [vmem:[#allocation64_spill] sm:$0xff] }
 0xd73   :  { %3771 = vmatpush1.bf16.msra.mxu1 %v8924_v19  ;;  %v8937_v19 = vld [vmem:[#allocation34_spill] sm:$0xff] }
 0xd74   :  { %3772 = vmatprep.subr.bf16.mxu1 %v8925_v7  ;;  %v4886_v7 = vld [vmem:[%s8274_s7 + $0x180] sm:$0xff]  }
 0xd75   :  { %4546 = vmatpush3.bf16.msra.mxu0 %v4886_v7 }
 0xd76   :  { %4547 = vmatprep.subr.bf16.mxu0 %v8797_v11 }
 0xd77   :  { %3773 = vmatpush1.bf16.msra.mxu1 %v8926_v12  ;;  %v4887_v12 = vld [vmem:[%s8274_s7 + $0x188] sm:$0xff]  }
 0xd78   :  { %3774 = vmatprep.subr.bf16.mxu1 %v8927_v59  ;;  %v4888_v59 = vld [vmem:[%s8274_s7 + $0x190] sm:$0xff]  }
 0xd79   :  { %4548 = vmatpush3.bf16.msra.mxu0 %v4887_v12 }
 0xd7a   :  { %4549 = vmatprep.subr.bf16.mxu0 %v8797_v11 }
 0xd7b   :  { %3775 = vmatpush1.bf16.msra.mxu1 %v8928_v2  ;;  %v4889_v2 = vld [vmem:[%s8274_s7 + $0x198] sm:$0xff]  }
 0xd7c   :  { %3776 = vmatprep.subr.bf16.mxu1 %v8929_v30  ;;  %v4890_v30 = vld [vmem:[%s8274_s7 + $0x1a0] sm:$0xff]  }
 0xd7d   :  { %4550 = vmatpush3.bf16.msra.mxu0 %v4888_v59 }
 0xd7e   :  { %4551 = vmatprep.subr.bf16.mxu0 %v8797_v11 }
 0xd7f   :  { %3777 = vmatpush1.bf16.msra.mxu1 %v8930_v10  ;;  %v4891_v10 = vld [vmem:[%s8274_s7 + $0x1a8] sm:$0xff]  }
 0xd80   :  { %3778 = vmatprep.subr.bf16.mxu1 %v8931_v44  ;;  %v4892_v44 = vld [vmem:[%s8274_s7 + $0x1b0] sm:$0xff]  }
 0xd81   :  { %4552 = vmatpush3.bf16.msra.mxu0 %v4889_v2 }
 0xd82   :  { %4553 = vmatprep.subr.bf16.mxu0 %v8797_v11 }
 0xd83   :  { %3779 = vmatpush1.bf16.msra.mxu1 %v8932_v53  ;;  %v4893_v53 = vld [vmem:[%s8274_s7 + $0x1b8] sm:$0xff]  }
 0xd84   :  { %3780 = vmatprep.subr.bf16.mxu1 %v8933_v13  ;;  %v8938_v13 = vld [vmem:[#allocation5_spill] sm:$0xff] }
 0xd85   :  { %4554 = vmatpush3.bf16.msra.mxu0 %v4890_v30 }
 0xd86   :  { %4555 = vmatprep.subr.bf16.mxu0 %v8797_v11 }
 0xd87   :  { %3781 = vmatpush1.bf16.msra.mxu1 %v8934_v15 }
 0xd88   :  { %3782 = vmatprep.subr.bf16.mxu1 %v8935_v39 }
 0xd89   :  { %4556 = vmatpush3.bf16.msra.mxu0 %v4891_v10 }
 0xd8a   :  { %4557 = vmatprep.subr.bf16.mxu0 %v8797_v11 }
 0xd8b   :  { %3783 = vmatpush1.bf16.msra.mxu1 %v8936_v26  ;;  %v8939_v26 = vld [vmem:[#allocation77_spill] sm:$0xff] }
 0xd8c   :  { %3850 = vmatprep.subr.bf16.mxu1 %v8937_v19 }
 0xd8d   :  { %4558 = vmatpush3.bf16.msra.mxu0 %v4892_v44 }
 0xd8e   :  { %4559 = vmatprep.subr.bf16.mxu0 %v8797_v11 }
 0xd91   :  { %4560 = vmatpush3.bf16.msra.mxu0 %v4893_v53 }
 0xd92   :  { %3687 = vmatprep.subr.bf16.mxu0 %v8938_v13 }
 0xe21   :  { %v3479_v15 = vpop.f32.mrb[76].mxu0  ;;  %v3520_v39 = vpop.f32.mrb[76].mxu1 }
 0xe22   :  { %v4609_v19 = vadd.f32 %v3479_v15, %v8939_v26  ;;  %v3481_v7 = vpop.f32.mrb[77].mxu0  ;;  %v3522_v12 = vpop.f32.mrb[77].mxu1  ;;  %v4611_v42 = vadd.f32 %v3520_v39, %v6097_v27  ;;  %v8940_v39 = vld [vmem:[#allocation73_spill] sm:$0xff] }
 0xe23   :  { %v4610_v59 = vadd.f32 %v3481_v7, %v6091_v21  ;;  %v3483_v2 = vpop.f32.mrb[78].mxu0  ;;  %v3524_v30 = vpop.f32.mrb[78].mxu1  ;;  %v4612_v53 = vadd.f32 %v3522_v12, %v6120_v41  ;;  %v189_v12 = vadd.f32 %v8940_v39, %v5580_v49  ;;  %v5254_v49 = vld [vmem:[%s8270_s4 + $0xc] ss:$16 sps:$4 sm:$0xff]  }
 0xe24   :  { %v3531_v10 = vmul.f32 0.5, %v4609_v19  ;;  %v3484_v44 = vpop.f32.mrb[79].mxu0  ;;  %v3525_v11 = vpop.f32.mrb[79].mxu1 }
 0xe25   :  { %v3535_v31 = vmul.f32 0.5, %v4610_v59  ;;  %v3540_v13 = vmul.f32 0.5, %v4612_v53 }
 0xe26   :  { %5032 = vtanh.f32 %v3531_v10  ;;  %v8941_v10 = vld [vmem:[#allocation75_spill] sm:$0xff] }
 0xe27   :  { %5034 = vtanh.f32 %v3535_v31 }
 0xe28   :  { %5036 = vtanh.f32 %v4611_v42 }
 0xe29   :  { %5038 = vtanh.f32 %v3540_v13 }
 0xe30   :  { %v5033_v48 = vpop.eup %5032 }
 0xe31   :  { %v5035_v15 = vpop.eup %5034  ;;  %v3533_v26 = vmul.f32 0.5, %v5033_v48  ;;  %v191_v48 = vadd.f32 %v8941_v10, %v5584_v50  ;;  %v5255_v50 = vld [vmem:[%s8270_s4 + $0x8] ss:$16 sps:$4 sm:$0xff]  }
 0xe32   :  { %v3537_v54 = vmul.f32 0.5, %v5035_v15  ;;  %v5037_v2 = vpop.eup %5036 }
 0xe33   :  { %v3534_v7 = vadd.f32 0.5, %v3533_v26  ;;  %v5039_v31 = vpop.eup %5038 }
 0xe34   :  { %v3538_v30 = vadd.f32 0.5, %v3537_v54  ;;  %v3542_v42 = vmul.f32 0.5, %v5039_v31 }
 0xe35   :  { %v3545_v19 = vmul.f32 %v5037_v2, %v3534_v7 }
 0xe36   :  { %v3544_v11 = vmul.f32 %v3538_v30, %v7847_v0  ;;  %v3543_v54 = vadd.f32 0.5, %v3542_v42 }
 0xe38   :  { %v8095_v59 = vadd.f32 %v3545_v19, %v3544_v11  ;;  %v8942_v19 = vld [vmem:[#allocation6_spill] sm:$0xff] }
 0xe3a   :  { %5040 = vtanh.f32 %v8095_v59 }
 0xe41   :  { %v3680_v44 = vpop.f32.mrb[80].mxu1 }
 0xe42   :  { %v8102_v53 = vadd.f32 %v3680_v44, %v189_v12  ;;  %v3682_v26 = vpop.f32.mrb[81].mxu1  ;;  %v8944_v44 = vld [vmem:[#allocation74_spill] sm:$0xff] }
 0xe43   :  { %v8104_v13 = vadd.f32 %v3682_v26, %v191_v48  ;;  %v3684_v0 = vpop.f32.mrb[82].mxu1  ;;  %v8943_v48 = vld [vmem:[#allocation3_spill] sm:$0xff] }
 0xe44   :  { %v5041_v15 = vpop.eup %5040  ;;  %v3685_v7 = vpop.f32.mrb[83].mxu1  ;;  %v3732_v10 = vmul.f32 0.5, %v8102_v53  ;;  %v262_v26 = vadd.f32 %v8944_v44, %v8943_v48 }
 0xe45   :  { %v3548_v2 = vmul.f32 %v5041_v15, %v3543_v54  ;;  %v3736_v12 = vmul.f32 0.5, %v8104_v13  ;;  %v8945_v54 = vld [vmem:[#allocation76_spill] sm:$0xff] }
 0xe46   :  { %v264_v0 = vadd.f32 %v8945_v54, %v8716_v55 }
 0xe47   :  { %v8106_v30 = vpack.c.bf16 %v3548_v2, %v3548_v2  ;;  %5042 = vtanh.f32 %v3736_v12 }
 0xe48   :  { %5044 = vtanh.f32 %v3732_v10 }
 0xe49   :  { %4562 = vmatmul.mubr.bf16.vlgmr.msra.gmra.mrb[80].mxu0 %v8106_v30 }
 0xe4a   :  { %3688 = vmatpush1.bf16.msra.mxu0 %v7862_v45  ;;  %3719 = vmatprep.mubr.bf16.mxu0 %v8554_v61  ;;  %v5256_v45 = vld [vmem:[%s8270_s4 + $0x2c] ss:$16 sps:$4 sm:$0xff]  }
 0xe4b   :  { %3689 = vmatprep.subr.bf16.mxu0 %v7869_v14  ;;  %v5257_v14 = vld [vmem:[%s8270_s4 + $0x28] ss:$16 sps:$4 sm:$0xff]  }
 0xe4e   :  { %3690 = vmatpush1.bf16.msra.mxu0 %v7875_v34  ;;  %v5258_v34 = vld [vmem:[%s8270_s4 + $0x4c] ss:$16 sps:$4 sm:$0xff]  }
 0xe4f   :  { %3691 = vmatprep.subr.bf16.mxu0 %v7881_v58  ;;  %v5259_v58 = vld [vmem:[%s8270_s4 + $0x48] ss:$16 sps:$4 sm:$0xff]  }
 0xe52   :  { %3692 = vmatpush1.bf16.msra.mxu0 %v7887_v3  ;;  %v5260_v3 = vld [vmem:[%s8270_s4 + $0x6c] ss:$16 sps:$4 sm:$0xff]  }
 0xe53   :  { %3693 = vmatprep.subr.bf16.mxu0 %v7893_v63  ;;  %v5261_v63 = vld [vmem:[%s8270_s4 + $0x68] ss:$16 sps:$4 sm:$0xff]  }
 0xe56   :  { %3694 = vmatpush1.bf16.msra.mxu0 %v7899_v9  ;;  %v5262_v9 = vld [vmem:[%s8270_s4 + $0x8c] ss:$16 sps:$4 sm:$0xff]  }
 0xe57   :  { %3695 = vmatprep.subr.bf16.mxu0 %v7905_v36  ;;  %v5263_v36 = vld [vmem:[%s8270_s4 + $0x88] ss:$16 sps:$4 sm:$0xff]  }
 0xe5a   :  { %3696 = vmatpush1.bf16.msra.mxu0 %v7911_v17  ;;  %v5264_v17 = vld [vmem:[%s8270_s4 + $0xac] ss:$16 sps:$4 sm:$0xff]  }
 0xe5b   :  { %3697 = vmatprep.subr.bf16.mxu0 %v7917_v8  ;;  %v5265_v8 = vld [vmem:[%s8270_s4 + $0xa8] ss:$16 sps:$4 sm:$0xff]  }
 0xe5e   :  { %3698 = vmatpush1.bf16.msra.mxu0 %v7923_v51  ;;  %v5266_v51 = vld [vmem:[%s8270_s4 + $0xcc] ss:$16 sps:$4 sm:$0xff]  }
 0xe5f   :  { %3699 = vmatprep.subr.bf16.mxu0 %v7929_v38  ;;  %v5267_v38 = vld [vmem:[%s8270_s4 + $0xc8] ss:$16 sps:$4 sm:$0xff]  }
 0xe62   :  { %3700 = vmatpush1.bf16.msra.mxu0 %v7935_v52  ;;  %v5268_v52 = vld [vmem:[%s8270_s4 + $0xec] ss:$16 sps:$4 sm:$0xff]  }
 0xe63   :  { %3701 = vmatprep.subr.bf16.mxu0 %v7941_v1  ;;  %v5269_v1 = vld [vmem:[%s8270_s4 + $0xe8] ss:$16 sps:$4 sm:$0xff]  }
 0xe66   :  { %3702 = vmatpush1.bf16.msra.mxu0 %v7947_v5  ;;  %v5270_v5 = vld [vmem:[%s8271_s5 + $0xc] ss:$16 sps:$4 sm:$0xff]  }
 0xe67   :  { %3809 = vmatprep.subr.bf16.mxu0 %v5254_v49 }
 0xe69   :  { %3720 = vmatmul.mubr.bf16.vlgmr.msra.gmra.mrb[84].mxu0 %v7981_v32 }
 0xe6a   :  { %3810 = vmatpush1.bf16.msra.mxu0 %v5255_v50  ;;  %3841 = vmatprep.mubr.bf16.mxu0 %v8554_v61 }
 0xe6b   :  { %3811 = vmatprep.subr.bf16.mxu0 %v5256_v45  ;;  %v5043_v45 = vpop.eup %5042 }
 0xe6c   :  { %v3738_v13 = vmul.f32 0.5, %v5043_v45 }
 0xe6e   :  { %3812 = vmatpush1.bf16.msra.mxu0 %v5257_v14 }
 0xe6f   :  { %3813 = vmatprep.subr.bf16.mxu0 %v5258_v34  ;;  %v5045_v34 = vpop.eup %5044 }
 0xe70   :  { %v3734_v53 = vmul.f32 0.5, %v5045_v34 }
 0xe72   :  { %3814 = vmatpush1.bf16.msra.mxu0 %v5259_v58 }
 0xe73   :  { %3815 = vmatprep.subr.bf16.mxu0 %v5260_v3  ;;  %v3739_v3 = vadd.f32 0.5, %v3738_v13 }
 0xe76   :  { %3816 = vmatpush1.bf16.msra.mxu0 %v5261_v63  ;;  %v3735_v63 = vadd.f32 0.5, %v3734_v53 }
 0xe77   :  { %3817 = vmatprep.subr.bf16.mxu0 %v5262_v9 }
 0xe7a   :  { %3818 = vmatpush1.bf16.msra.mxu0 %v5263_v36  ;;  %v3745_v36 = vmul.f32 %v3739_v3, %v7978_v57  ;;  %v4899_v57 = vld [vmem:[%s8274_s7 + $0x1e8] sm:$0xff]  }
 0xe7b   :  { %3819 = vmatprep.subr.bf16.mxu0 %v5264_v17 }
 0xe7e   :  { %3820 = vmatpush1.bf16.msra.mxu0 %v5265_v8 }
 0xe7f   :  { %3821 = vmatprep.subr.bf16.mxu0 %v5266_v51 }
 0xe82   :  { %3822 = vmatpush1.bf16.msra.mxu0 %v5267_v38 }
 0xe83   :  { %3823 = vmatprep.subr.bf16.mxu0 %v5268_v52 }
 0xe86   :  { %3824 = vmatpush1.bf16.msra.mxu0 %v5269_v1 }
 0xe87   :  { %3891 = vmatprep.subr.bf16.mxu0 %v5270_v5 }
 0xf1c   :  { %v3632_v32 = vpop.f32.mrb[80].mxu0 }
 0xf1d   :  { %v8179_v11 = vadd.f32 %v3632_v32, %v8942_v19  ;;  %v4563_v31 = vpop.f32.mrb[81].mxu0 }
 0xf1e   :  { %v3635_v42 = vpop.f32.mrb[82].mxu0 }
 0xf1f   :  { %v4564_v39 = vpop.f32.mrb[83].mxu0 }
 0xf3c   :  { %v3721_v15 = vpop.f32.mrb[84].mxu0 }
 0xf3d   :  { %v3730_v7 = vadd.f32 %v3721_v15, %v262_v26  ;;  %v3723_v2 = vpop.f32.mrb[85].mxu0 }
 0xf3e   :  { %v3731_v49 = vadd.f32 %v3723_v2, %v264_v0  ;;  %v3725_v50 = vpop.f32.mrb[86].mxu0 }
 0xf3f   :  { %5046 = vtanh.f32 %v3730_v7  ;;  %v3726_v14 = vpop.f32.mrb[87].mxu0 }
 0xf40   :  { %v3741_v58 = vmul.f32 0.5, %v3731_v49 }
 0xf42   :  { %5048 = vtanh.f32 %v3741_v58 }
 0xf49   :  { %v5047_v9 = vpop.eup %5046 }
 0xf4a   :  { %v3746_v17 = vmul.f32 %v5047_v9, %v3735_v63  ;;  %v4352_v63 = vld [vmem:[%s8276_s8] ss:$0 sm:$0xff] }
 0xf4c   :  { %v3747_v55 = vadd.f32 %v3746_v17, %v3745_v36  ;;  %v5049_v8 = vpop.eup %5048 }
 0xf4d   :  { %v3743_v51 = vmul.f32 0.5, %v5049_v8 }
 0xf4e   :  { %5050 = vtanh.f32 %v3747_v55 }
 0xf4f   :  { %v3744_v38 = vadd.f32 0.5, %v3743_v51 }
 0xf58   :  { %v5051_v52 = vpop.eup %5050 }
 0xf59   :  { %v3749_v1 = vmul.f32 %v5051_v52, %v3744_v38 }
 0xf5b   :  { %v3750_v5 = vpack.c.bf16 %v3749_v1, %v3749_v1 }
 0xf5d   :  { %3801 = vmatmul.mubr.bf16.vlgmr.msra.gmra.mrb[84].mxu1 %v3750_v5  ;;  %3842 = vmatmul.mubr.bf16.vlgmr.msra.gmra.mrb[88].mxu0 %v3750_v5 }
 0xf5e   :  { %3851 = vmatpush1.bf16.msra.mxu1 %v7505_v16  ;;  %3892 = vmatpush1.bf16.msra.mxu0 %v7511_v60  ;;  %v8947_v16 = vld [vmem:[#allocation52_spill] sm:$0xff]  ;;  %v8948_v60 = vld [vmem:[#allocation54_spill] sm:$0xff] }
 0xf5f   :  { %3852 = vmatprep.subr.bf16.mxu1 %v7517_v40  ;;  %3893 = vmatprep.subr.bf16.mxu0 %v7523_v6  ;;  %v8949_v40 = vld [vmem:[#allocation56_spill] sm:$0xff]  ;;  %v8950_v6 = vld [vmem:[#allocation29_spill] sm:$0xff] }
 0xf60   :  { %3882 = vmatprep.mubr.bf16.mxu1 %v8554_v61  ;;  %3923 = vmatprep.mubr.bf16.mxu0 %v8554_v61  ;;  %v8946_v61 = vld [vmem:[#allocation50_spill] sm:$0xff] }
 0xf62   :  { %3853 = vmatpush1.bf16.msra.mxu1 %v7531_v33  ;;  %3894 = vmatpush1.bf16.msra.mxu0 %v7537_v29  ;;  %v8951_v33 = vld [vmem:[#allocation31_spill] sm:$0xff]  ;;  %v8952_v29 = vld [vmem:[#allocation33_spill] sm:$0xff] }
 0xf63   :  { %3854 = vmatprep.subr.bf16.mxu1 %v7543_v56  ;;  %3895 = vmatprep.subr.bf16.mxu0 %v7549_v35  ;;  %v8953_v56 = vld [vmem:[#allocation35_spill] sm:$0xff]  ;;  %v8954_v35 = vld [vmem:[#allocation37_spill] sm:$0xff] }
 0xf66   :  { %3855 = vmatpush1.bf16.msra.mxu1 %v7555_v62  ;;  %3896 = vmatpush1.bf16.msra.mxu0 %v7561_v25  ;;  %v8955_v62 = vmov 0.0   ;;  %v4894_v25 = vld [vmem:[%s8274_s7 + $0x1c0] sm:$0xff]  }
 0xf67   :  { %3856 = vmatprep.subr.bf16.mxu1 %v7567_v37  ;;  %3897 = vmatprep.subr.bf16.mxu0 %v7573_v4  ;;  %v4895_v37 = vld [vmem:[%s8274_s7 + $0x1c8] sm:$0xff]   ;;  %v4896_v4 = vld [vmem:[%s8274_s7 + $0x1d0] sm:$0xff]  }
 0xf6a   :  { %3857 = vmatpush1.bf16.msra.mxu1 %v7579_v23  ;;  %3898 = vmatpush1.bf16.msra.mxu0 %v7585_v43  ;;  %v4897_v23 = vld [vmem:[%s8274_s7 + $0x1d8] sm:$0xff]   ;;  %v4898_v43 = vld [vmem:[%s8274_s7 + $0x1e0] sm:$0xff]  }
 0xf6b   :  { %3858 = vmatprep.subr.bf16.mxu1 %v8894_v20  ;;  %3899 = vmatprep.subr.bf16.mxu0 %v8895_v47  ;;  %v4900_v20 = vld [vmem:[%s8274_s7 + $0x1f0] sm:$0xff]   ;;  %v4901_v47 = vld [vmem:[%s8274_s7 + $0x1f8] sm:$0xff]  }
 0xf6e   :  { %3859 = vmatpush1.bf16.msra.mxu1 %v8896_v22  ;;  %3900 = vmatpush1.bf16.msra.mxu0 %v8897_v18 }
 0xf6f   :  { %3860 = vmatprep.subr.bf16.mxu1 %v8898_v46  ;;  %3901 = vmatprep.subr.bf16.mxu0 %v8899_v24  ;;  %v8956_v46 = vld [vmem:[#allocation77_spill] sm:$0xff] }
 0xf72   :  { %3861 = vmatpush1.bf16.msra.mxu1 %v8900_v28  ;;  %3902 = vmatpush1.bf16.msra.mxu0 %v8946_v61 }
 0xf73   :  { %3862 = vmatprep.subr.bf16.mxu1 %v8947_v16  ;;  %3903 = vmatprep.subr.bf16.mxu0 %v8948_v60 }
 0xf76   :  { %3863 = vmatpush1.bf16.msra.mxu1 %v8949_v40  ;;  %3904 = vmatpush1.bf16.msra.mxu0 %v8950_v6 }
 0xf77   :  { %3864 = vmatprep.subr.bf16.mxu1 %v8951_v33  ;;  %3905 = vmatprep.subr.bf16.mxu0 %v8952_v29 }
 0xf7a   :  { %3865 = vmatpush1.bf16.msra.mxu1 %v8953_v56  ;;  %3906 = vmatpush1.bf16.msra.mxu0 %v8954_v35 }
 0xf7b   :  { %4565 = vmatprep.subr.bf16.mxu1 %v8955_v62 }
 0xf7d   :  { %3883 = vmatmul.mubr.bf16.vlgmr.msra.gmra.mrb[84].mxu1 %v8106_v30  ;;  %3924 = vmatmul.mubr.bf16.vlgmr.msra.gmra.mrb[88].mxu0 %v8106_v30 }
 0xf7e   :  { %4581 = vmatprep.mubr.msk.bf16.mxu1 %vm5273_vm1, %v8955_v62  ;;  %4566 = vmatpush3.bf16.msra.mxu1 %v4894_v25 }
 0xf7f   :  { %4567 = vmatprep.subr.bf16.mxu1 %v8955_v62 }
 0xf82   :  { %4568 = vmatpush3.bf16.msra.mxu1 %v4895_v37 }
 0xf83   :  { %4569 = vmatprep.subr.bf16.mxu1 %v8955_v62 }
 0xf86   :  { %4570 = vmatpush3.bf16.msra.mxu1 %v4896_v4 }
 0xf87   :  { %4571 = vmatprep.subr.bf16.mxu1 %v8955_v62 }
 0xf8a   :  { %4572 = vmatpush3.bf16.msra.mxu1 %v4897_v23 }
 0xf8b   :  { %4573 = vmatprep.subr.bf16.mxu1 %v8955_v62 }
 0xf8e   :  { %4574 = vmatpush3.bf16.msra.mxu1 %v4898_v43 }
 0xf8f   :  { %4575 = vmatprep.subr.bf16.mxu1 %v8955_v62 }
 0xf92   :  { %4576 = vmatpush3.bf16.msra.mxu1 %v4899_v57 }
 0xf93   :  { %4577 = vmatprep.subr.bf16.mxu1 %v8955_v62 }
 0xf96   :  { %4578 = vmatpush3.bf16.msra.mxu1 %v4900_v20 }
 0xf97   :  { %4579 = vmatprep.subr.bf16.mxu1 %v8955_v62 }
 0xf9a   :  { %4580 = vmatpush3.bf16.msra.mxu1 %v4901_v47 }
0x1050   :  { %v3884_v22 = vpop.f32.mrb[84].mxu1  ;;  %v3925_v18 = vpop.f32.mrb[88].mxu0 }
0x1051   :  { %v4613_v24 = vadd.f32 %v3884_v22, %v8956_v46  ;;  %v3886_v28 = vpop.f32.mrb[85].mxu1  ;;  %v3927_v30 = vpop.f32.mrb[89].mxu0  ;;  %v4615_v48 = vadd.f32 %v3925_v18, %v6097_v27 }
0x1052   :  { %v4614_v32 = vadd.f32 %v3886_v28, %v6091_v21  ;;  %v3888_v19 = vpop.f32.mrb[86].mxu1  ;;  %v3929_v31 = vpop.f32.mrb[90].mxu0  ;;  %v4616_v44 = vadd.f32 %v3927_v30, %v6120_v41 }
0x1053   :  { %v3936_v42 = vmul.f32 0.5, %v4613_v24  ;;  %v3889_v39 = vpop.f32.mrb[87].mxu1  ;;  %v3930_v12 = vpop.f32.mrb[91].mxu0 }
0x1054   :  { %v3940_v10 = vmul.f32 0.5, %v4614_v32  ;;  %v3945_v26 = vmul.f32 0.5, %v4616_v44 }
0x1055   :  { %5052 = vtanh.f32 %v3936_v42 }
0x1056   :  { %5054 = vtanh.f32 %v3940_v10 }
0x1057   :  { %5056 = vtanh.f32 %v4615_v48 }
0x1058   :  { %5058 = vtanh.f32 %v3945_v26 }
0x105f   :  { %v5053_v54 = vpop.eup %5052 }
0x1060   :  { %v5055_v0 = vpop.eup %5054  ;;  %v3938_v15 = vmul.f32 0.5, %v5053_v54 }
0x1061   :  { %v3942_v7 = vmul.f32 0.5, %v5055_v0  ;;  %v5057_v2 = vpop.eup %5056 }
0x1062   :  { %v3939_v21 = vadd.f32 0.5, %v3938_v15  ;;  %v5059_v34 = vpop.eup %5058 }
0x1063   :  { %v3943_v49 = vadd.f32 0.5, %v3942_v7  ;;  %v3947_v27 = vmul.f32 0.5, %v5059_v34 }
0x1064   :  { %v3950_v50 = vmul.f32 %v5057_v2, %v3939_v21 }
0x1065   :  { %v3949_v45 = vmul.f32 %v3943_v49, %v8095_v59  ;;  %v3948_v13 = vadd.f32 0.5, %v3947_v27 }
0x1067   :  { %v3951_v14 = vadd.f32 %v3950_v50, %v3949_v45 }
0x1069   :  { %5060 = vtanh.f32 %v3951_v14 }
0x1073   :  { %v5061_v58 = vpop.eup %5060 }
0x1074   :  { %v3953_v53 = vmul.f32 %v5061_v58, %v3948_v13 }
0x1076   :  { %v3954_v41 = vpack.c.bf16 %v3953_v53, %v3953_v53 }
0x1078   :  { %4582 = vmatmul.mubr.bf16.vlgmr.msra.gmra.mrb[88].mxu1 %v3954_v41 }
0x114b   :  { %v4037_v3 = vpop.f32.mrb[88].mxu1 }
0x114c   :  { %v4043_v9 = vadd.f32 %v4037_v3, %v8179_v11  ;;  %v4583_v36 = vpop.f32.mrb[89].mxu1 }
0x114d   :  { %v4040_v17 = vpop.f32.mrb[90].mxu1 }
0x114e   :  { %v4051_v55 = vadd.f32 %v4352_v63, %v4043_v9  ;;  %v4584_v59 = vpop.f32.mrb[91].mxu1 }
0x1150   :  { %4052 = vst [vmem:[%s8277_s9] sm:$0xff] %v4051_v55 }

</bundles_post_ra>
